<compile_context>
chip_gen: v6e
topology: v6e:2x2x1
jax: 0.10.0
libtpu: 0.0.40
codegen_flags: <defaults>
</compile_context>

<pallas_src>
import functools

import jax
import jax.numpy as jnp
import numpy as np
from jax.experimental import pallas as pl
from jax.experimental.pallas import tpu as pltpu


# ---------------------------------------------------------------------------
# Fused kernel: upsample + pad + concat + (conv3x3+BN+ReLU) x 2
# ---------------------------------------------------------------------------
def _upsample_unetblock_kernel(x1_ref, x2_ref, w1a_ref, w1b_ref, w2_ref,
                               shifts_ref, sel_ref, o_ref, *,
                               C1, Cout, HW1, HW2):
    # x1_ref     : (1, C1, HW1)    x1 with spatial flattened (pre-upsample)
    # x2_ref     : (1, C1, HW2)    x2 with spatial flattened
    # w1a_ref    : (9, Cout, C1)   conv1 weights (tap-major), x1-channel half, BN1 scale folded
    # w1b_ref    : (9, Cout, C1)   conv1 weights, x2-channel half, BN1 scale folded
    # w2_ref     : (9, Cout, Cout) conv2 weights (tap-major), BN2 scale folded
    # shifts_ref : (2, Cout, 1)    folded (bias + BN) shifts for conv1 / conv2
    # sel_ref    : (10, HW2) int32 row 0: upsample+F.pad source index per pixel
    #                              rows 1..9: 3x3-tap source index per pixel (-1 = zero pad)
    # o_ref      : (1, Cout, HW2)  lane-dense NCHW output (spatial flattened)
    f32 = jnp.float32
    x1 = x1_ref[0]                      # (C1, HW1)
    x2 = x2_ref[0]                      # (C1, HW2)
    sel = sel_ref[...]                  # (10, HW2)

    # nearest-neighbour 2x upsample + F.pad placement of x1 on the x2 canvas,
    # as a single 0/1 selection matmul (lane-dense, MXU path, no reshapes).
    rows_up = jax.lax.broadcasted_iota(jnp.int32, (HW1, HW2), 0)
    up_mat = (rows_up == sel[0:1, :]).astype(f32)                   # (HW1, HW2)
    x1_up = jnp.dot(x1, up_mat, preferred_element_type=f32)         # (C1, HW2)

    # per-tap shift (+ zero padding) selection matrices, shared by both convs.
    # Tap 4 is the (0, 0) offset -> identity, no matmul needed.
    rows = jax.lax.broadcasted_iota(jnp.int32, (HW2, HW2), 0)
    tap_mats = [None if t == 4 else (rows == sel[t + 1:t + 2, :]).astype(f32)
                for t in range(9)]

    # ---- conv1 (3x3, SAME) + folded BatchNorm1 + ReLU ----------------------
    # W_t @ (X @ S_t) == (W_t @ X) @ S_t : contract channels first (tiny), then
    # apply the spatial tap shift once per tap.  Channel concat is implicit in
    # the w1a/w1b split, so no concatenate op is needed.
    acc1 = jnp.zeros((Cout, HW2), f32)
    for t in range(9):
        y = (jnp.dot(w1a_ref[t], x1_up, preferred_element_type=f32) +
             jnp.dot(w1b_ref[t], x2, preferred_element_type=f32))
        acc1 = acc1 + (y if tap_mats[t] is None
                       else jnp.dot(y, tap_mats[t], preferred_element_type=f32))
    h1 = jnp.maximum(acc1 + shifts_ref[0], 0.0)                     # (Cout, HW2)

    # ---- conv2 (3x3, SAME) + folded BatchNorm2 + ReLU ----------------------
    acc2 = jnp.zeros((Cout, HW2), f32)
    for t in range(9):
        y = jnp.dot(w2_ref[t], h1, preferred_element_type=f32)
        acc2 = acc2 + (y if tap_mats[t] is None
                       else jnp.dot(y, tap_mats[t], preferred_element_type=f32))
    o_ref[0] = jnp.maximum(acc2 + shifts_ref[1], 0.0).astype(o_ref.dtype)


# ---------------------------------------------------------------------------
# Host-side index-table construction (trace-time constants, pure numpy)
# ---------------------------------------------------------------------------
def _build_sel_table(H, W, H2, W2, pad_left):
    """(10, H2*W2) int32: row 0 = upsample+F.pad source, rows 1..9 = conv taps."""
    HW2 = H2 * W2
    y = np.arange(HW2, dtype=np.int64) // W2
    x = np.arange(HW2, dtype=np.int64) % W2
    sel = np.full((10, HW2), -1, dtype=np.int32)

    # row 0: nearest upsampled x1 placed on the (H2, W2) canvas after F.pad.
    xs = x - pad_left
    ok = (xs >= 0) & (xs < 2 * W) & (y < 2 * H)
    sel[0] = np.where(ok, (y // 2) * W + xs // 2, -1)

    # rows 1..9: 3x3 conv taps with zero padding (padding=1), t = dy*3 + dx.
    t = 1
    for dy in range(3):
        for dx in range(3):
            sy, sx = y + dy - 1, x + dx - 1
            ok = (sy >= 0) & (sy < H2) & (sx >= 0) & (sx < W2)
            sel[t] = np.where(ok, sy * W2 + sx, -1)
            t += 1
    return jnp.asarray(sel)


# ---------------------------------------------------------------------------
# Upsampling.forward (mode="nearest") — single fused pallas_call
# ---------------------------------------------------------------------------
def upsampling_forward(params, x1, x2):
    N, C1, H, W = x1.shape
    N2, C1b, H2, W2 = x2.shape
    assert N2 == N and C1b == C1
    # Reference quirk: pad_y = x2.H - x2.H == 0, so the torch module only works
    # when x2's height is exactly 2 * x1's height.
    assert H2 == 2 * H, "x2 height must equal 2 * x1 height (reference pad_y quirk)"
    pad_left = (W2 - 2 * W) // 2            # F.pad left amount (0 for these shapes)

    Cout = params["w2"].shape[1]
    HW1, HW2 = H * W, H2 * W2
    sel = _build_sel_table(H, W, H2, W2, pad_left)

    kernel = functools.partial(_upsample_unetblock_kernel,
                               C1=C1, Cout=Cout, HW1=HW1, HW2=HW2)
    out = pl.pallas_call(
        kernel,
        out_shape=jax.ShapeDtypeStruct((N, Cout, HW2), x2.dtype),
        grid=(N,),
        in_specs=[
            pl.BlockSpec((1, C1, HW1), lambda n: (n, 0, 0)),     # x1 (flattened)
            pl.BlockSpec((1, C1, HW2), lambda n: (n, 0, 0)),     # x2 (flattened)
            pl.BlockSpec((9, Cout, C1), lambda n: (0, 0, 0)),    # w1, x1-channel half
            pl.BlockSpec((9, Cout, C1), lambda n: (0, 0, 0)),    # w1, x2-channel half
            pl.BlockSpec((9, Cout, Cout), lambda n: (0, 0, 0)),  # w2
            pl.BlockSpec((2, Cout, 1), lambda n: (0, 0, 0)),     # folded BN shifts
            pl.BlockSpec((10, HW2), lambda n: (0, 0)),           # selection tables
        ],
        out_specs=pl.BlockSpec((1, Cout, HW2), lambda n: (n, 0, 0)),
        compiler_params=pltpu.CompilerParams(
            dimension_semantics=("parallel",)),   # batch across TCs on v7x
    )(x1.reshape(N, C1, HW1), x2.reshape(N, C1, HW2),
      params["w1a"], params["w1b"], params["w2"], params["shifts"], sel)
    return out.reshape(N, Cout, H2, W2)       # free metadata reshape (NCHW)


# ---------------------------------------------------------------------------
# Parameter construction (raw, PyTorch-style) + folding into kernel layout
# ---------------------------------------------------------------------------
def init_upsampling_params(key, in_channels, out_channels):
    def init_block(k, cin, cout):
        ks = jax.random.split(k, 6)
        return dict(
            w=jax.random.normal(ks[0], (cout, cin, 3, 3), jnp.float32) * 0.1,  # OIHW
            b=jax.random.normal(ks[1], (cout,), jnp.float32) * 0.1,
            gamma=jax.random.uniform(ks[2], (cout,), jnp.float32, 0.5, 1.5),
            beta=jax.random.normal(ks[3], (cout,), jnp.float32) * 0.1,
            mean=jax.random.normal(ks[4], (cout,), jnp.float32) * 0.1,
            var=jax.random.uniform(ks[5], (cout,), jnp.float32, 0.5, 1.5),
        )
    k1, k2 = jax.random.split(key)
    return dict(conv1=init_block(k1, in_channels, out_channels),
                conv2=init_block(k2, out_channels, out_channels))


def prepare_kernel_params(raw, eps=1e-5):
    """Fold BN(eval) scale into the conv weights, bias+BN shift into one vector,
    and lay the 3x3 weights out tap-major (9, Cout, Cin) for the kernel."""
    def fold(p):
        scale = p["gamma"] / jnp.sqrt(p["var"] + eps)           # (Cout,)
        shift = p["beta"] + (p["b"] - p["mean"]) * scale        # (Cout,)
        cout, cin = p["w"].shape[:2]
        w = jnp.transpose(p["w"], (2, 3, 0, 1)).reshape(9, cout, cin)
        return w * scale[None, :, None], shift
    w1, sh1 = fold(raw["conv1"])
    w2, sh2 = fold(raw["conv2"])
    c1 = raw["conv1"]["w"].shape[1] // 2
    return dict(w1a=w1[:, :, :c1], w1b=w1[:, :, c1:], w2=w2,
                shifts=jnp.stack([sh1, sh2])[:, :, None])


# ---------------------------------------------------------------------------
# Pure-JAX reference (mirrors the PyTorch forward, unfolded BN)
# ---------------------------------------------------------------------------
def _ref_block(x, p, eps=1e-5):
    y = jax.lax.conv_general_dilated(
        x, p["w"], window_strides=(1, 1), padding=((1, 1), (1, 1)),
        dimension_numbers=("NCHW", "OIHW", "NCHW"),
        precision=jax.lax.Precision.HIGHEST)
    y = y + p["b"].reshape(1, -1, 1, 1)
    y = ((y - p["mean"].reshape(1, -1, 1, 1))
         / jnp.sqrt(p["var"].reshape(1, -1, 1, 1) + eps)
         * p["gamma"].reshape(1, -1, 1, 1) + p["beta"].reshape(1, -1, 1, 1))
    return jnp.maximum(y, 0.0)


def _ref_forward(raw, x1, x2):
    up = jnp.repeat(jnp.repeat(x1, 2, axis=2), 2, axis=3)
    pad_x = x2.shape[3] - up.shape[3]
    pad_y = x2.shape[2] - x2.shape[2]              # reference quirk: always 0
    pad_xx, pad_yy = pad_x // 2, pad_y // 2
    # (only non-negative pads exercised here, matching F.pad for these shapes)
    up = jnp.pad(up, ((0, 0), (0, 0),
                      (pad_yy, pad_y - pad_yy), (pad_xx, pad_x - pad_xx)))
    cat = jnp.concatenate([up, x2], axis=1)
    h = _ref_block(cat, raw["conv1"])
    h = _ref_block(h, raw["conv2"])
    return h


# ---------------------------------------------------------------------------
if __name__ == "__main__":
    # Upsampling(in_channels=8, out_channels=4, mode="nearest"):
    #   x1: (N, in_channels // 2, H, W), x2: (N, in_channels // 2, 2H, 2W)
    in_channels, out_channels = 8, 4
    N, H, W = 2, 8, 8

    key = jax.random.PRNGKey(0)
    kp, kx1, kx2 = jax.random.split(key, 3)
    raw = init_upsampling_params(kp, in_channels, out_channels)
    kparams = prepare_kernel_params(raw)
    x1 = jax.random.normal(kx1, (N, in_channels // 2, H, W), jnp.float32)
    x2 = jax.random.normal(kx2, (N, in_channels // 2, 2 * H, 2 * W), jnp.float32)

    out = jax.block_until_ready(jax.jit(upsampling_forward)(kparams, x1, x2))
    ref = jax.block_until_ready(_ref_forward(raw, x1, x2))

    assert out.shape == (N, out_channels, 2 * H, 2 * W), out.shape
    np.testing.assert_allclose(np.asarray(out), np.asarray(ref),
                               rtol=1e-4, atol=1e-4)
    print("KERNEL_OK")
</pallas_src>

<mosaic_0001>
module attributes {stable_mosaic.version = 11 : i64} {
  func.func @_upsample_unetblock_kernel(%arg0: i32, %arg1: memref<1x4x64xf32, #tpu.memory_space<vmem>>, %arg2: memref<1x4x256xf32, #tpu.memory_space<vmem>>, %arg3: memref<9x4x4xf32, #tpu.memory_space<vmem>>, %arg4: memref<9x4x4xf32, #tpu.memory_space<vmem>>, %arg5: memref<9x4x4xf32, #tpu.memory_space<vmem>>, %arg6: memref<2x4x1xf32, #tpu.memory_space<vmem>>, %arg7: memref<10x256xi32, #tpu.memory_space<vmem>>, %arg8: memref<1x4x256xf32, #tpu.memory_space<vmem>>) attributes {dimension_semantics = [#tpu.dimension_semantics<parallel>], iteration_bounds = array<i64: 2>, scalar_prefetch = 0 : i64, scratch_operands = 0 : i64, tpu.core_type = #tpu.core_type<tc>, window_params = [{transform_indices = @transform_0, window_bounds = array<i64: 1, 4, 64>}, {transform_indices = @transform_1, window_bounds = array<i64: 1, 4, 256>}, {pipeline_mode = #tpu.pipeline_mode<synchronous>, transform_indices = @transform_2, window_bounds = array<i64: 9, 4, 4>}, {pipeline_mode = #tpu.pipeline_mode<synchronous>, transform_indices = @transform_3, window_bounds = array<i64: 9, 4, 4>}, {pipeline_mode = #tpu.pipeline_mode<synchronous>, transform_indices = @transform_4, window_bounds = array<i64: 9, 4, 4>}, {pipeline_mode = #tpu.pipeline_mode<synchronous>, transform_indices = @transform_5, window_bounds = array<i64: 2, 4, 1>}, {pipeline_mode = #tpu.pipeline_mode<synchronous>, transform_indices = @transform_6, window_bounds = array<i64: 10, 256>}, {transform_indices = @transform_7, window_bounds = array<i64: 1, 4, 256>}]} {
    %c0 = arith.constant 0 : index
    %c0_0 = arith.constant 0 : index
    %c0_1 = arith.constant 0 : index
    %0 = vector.load %arg1[%c0, %c0_0, %c0_1] : memref<1x4x64xf32, #tpu.memory_space<vmem>>, vector<1x4x64xf32>
    %1 = vector.shape_cast %0 : vector<1x4x64xf32> to vector<4x64xf32>
    %c0_2 = arith.constant 0 : index
    %c0_3 = arith.constant 0 : index
    %c0_4 = arith.constant 0 : index
    %2 = vector.load %arg2[%c0_2, %c0_3, %c0_4] : memref<1x4x256xf32, #tpu.memory_space<vmem>>, vector<1x4x256xf32>
    %3 = vector.shape_cast %2 : vector<1x4x256xf32> to vector<4x256xf32>
    %c0_5 = arith.constant 0 : index
    %c0_6 = arith.constant 0 : index
    %4 = vector.load %arg7[%c0_5, %c0_6] : memref<10x256xi32, #tpu.memory_space<vmem>>, vector<10x256xi32>
    %5 = tpu.iota {dimensions = array<i32: 0>} : vector<64x256xi32>
    %6 = vector.extract_strided_slice %4 {offsets = [0, 0], sizes = [1, 256], strides = [1, 1]} : vector<10x256xi32> to vector<1x256xi32>
    %7 = vector.broadcast %6 : vector<1x256xi32> to vector<64x256xi32>
    %8 = arith.cmpi eq, %5, %7 : vector<64x256xi32>
    %9 = arith.extui %8 : vector<64x256xi1> to vector<64x256xi32>
    %10 = arith.sitofp %9 : vector<64x256xi32> to vector<64x256xf32>
    %cst = arith.constant dense<0.000000e+00> : vector<4x256xf32>
    %11 = tpu.matmul %1, %10, %cst {dimension_numbers = #tpu.dot_dimension_numbers<[1], [0], [0], [1], [0, 0, 1, 1], [], []>} : vector<4x64xf32>, vector<64x256xf32>, vector<4x256xf32> -> vector<4x256xf32>
    %12 = tpu.iota {dimensions = array<i32: 0>} : vector<256x256xi32>
    %13 = vector.extract_strided_slice %4 {offsets = [1, 0], sizes = [1, 256], strides = [1, 1]} : vector<10x256xi32> to vector<1x256xi32>
    %14 = vector.broadcast %13 : vector<1x256xi32> to vector<256x256xi32>
    %15 = arith.cmpi eq, %12, %14 : vector<256x256xi32>
    %16 = arith.extui %15 : vector<256x256xi1> to vector<256x256xi32>
    %17 = arith.sitofp %16 : vector<256x256xi32> to vector<256x256xf32>
    %18 = vector.extract_strided_slice %4 {offsets = [2, 0], sizes = [1, 256], strides = [1, 1]} : vector<10x256xi32> to vector<1x256xi32>
    %19 = vector.broadcast %18 : vector<1x256xi32> to vector<256x256xi32>
    %20 = arith.cmpi eq, %12, %19 : vector<256x256xi32>
    %21 = arith.extui %20 : vector<256x256xi1> to vector<256x256xi32>
    %22 = arith.sitofp %21 : vector<256x256xi32> to vector<256x256xf32>
    %23 = vector.extract_strided_slice %4 {offsets = [3, 0], sizes = [1, 256], strides = [1, 1]} : vector<10x256xi32> to vector<1x256xi32>
    %24 = vector.broadcast %23 : vector<1x256xi32> to vector<256x256xi32>
    %25 = arith.cmpi eq, %12, %24 : vector<256x256xi32>
    %26 = arith.extui %25 : vector<256x256xi1> to vector<256x256xi32>
    %27 = arith.sitofp %26 : vector<256x256xi32> to vector<256x256xf32>
    %28 = vector.extract_strided_slice %4 {offsets = [4, 0], sizes = [1, 256], strides = [1, 1]} : vector<10x256xi32> to vector<1x256xi32>
    %29 = vector.broadcast %28 : vector<1x256xi32> to vector<256x256xi32>
    %30 = arith.cmpi eq, %12, %29 : vector<256x256xi32>
    %31 = arith.extui %30 : vector<256x256xi1> to vector<256x256xi32>
    %32 = arith.sitofp %31 : vector<256x256xi32> to vector<256x256xf32>
    %33 = vector.extract_strided_slice %4 {offsets = [6, 0], sizes = [1, 256], strides = [1, 1]} : vector<10x256xi32> to vector<1x256xi32>
    %34 = vector.broadcast %33 : vector<1x256xi32> to vector<256x256xi32>
    %35 = arith.cmpi eq, %12, %34 : vector<256x256xi32>
    %36 = arith.extui %35 : vector<256x256xi1> to vector<256x256xi32>
    %37 = arith.sitofp %36 : vector<256x256xi32> to vector<256x256xf32>
    %38 = vector.extract_strided_slice %4 {offsets = [7, 0], sizes = [1, 256], strides = [1, 1]} : vector<10x256xi32> to vector<1x256xi32>
    %39 = vector.broadcast %38 : vector<1x256xi32> to vector<256x256xi32>
    %40 = arith.cmpi eq, %12, %39 : vector<256x256xi32>
    %41 = arith.extui %40 : vector<256x256xi1> to vector<256x256xi32>
    %42 = arith.sitofp %41 : vector<256x256xi32> to vector<256x256xf32>
    %43 = vector.extract_strided_slice %4 {offsets = [8, 0], sizes = [1, 256], strides = [1, 1]} : vector<10x256xi32> to vector<1x256xi32>
    %44 = vector.broadcast %43 : vector<1x256xi32> to vector<256x256xi32>
    %45 = arith.cmpi eq, %12, %44 : vector<256x256xi32>
    %46 = arith.extui %45 : vector<256x256xi1> to vector<256x256xi32>
    %47 = arith.sitofp %46 : vector<256x256xi32> to vector<256x256xf32>
    %48 = vector.extract_strided_slice %4 {offsets = [9, 0], sizes = [1, 256], strides = [1, 1]} : vector<10x256xi32> to vector<1x256xi32>
    %49 = vector.broadcast %48 : vector<1x256xi32> to vector<256x256xi32>
    %50 = arith.cmpi eq, %12, %49 : vector<256x256xi32>
    %51 = arith.extui %50 : vector<256x256xi1> to vector<256x256xi32>
    %52 = arith.sitofp %51 : vector<256x256xi32> to vector<256x256xf32>
    %cst_7 = arith.constant 0.000000e+00 : f32
    %53 = vector.broadcast %cst_7 : f32 to vector<4x256xf32>
    %c0_8 = arith.constant 0 : index
    %c0_9 = arith.constant 0 : index
    %c0_10 = arith.constant 0 : index
    %54 = vector.load %arg3[%c0_8, %c0_9, %c0_10] : memref<9x4x4xf32, #tpu.memory_space<vmem>>, vector<1x4x4xf32>
    %55 = vector.shape_cast %54 : vector<1x4x4xf32> to vector<4x4xf32>
    %cst_11 = arith.constant dense<0.000000e+00> : vector<4x256xf32>
    %56 = tpu.matmul %55, %11, %cst_11 {dimension_numbers = #tpu.dot_dimension_numbers<[1], [0], [0], [1], [0, 0, 1, 1], [], []>} : vector<4x4xf32>, vector<4x256xf32>, vector<4x256xf32> -> vector<4x256xf32>
    %c0_12 = arith.constant 0 : index
    %c0_13 = arith.constant 0 : index
    %c0_14 = arith.constant 0 : index
    %57 = vector.load %arg4[%c0_12, %c0_13, %c0_14] : memref<9x4x4xf32, #tpu.memory_space<vmem>>, vector<1x4x4xf32>
    %58 = vector.shape_cast %57 : vector<1x4x4xf32> to vector<4x4xf32>
    %cst_15 = arith.constant dense<0.000000e+00> : vector<4x256xf32>
    %59 = tpu.matmul %58, %3, %cst_15 {dimension_numbers = #tpu.dot_dimension_numbers<[1], [0], [0], [1], [0, 0, 1, 1], [], []>} : vector<4x4xf32>, vector<4x256xf32>, vector<4x256xf32> -> vector<4x256xf32>
    %60 = arith.addf %56, %59 : vector<4x256xf32>
    %cst_16 = arith.constant dense<0.000000e+00> : vector<4x256xf32>
    %61 = tpu.matmul %60, %17, %cst_16 {dimension_numbers = #tpu.dot_dimension_numbers<[1], [0], [0], [1], [0, 0, 1, 1], [], []>} : vector<4x256xf32>, vector<256x256xf32>, vector<4x256xf32> -> vector<4x256xf32>
    %62 = arith.addf %53, %61 : vector<4x256xf32>
    %c1 = arith.constant 1 : index
    %c0_17 = arith.constant 0 : index
    %c0_18 = arith.constant 0 : index
    %63 = vector.load %arg3[%c1, %c0_17, %c0_18] : memref<9x4x4xf32, #tpu.memory_space<vmem>>, vector<1x4x4xf32>
    %64 = vector.shape_cast %63 : vector<1x4x4xf32> to vector<4x4xf32>
    %cst_19 = arith.constant dense<0.000000e+00> : vector<4x256xf32>
    %65 = tpu.matmul %64, %11, %cst_19 {dimension_numbers = #tpu.dot_dimension_numbers<[1], [0], [0], [1], [0, 0, 1, 1], [], []>} : vector<4x4xf32>, vector<4x256xf32>, vector<4x256xf32> -> vector<4x256xf32>
    %c1_20 = arith.constant 1 : index
    %c0_21 = arith.constant 0 : index
    %c0_22 = arith.constant 0 : index
    %66 = vector.load %arg4[%c1_20, %c0_21, %c0_22] : memref<9x4x4xf32, #tpu.memory_space<vmem>>, vector<1x4x4xf32>
    %67 = vector.shape_cast %66 : vector<1x4x4xf32> to vector<4x4xf32>
    %cst_23 = arith.constant dense<0.000000e+00> : vector<4x256xf32>
    %68 = tpu.matmul %67, %3, %cst_23 {dimension_numbers = #tpu.dot_dimension_numbers<[1], [0], [0], [1], [0, 0, 1, 1], [], []>} : vector<4x4xf32>, vector<4x256xf32>, vector<4x256xf32> -> vector<4x256xf32>
    %69 = arith.addf %65, %68 : vector<4x256xf32>
    %cst_24 = arith.constant dense<0.000000e+00> : vector<4x256xf32>
    %70 = tpu.matmul %69, %22, %cst_24 {dimension_numbers = #tpu.dot_dimension_numbers<[1], [0], [0], [1], [0, 0, 1, 1], [], []>} : vector<4x256xf32>, vector<256x256xf32>, vector<4x256xf32> -> vector<4x256xf32>
    %71 = arith.addf %62, %70 : vector<4x256xf32>
    %c2 = arith.constant 2 : index
    %c0_25 = arith.constant 0 : index
    %c0_26 = arith.constant 0 : index
    %72 = vector.load %arg3[%c2, %c0_25, %c0_26] : memref<9x4x4xf32, #tpu.memory_space<vmem>>, vector<1x4x4xf32>
    %73 = vector.shape_cast %72 : vector<1x4x4xf32> to vector<4x4xf32>
    %cst_27 = arith.constant dense<0.000000e+00> : vector<4x256xf32>
    %74 = tpu.matmul %73, %11, %cst_27 {dimension_numbers = #tpu.dot_dimension_numbers<[1], [0], [0], [1], [0, 0, 1, 1], [], []>} : vector<4x4xf32>, vector<4x256xf32>, vector<4x256xf32> -> vector<4x256xf32>
    %c2_28 = arith.constant 2 : index
    %c0_29 = arith.constant 0 : index
    %c0_30 = arith.constant 0 : index
    %75 = vector.load %arg4[%c2_28, %c0_29, %c0_30] : memref<9x4x4xf32, #tpu.memory_space<vmem>>, vector<1x4x4xf32>
    %76 = vector.shape_cast %75 : vector<1x4x4xf32> to vector<4x4xf32>
    %cst_31 = arith.constant dense<0.000000e+00> : vector<4x256xf32>
    %77 = tpu.matmul %76, %3, %cst_31 {dimension_numbers = #tpu.dot_dimension_numbers<[1], [0], [0], [1], [0, 0, 1, 1], [], []>} : vector<4x4xf32>, vector<4x256xf32>, vector<4x256xf32> -> vector<4x256xf32>
    %78 = arith.addf %74, %77 : vector<4x256xf32>
    %cst_32 = arith.constant dense<0.000000e+00> : vector<4x256xf32>
    %79 = tpu.matmul %78, %27, %cst_32 {dimension_numbers = #tpu.dot_dimension_numbers<[1], [0], [0], [1], [0, 0, 1, 1], [], []>} : vector<4x256xf32>, vector<256x256xf32>, vector<4x256xf32> -> vector<4x256xf32>
    %80 = arith.addf %71, %79 : vector<4x256xf32>
    %c3 = arith.constant 3 : index
    %c0_33 = arith.constant 0 : index
    %c0_34 = arith.constant 0 : index
    %81 = vector.load %arg3[%c3, %c0_33, %c0_34] : memref<9x4x4xf32, #tpu.memory_space<vmem>>, vector<1x4x4xf32>
    %82 = vector.shape_cast %81 : vector<1x4x4xf32> to vector<4x4xf32>
    %cst_35 = arith.constant dense<0.000000e+00> : vector<4x256xf32>
    %83 = tpu.matmul %82, %11, %cst_35 {dimension_numbers = #tpu.dot_dimension_numbers<[1], [0], [0], [1], [0, 0, 1, 1], [], []>} : vector<4x4xf32>, vector<4x256xf32>, vector<4x256xf32> -> vector<4x256xf32>
    %c3_36 = arith.constant 3 : index
    %c0_37 = arith.constant 0 : index
    %c0_38 = arith.constant 0 : index
    %84 = vector.load %arg4[%c3_36, %c0_37, %c0_38] : memref<9x4x4xf32, #tpu.memory_space<vmem>>, vector<1x4x4xf32>
    %85 = vector.shape_cast %84 : vector<1x4x4xf32> to vector<4x4xf32>
    %cst_39 = arith.constant dense<0.000000e+00> : vector<4x256xf32>
    %86 = tpu.matmul %85, %3, %cst_39 {dimension_numbers = #tpu.dot_dimension_numbers<[1], [0], [0], [1], [0, 0, 1, 1], [], []>} : vector<4x4xf32>, vector<4x256xf32>, vector<4x256xf32> -> vector<4x256xf32>
    %87 = arith.addf %83, %86 : vector<4x256xf32>
    %cst_40 = arith.constant dense<0.000000e+00> : vector<4x256xf32>
    %88 = tpu.matmul %87, %32, %cst_40 {dimension_numbers = #tpu.dot_dimension_numbers<[1], [0], [0], [1], [0, 0, 1, 1], [], []>} : vector<4x256xf32>, vector<256x256xf32>, vector<4x256xf32> -> vector<4x256xf32>
    %89 = arith.addf %80, %88 : vector<4x256xf32>
    %c4 = arith.constant 4 : index
    %c0_41 = arith.constant 0 : index
    %c0_42 = arith.constant 0 : index
    %90 = vector.load %arg3[%c4, %c0_41, %c0_42] : memref<9x4x4xf32, #tpu.memory_space<vmem>>, vector<1x4x4xf32>
    %91 = vector.shape_cast %90 : vector<1x4x4xf32> to vector<4x4xf32>
    %cst_43 = arith.constant dense<0.000000e+00> : vector<4x256xf32>
    %92 = tpu.matmul %91, %11, %cst_43 {dimension_numbers = #tpu.dot_dimension_numbers<[1], [0], [0], [1], [0, 0, 1, 1], [], []>} : vector<4x4xf32>, vector<4x256xf32>, vector<4x256xf32> -> vector<4x256xf32>
    %c4_44 = arith.constant 4 : index
    %c0_45 = arith.constant 0 : index
    %c0_46 = arith.constant 0 : index
    %93 = vector.load %arg4[%c4_44, %c0_45, %c0_46] : memref<9x4x4xf32, #tpu.memory_space<vmem>>, vector<1x4x4xf32>
    %94 = vector.shape_cast %93 : vector<1x4x4xf32> to vector<4x4xf32>
    %cst_47 = arith.constant dense<0.000000e+00> : vector<4x256xf32>
    %95 = tpu.matmul %94, %3, %cst_47 {dimension_numbers = #tpu.dot_dimension_numbers<[1], [0], [0], [1], [0, 0, 1, 1], [], []>} : vector<4x4xf32>, vector<4x256xf32>, vector<4x256xf32> -> vector<4x256xf32>
    %96 = arith.addf %92, %95 : vector<4x256xf32>
    %97 = arith.addf %89, %96 : vector<4x256xf32>
    %c5 = arith.constant 5 : index
    %c0_48 = arith.constant 0 : index
    %c0_49 = arith.constant 0 : index
    %98 = vector.load %arg3[%c5, %c0_48, %c0_49] : memref<9x4x4xf32, #tpu.memory_space<vmem>>, vector<1x4x4xf32>
    %99 = vector.shape_cast %98 : vector<1x4x4xf32> to vector<4x4xf32>
    %cst_50 = arith.constant dense<0.000000e+00> : vector<4x256xf32>
    %100 = tpu.matmul %99, %11, %cst_50 {dimension_numbers = #tpu.dot_dimension_numbers<[1], [0], [0], [1], [0, 0, 1, 1], [], []>} : vector<4x4xf32>, vector<4x256xf32>, vector<4x256xf32> -> vector<4x256xf32>
    %c5_51 = arith.constant 5 : index
    %c0_52 = arith.constant 0 : index
    %c0_53 = arith.constant 0 : index
    %101 = vector.load %arg4[%c5_51, %c0_52, %c0_53] : memref<9x4x4xf32, #tpu.memory_space<vmem>>, vector<1x4x4xf32>
    %102 = vector.shape_cast %101 : vector<1x4x4xf32> to vector<4x4xf32>
    %cst_54 = arith.constant dense<0.000000e+00> : vector<4x256xf32>
    %103 = tpu.matmul %102, %3, %cst_54 {dimension_numbers = #tpu.dot_dimension_numbers<[1], [0], [0], [1], [0, 0, 1, 1], [], []>} : vector<4x4xf32>, vector<4x256xf32>, vector<4x256xf32> -> vector<4x256xf32>
    %104 = arith.addf %100, %103 : vector<4x256xf32>
    %cst_55 = arith.constant dense<0.000000e+00> : vector<4x256xf32>
    %105 = tpu.matmul %104, %37, %cst_55 {dimension_numbers = #tpu.dot_dimension_numbers<[1], [0], [0], [1], [0, 0, 1, 1], [], []>} : vector<4x256xf32>, vector<256x256xf32>, vector<4x256xf32> -> vector<4x256xf32>
    %106 = arith.addf %97, %105 : vector<4x256xf32>
    %c6 = arith.constant 6 : index
    %c0_56 = arith.constant 0 : index
    %c0_57 = arith.constant 0 : index
    %107 = vector.load %arg3[%c6, %c0_56, %c0_57] : memref<9x4x4xf32, #tpu.memory_space<vmem>>, vector<1x4x4xf32>
    %108 = vector.shape_cast %107 : vector<1x4x4xf32> to vector<4x4xf32>
    %cst_58 = arith.constant dense<0.000000e+00> : vector<4x256xf32>
    %109 = tpu.matmul %108, %11, %cst_58 {dimension_numbers = #tpu.dot_dimension_numbers<[1], [0], [0], [1], [0, 0, 1, 1], [], []>} : vector<4x4xf32>, vector<4x256xf32>, vector<4x256xf32> -> vector<4x256xf32>
    %c6_59 = arith.constant 6 : index
    %c0_60 = arith.constant 0 : index
    %c0_61 = arith.constant 0 : index
    %110 = vector.load %arg4[%c6_59, %c0_60, %c0_61] : memref<9x4x4xf32, #tpu.memory_space<vmem>>, vector<1x4x4xf32>
    %111 = vector.shape_cast %110 : vector<1x4x4xf32> to vector<4x4xf32>
    %cst_62 = arith.constant dense<0.000000e+00> : vector<4x256xf32>
    %112 = tpu.matmul %111, %3, %cst_62 {dimension_numbers = #tpu.dot_dimension_numbers<[1], [0], [0], [1], [0, 0, 1, 1], [], []>} : vector<4x4xf32>, vector<4x256xf32>, vector<4x256xf32> -> vector<4x256xf32>
    %113 = arith.addf %109, %112 : vector<4x256xf32>
    %cst_63 = arith.constant dense<0.000000e+00> : vector<4x256xf32>
    %114 = tpu.matmul %113, %42, %cst_63 {dimension_numbers = #tpu.dot_dimension_numbers<[1], [0], [0], [1], [0, 0, 1, 1], [], []>} : vector<4x256xf32>, vector<256x256xf32>, vector<4x256xf32> -> vector<4x256xf32>
    %115 = arith.addf %106, %114 : vector<4x256xf32>
    %c7 = arith.constant 7 : index
    %c0_64 = arith.constant 0 : index
    %c0_65 = arith.constant 0 : index
    %116 = vector.load %arg3[%c7, %c0_64, %c0_65] : memref<9x4x4xf32, #tpu.memory_space<vmem>>, vector<1x4x4xf32>
    %117 = vector.shape_cast %116 : vector<1x4x4xf32> to vector<4x4xf32>
    %cst_66 = arith.constant dense<0.000000e+00> : vector<4x256xf32>
    %118 = tpu.matmul %117, %11, %cst_66 {dimension_numbers = #tpu.dot_dimension_numbers<[1], [0], [0], [1], [0, 0, 1, 1], [], []>} : vector<4x4xf32>, vector<4x256xf32>, vector<4x256xf32> -> vector<4x256xf32>
    %c7_67 = arith.constant 7 : index
    %c0_68 = arith.constant 0 : index
    %c0_69 = arith.constant 0 : index
    %119 = vector.load %arg4[%c7_67, %c0_68, %c0_69] : memref<9x4x4xf32, #tpu.memory_space<vmem>>, vector<1x4x4xf32>
    %120 = vector.shape_cast %119 : vector<1x4x4xf32> to vector<4x4xf32>
    %cst_70 = arith.constant dense<0.000000e+00> : vector<4x256xf32>
    %121 = tpu.matmul %120, %3, %cst_70 {dimension_numbers = #tpu.dot_dimension_numbers<[1], [0], [0], [1], [0, 0, 1, 1], [], []>} : vector<4x4xf32>, vector<4x256xf32>, vector<4x256xf32> -> vector<4x256xf32>
    %122 = arith.addf %118, %121 : vector<4x256xf32>
    %cst_71 = arith.constant dense<0.000000e+00> : vector<4x256xf32>
    %123 = tpu.matmul %122, %47, %cst_71 {dimension_numbers = #tpu.dot_dimension_numbers<[1], [0], [0], [1], [0, 0, 1, 1], [], []>} : vector<4x256xf32>, vector<256x256xf32>, vector<4x256xf32> -> vector<4x256xf32>
    %124 = arith.addf %115, %123 : vector<4x256xf32>
    %c8 = arith.constant 8 : index
    %c0_72 = arith.constant 0 : index
    %c0_73 = arith.constant 0 : index
    %125 = vector.load %arg3[%c8, %c0_72, %c0_73] : memref<9x4x4xf32, #tpu.memory_space<vmem>>, vector<1x4x4xf32>
    %126 = vector.shape_cast %125 : vector<1x4x4xf32> to vector<4x4xf32>
    %cst_74 = arith.constant dense<0.000000e+00> : vector<4x256xf32>
    %127 = tpu.matmul %126, %11, %cst_74 {dimension_numbers = #tpu.dot_dimension_numbers<[1], [0], [0], [1], [0, 0, 1, 1], [], []>} : vector<4x4xf32>, vector<4x256xf32>, vector<4x256xf32> -> vector<4x256xf32>
    %c8_75 = arith.constant 8 : index
    %c0_76 = arith.constant 0 : index
    %c0_77 = arith.constant 0 : index
    %128 = vector.load %arg4[%c8_75, %c0_76, %c0_77] : memref<9x4x4xf32, #tpu.memory_space<vmem>>, vector<1x4x4xf32>
    %129 = vector.shape_cast %128 : vector<1x4x4xf32> to vector<4x4xf32>
    %cst_78 = arith.constant dense<0.000000e+00> : vector<4x256xf32>
    %130 = tpu.matmul %129, %3, %cst_78 {dimension_numbers = #tpu.dot_dimension_numbers<[1], [0], [0], [1], [0, 0, 1, 1], [], []>} : vector<4x4xf32>, vector<4x256xf32>, vector<4x256xf32> -> vector<4x256xf32>
    %131 = arith.addf %127, %130 : vector<4x256xf32>
    %cst_79 = arith.constant dense<0.000000e+00> : vector<4x256xf32>
    %132 = tpu.matmul %131, %52, %cst_79 {dimension_numbers = #tpu.dot_dimension_numbers<[1], [0], [0], [1], [0, 0, 1, 1], [], []>} : vector<4x256xf32>, vector<256x256xf32>, vector<4x256xf32> -> vector<4x256xf32>
    %133 = arith.addf %124, %132 : vector<4x256xf32>
    %c0_80 = arith.constant 0 : index
    %c0_81 = arith.constant 0 : index
    %c0_82 = arith.constant 0 : index
    %134 = vector.load %arg6[%c0_80, %c0_81, %c0_82] : memref<2x4x1xf32, #tpu.memory_space<vmem>>, vector<1x4x1xf32>
    %135 = vector.shape_cast %134 : vector<1x4x1xf32> to vector<4x1xf32>
    %136 = vector.broadcast %135 : vector<4x1xf32> to vector<4x256xf32>
    %137 = arith.addf %133, %136 : vector<4x256xf32>
    %cst_83 = arith.constant 0.000000e+00 : f32
    %138 = vector.broadcast %cst_83 : f32 to vector<4x256xf32>
    %139 = arith.maximumf %137, %138 : vector<4x256xf32>
    %cst_84 = arith.constant 0.000000e+00 : f32
    %140 = vector.broadcast %cst_84 : f32 to vector<4x256xf32>
    %c0_85 = arith.constant 0 : index
    %c0_86 = arith.constant 0 : index
    %c0_87 = arith.constant 0 : index
    %141 = vector.load %arg5[%c0_85, %c0_86, %c0_87] : memref<9x4x4xf32, #tpu.memory_space<vmem>>, vector<1x4x4xf32>
    %142 = vector.shape_cast %141 : vector<1x4x4xf32> to vector<4x4xf32>
    %cst_88 = arith.constant dense<0.000000e+00> : vector<4x256xf32>
    %143 = tpu.matmul %142, %139, %cst_88 {dimension_numbers = #tpu.dot_dimension_numbers<[1], [0], [0], [1], [0, 0, 1, 1], [], []>} : vector<4x4xf32>, vector<4x256xf32>, vector<4x256xf32> -> vector<4x256xf32>
    %cst_89 = arith.constant dense<0.000000e+00> : vector<4x256xf32>
    %144 = tpu.matmul %143, %17, %cst_89 {dimension_numbers = #tpu.dot_dimension_numbers<[1], [0], [0], [1], [0, 0, 1, 1], [], []>} : vector<4x256xf32>, vector<256x256xf32>, vector<4x256xf32> -> vector<4x256xf32>
    %145 = arith.addf %140, %144 : vector<4x256xf32>
    %c1_90 = arith.constant 1 : index
    %c0_91 = arith.constant 0 : index
    %c0_92 = arith.constant 0 : index
    %146 = vector.load %arg5[%c1_90, %c0_91, %c0_92] : memref<9x4x4xf32, #tpu.memory_space<vmem>>, vector<1x4x4xf32>
    %147 = vector.shape_cast %146 : vector<1x4x4xf32> to vector<4x4xf32>
    %cst_93 = arith.constant dense<0.000000e+00> : vector<4x256xf32>
    %148 = tpu.matmul %147, %139, %cst_93 {dimension_numbers = #tpu.dot_dimension_numbers<[1], [0], [0], [1], [0, 0, 1, 1], [], []>} : vector<4x4xf32>, vector<4x256xf32>, vector<4x256xf32> -> vector<4x256xf32>
    %cst_94 = arith.constant dense<0.000000e+00> : vector<4x256xf32>
    %149 = tpu.matmul %148, %22, %cst_94 {dimension_numbers = #tpu.dot_dimension_numbers<[1], [0], [0], [1], [0, 0, 1, 1], [], []>} : vector<4x256xf32>, vector<256x256xf32>, vector<4x256xf32> -> vector<4x256xf32>
    %150 = arith.addf %145, %149 : vector<4x256xf32>
    %c2_95 = arith.constant 2 : index
    %c0_96 = arith.constant 0 : index
    %c0_97 = arith.constant 0 : index
    %151 = vector.load %arg5[%c2_95, %c0_96, %c0_97] : memref<9x4x4xf32, #tpu.memory_space<vmem>>, vector<1x4x4xf32>
    %152 = vector.shape_cast %151 : vector<1x4x4xf32> to vector<4x4xf32>
    %cst_98 = arith.constant dense<0.000000e+00> : vector<4x256xf32>
    %153 = tpu.matmul %152, %139, %cst_98 {dimension_numbers = #tpu.dot_dimension_numbers<[1], [0], [0], [1], [0, 0, 1, 1], [], []>} : vector<4x4xf32>, vector<4x256xf32>, vector<4x256xf32> -> vector<4x256xf32>
    %cst_99 = arith.constant dense<0.000000e+00> : vector<4x256xf32>
    %154 = tpu.matmul %153, %27, %cst_99 {dimension_numbers = #tpu.dot_dimension_numbers<[1], [0], [0], [1], [0, 0, 1, 1], [], []>} : vector<4x256xf32>, vector<256x256xf32>, vector<4x256xf32> -> vector<4x256xf32>
    %155 = arith.addf %150, %154 : vector<4x256xf32>
    %c3_100 = arith.constant 3 : index
    %c0_101 = arith.constant 0 : index
    %c0_102 = arith.constant 0 : index
    %156 = vector.load %arg5[%c3_100, %c0_101, %c0_102] : memref<9x4x4xf32, #tpu.memory_space<vmem>>, vector<1x4x4xf32>
    %157 = vector.shape_cast %156 : vector<1x4x4xf32> to vector<4x4xf32>
    %cst_103 = arith.constant dense<0.000000e+00> : vector<4x256xf32>
    %158 = tpu.matmul %157, %139, %cst_103 {dimension_numbers = #tpu.dot_dimension_numbers<[1], [0], [0], [1], [0, 0, 1, 1], [], []>} : vector<4x4xf32>, vector<4x256xf32>, vector<4x256xf32> -> vector<4x256xf32>
    %cst_104 = arith.constant dense<0.000000e+00> : vector<4x256xf32>
    %159 = tpu.matmul %158, %32, %cst_104 {dimension_numbers = #tpu.dot_dimension_numbers<[1], [0], [0], [1], [0, 0, 1, 1], [], []>} : vector<4x256xf32>, vector<256x256xf32>, vector<4x256xf32> -> vector<4x256xf32>
    %160 = arith.addf %155, %159 : vector<4x256xf32>
    %c4_105 = arith.constant 4 : index
    %c0_106 = arith.constant 0 : index
    %c0_107 = arith.constant 0 : index
    %161 = vector.load %arg5[%c4_105, %c0_106, %c0_107] : memref<9x4x4xf32, #tpu.memory_space<vmem>>, vector<1x4x4xf32>
    %162 = vector.shape_cast %161 : vector<1x4x4xf32> to vector<4x4xf32>
    %cst_108 = arith.constant dense<0.000000e+00> : vector<4x256xf32>
    %163 = tpu.matmul %162, %139, %cst_108 {dimension_numbers = #tpu.dot_dimension_numbers<[1], [0], [0], [1], [0, 0, 1, 1], [], []>} : vector<4x4xf32>, vector<4x256xf32>, vector<4x256xf32> -> vector<4x256xf32>
    %164 = arith.addf %160, %163 : vector<4x256xf32>
    %c5_109 = arith.constant 5 : index
    %c0_110 = arith.constant 0 : index
    %c0_111 = arith.constant 0 : index
    %165 = vector.load %arg5[%c5_109, %c0_110, %c0_111] : memref<9x4x4xf32, #tpu.memory_space<vmem>>, vector<1x4x4xf32>
    %166 = vector.shape_cast %165 : vector<1x4x4xf32> to vector<4x4xf32>
    %cst_112 = arith.constant dense<0.000000e+00> : vector<4x256xf32>
    %167 = tpu.matmul %166, %139, %cst_112 {dimension_numbers = #tpu.dot_dimension_numbers<[1], [0], [0], [1], [0, 0, 1, 1], [], []>} : vector<4x4xf32>, vector<4x256xf32>, vector<4x256xf32> -> vector<4x256xf32>
    %cst_113 = arith.constant dense<0.000000e+00> : vector<4x256xf32>
    %168 = tpu.matmul %167, %37, %cst_113 {dimension_numbers = #tpu.dot_dimension_numbers<[1], [0], [0], [1], [0, 0, 1, 1], [], []>} : vector<4x256xf32>, vector<256x256xf32>, vector<4x256xf32> -> vector<4x256xf32>
    %169 = arith.addf %164, %168 : vector<4x256xf32>
    %c6_114 = arith.constant 6 : index
    %c0_115 = arith.constant 0 : index
    %c0_116 = arith.constant 0 : index
    %170 = vector.load %arg5[%c6_114, %c0_115, %c0_116] : memref<9x4x4xf32, #tpu.memory_space<vmem>>, vector<1x4x4xf32>
    %171 = vector.shape_cast %170 : vector<1x4x4xf32> to vector<4x4xf32>
    %cst_117 = arith.constant dense<0.000000e+00> : vector<4x256xf32>
    %172 = tpu.matmul %171, %139, %cst_117 {dimension_numbers = #tpu.dot_dimension_numbers<[1], [0], [0], [1], [0, 0, 1, 1], [], []>} : vector<4x4xf32>, vector<4x256xf32>, vector<4x256xf32> -> vector<4x256xf32>
    %cst_118 = arith.constant dense<0.000000e+00> : vector<4x256xf32>
    %173 = tpu.matmul %172, %42, %cst_118 {dimension_numbers = #tpu.dot_dimension_numbers<[1], [0], [0], [1], [0, 0, 1, 1], [], []>} : vector<4x256xf32>, vector<256x256xf32>, vector<4x256xf32> -> vector<4x256xf32>
    %174 = arith.addf %169, %173 : vector<4x256xf32>
    %c7_119 = arith.constant 7 : index
    %c0_120 = arith.constant 0 : index
    %c0_121 = arith.constant 0 : index
    %175 = vector.load %arg5[%c7_119, %c0_120, %c0_121] : memref<9x4x4xf32, #tpu.memory_space<vmem>>, vector<1x4x4xf32>
    %176 = vector.shape_cast %175 : vector<1x4x4xf32> to vector<4x4xf32>
    %cst_122 = arith.constant dense<0.000000e+00> : vector<4x256xf32>
    %177 = tpu.matmul %176, %139, %cst_122 {dimension_numbers = #tpu.dot_dimension_numbers<[1], [0], [0], [1], [0, 0, 1, 1], [], []>} : vector<4x4xf32>, vector<4x256xf32>, vector<4x256xf32> -> vector<4x256xf32>
    %cst_123 = arith.constant dense<0.000000e+00> : vector<4x256xf32>
    %178 = tpu.matmul %177, %47, %cst_123 {dimension_numbers = #tpu.dot_dimension_numbers<[1], [0], [0], [1], [0, 0, 1, 1], [], []>} : vector<4x256xf32>, vector<256x256xf32>, vector<4x256xf32> -> vector<4x256xf32>
    %179 = arith.addf %174, %178 : vector<4x256xf32>
    %c8_124 = arith.constant 8 : index
    %c0_125 = arith.constant 0 : index
    %c0_126 = arith.constant 0 : index
    %180 = vector.load %arg5[%c8_124, %c0_125, %c0_126] : memref<9x4x4xf32, #tpu.memory_space<vmem>>, vector<1x4x4xf32>
    %181 = vector.shape_cast %180 : vector<1x4x4xf32> to vector<4x4xf32>
    %cst_127 = arith.constant dense<0.000000e+00> : vector<4x256xf32>
    %182 = tpu.matmul %181, %139, %cst_127 {dimension_numbers = #tpu.dot_dimension_numbers<[1], [0], [0], [1], [0, 0, 1, 1], [], []>} : vector<4x4xf32>, vector<4x256xf32>, vector<4x256xf32> -> vector<4x256xf32>
    %cst_128 = arith.constant dense<0.000000e+00> : vector<4x256xf32>
    %183 = tpu.matmul %182, %52, %cst_128 {dimension_numbers = #tpu.dot_dimension_numbers<[1], [0], [0], [1], [0, 0, 1, 1], [], []>} : vector<4x256xf32>, vector<256x256xf32>, vector<4x256xf32> -> vector<4x256xf32>
    %184 = arith.addf %179, %183 : vector<4x256xf32>
    %c1_129 = arith.constant 1 : index
    %c0_130 = arith.constant 0 : index
    %c0_131 = arith.constant 0 : index
    %185 = vector.load %arg6[%c1_129, %c0_130, %c0_131] : memref<2x4x1xf32, #tpu.memory_space<vmem>>, vector<1x4x1xf32>
    %186 = vector.shape_cast %185 : vector<1x4x1xf32> to vector<4x1xf32>
    %187 = vector.broadcast %186 : vector<4x1xf32> to vector<4x256xf32>
    %188 = arith.addf %184, %187 : vector<4x256xf32>
    %cst_132 = arith.constant 0.000000e+00 : f32
    %189 = vector.broadcast %cst_132 : f32 to vector<4x256xf32>
    %190 = arith.maximumf %188, %189 : vector<4x256xf32>
    %c0_133 = arith.constant 0 : index
    %c0_134 = arith.constant 0 : index
    %c0_135 = arith.constant 0 : index
    %191 = vector.load %arg8[%c0_133, %c0_134, %c0_135] : memref<1x4x256xf32, #tpu.memory_space<vmem>>, vector<1x4x256xf32>
    %192 = vector.shape_cast %191 : vector<1x4x256xf32> to vector<4x256xf32>
    %193 = vector.shape_cast %190 : vector<4x256xf32> to vector<1x4x256xf32>
    tpu.vector_store %arg8[%c0_133, %c0_134, %c0_135], %193 {strides = array<i32>} : memref<1x4x256xf32, #tpu.memory_space<vmem>>, vector<1x4x256xf32>,
    return
  }
  func.func @transform_0(%arg0: i32) -> (i32, i32, i32) {
    %c0_i32 = arith.constant 0 : i32
    %c0_i32_0 = arith.constant 0 : i32
    %c0_i32_1 = arith.constant 0 : i32
    return %arg0, %c0_i32, %c0_i32_0 : i32, i32, i32
  }
  func.func @transform_1(%arg0: i32) -> (i32, i32, i32) {
    %c0_i32 = arith.constant 0 : i32
    %c0_i32_0 = arith.constant 0 : i32
    %c0_i32_1 = arith.constant 0 : i32
    return %arg0, %c0_i32, %c0_i32_0 : i32, i32, i32
  }
  func.func @transform_2(%arg0: i32) -> (i32, i32, i32) {
    %c0_i32 = arith.constant 0 : i32
    %c0_i32_0 = arith.constant 0 : i32
    %c0_i32_1 = arith.constant 0 : i32
    %c0_i32_2 = arith.constant 0 : i32
    return %c0_i32, %c0_i32_0, %c0_i32_1 : i32, i32, i32
  }
  func.func @transform_3(%arg0: i32) -> (i32, i32, i32) {
    %c0_i32 = arith.constant 0 : i32
    %c0_i32_0 = arith.constant 0 : i32
    %c0_i32_1 = arith.constant 0 : i32
    %c0_i32_2 = arith.constant 0 : i32
    return %c0_i32, %c0_i32_0, %c0_i32_1 : i32, i32, i32
  }
  func.func @transform_4(%arg0: i32) -> (i32, i32, i32) {
    %c0_i32 = arith.constant 0 : i32
    %c0_i32_0 = arith.constant 0 : i32
    %c0_i32_1 = arith.constant 0 : i32
    %c0_i32_2 = arith.constant 0 : i32
    return %c0_i32, %c0_i32_0, %c0_i32_1 : i32, i32, i32
  }
  func.func @transform_5(%arg0: i32) -> (i32, i32, i32) {
    %c0_i32 = arith.constant 0 : i32
    %c0_i32_0 = arith.constant 0 : i32
    %c0_i32_1 = arith.constant 0 : i32
    %c0_i32_2 = arith.constant 0 : i32
    return %c0_i32, %c0_i32_0, %c0_i32_1 : i32, i32, i32
  }
  func.func @transform_6(%arg0: i32) -> (i32, i32) {
    %c0_i32 = arith.constant 0 : i32
    %c0_i32_0 = arith.constant 0 : i32
    %c0_i32_1 = arith.constant 0 : i32
    return %c0_i32, %c0_i32_0 : i32, i32
  }
  func.func @transform_7(%arg0: i32) -> (i32, i32, i32) {
    %c0_i32 = arith.constant 0 : i32
    %c0_i32_0 = arith.constant 0 : i32
    %c0_i32_1 = arith.constant 0 : i32
    return %arg0, %c0_i32, %c0_i32_0 : i32, i32, i32
  }
}

</mosaic_0001>

<bundles_post_ra>
// kernel: upsampling_forward.1
= control target key start
LH: loop header
LB: loop body
LE: loop exit
PB: predicated region body
PF: predicated region fallthrough
CT: control target
= control target key end

     0   :  { %s7148_s24 = smov 0   ;;  %s12806_s0 = inlined_call_operand.vmem [shape: f32[2,4,64], index: 0, kind: input, shape index: {}]   ;;  %s12807_s1 = inlined_call_operand.vmem [shape: f32[2,4,256], index: 1, kind: input, shape index: {}]   ;;  %s12808_s2 = inlined_call_operand.vmem [shape: f32[9,4,4], index: 2, kind: input, shape index: {}]   ;;  %s12809_s3 = inlined_call_operand.vmem [shape: f32[9,4,4], index: 3, kind: input, shape index: {}]   ;;  %s12810_s4 = inlined_call_operand.vmem [shape: f32[9,4,4], index: 4, kind: input, shape index: {}]   ;;  %s12811_s5 = inlined_call_operand.vmem [shape: f32[2,4,1], index: 5, kind: input, shape index: {}]   ;;  %s12812_s6 = inlined_call_operand.vmem [shape: s32[10,256], index: 6, kind: input, shape index: {}]   ;;  %s12813_s7 = inlined_call_operand.vmem [shape: f32[2,4,256], index: 7, kind: output, shape index: {}]  }
   0x1 LB: > { %s5392_s25 = sadd.s32 4294967295, %s7103_s24   ;;  %p5396_p0 = scmp.ge.s32.totalorder %s7103_s24, 1  ;;  %s7103_s24 = sphi %s7148_s24, %s17_s24  }
   0x2   : > { %p246_p1 = scmp.lt.s32.totalorder %s7103_s24, 3 }
   0x4   : > { %p247_p2 = pnand %p5396_p0, %p246_p1 }
   0x6   : > { %250 = sbr.rel (%p247_p2) target bundleno = 2278 (0x8e6), region = 48 }
   0xb   : > { %v302_v0 = vlaneseq  ;;  %p282_p3 = scmp.lt.s32.totalorder %s5392_s25, 1  ;;  %v13184_v2 = vmov 0.0   ;;  %v7163_v3 = vld [vmem:[%s12812_s6 + $0x8] sm:$0xff]  ;;  %v7176_v6 = vld [vmem:[%s12812_s6] sm:$0xff]  ;;  %v13192_v9 = vmov 1.0   ;;  %vm2074_vm7 = vcmask 1043456  }
   0xc   : > { %435 = vmatprep.mubr.f32.mxu0 %v13184_v2  ;;  %2143 = vmatprep.mubr.f32.mxu1 %v13184_v2  ;;  %v2067_v18 = vld [vmem:[%s12809_s3] sm:$0xf]  ;;  %vm2070_vm10 = vcmask 31744   ;;  %v5954_v50 = vld [vmem:[%s12809_s3 + $0x4] sm:$0xf] }
   0xd   : > { %v7156_v1 = vshrl.u32 %v302_v0, 7  ;;  %s13849_s25 = smov (!%p282_p3, %s5392_s25), 1  ;;  %v2066_v48 = vld [vmem:[%s12808_s2] sm:$0xf]  ;;  %v5953_v52 = vld [vmem:[%s12808_s2 + $0x4] sm:$0xf] }
   0xe   : > { %s7079_s30 = sshll.u32 %s13849_s25, 3  ;;  %s5397_s13 = sshll.u32 %s13849_s25, 2 }
   0xf   : > { %v7166_v4 = vadd.s32 56, %v7156_v1  ;;  %v7169_v5 = vsub.s32 0, %v7156_v1  ;;  %s7190_s10 = scalar_lea.vmem %s12807_s1, %s7079_s30  ;;  %v7194_v10 = vadd.s32 48, %v7156_v1  ;;  %v7197_v11 = vadd.s32 40, %v7156_v1  ;;  %s285_s16 = scalar_lea.vmem %s12806_s0, %s5397_s13 }
  0x10   : > { %v7201_v12 = vadd.s32 32, %v7156_v1  ;;  %v7207_v13 = vadd.s32 24, %v7156_v1  ;;  %v7210_v14 = vld [vmem:[%s7190_s10] sm:$0xff]  ;;  %v7217_v15 = vadd.s32 16, %v7156_v1  ;;  %v7228_v17 = vadd.s32 8, %v7156_v1  ;;  %s295_s23 = scalar_lea.vmem %s12813_s7, %s7079_s30 }
  0x11   : > { %v318_v7 = vrot.slane %v7163_v3, %v7169_v5  ;;  %v314_v8 = vrot.slane %v7176_v6, %v7169_v5  ;;  %v7223_v16 = vcombine.high %v7210_v14, %v7210_v14  ;;  %v296_v19 = vld [vmem:[%s285_s16] sm:$0xf]  ;;  %v7261_v20 = vsub.s32 1, %v7156_v1 }
  0x12   : > { %v7272_v23 = vadd.s32 120, %v7156_v1  ;;  %v7275_v24 = vadd.s32 112, %v7156_v1  ;;  %v7278_v25 = vadd.s32 104, %v7156_v1  ;;  %v7287_v26 = vadd.s32 96, %v7156_v1 }
  0x13   : > { %vm334_vm0 = vcmp.eq.s32.totalorder %v7166_v4, %v318_v7  ;;  %vm333_vm1 = vcmp.eq.s32.totalorder %v7166_v4, %v314_v8  ;;  %vm332_vm2 = vcmp.eq.s32.totalorder %v7194_v10, %v318_v7  ;;  %vm331_vm3 = vcmp.eq.s32.totalorder %v7194_v10, %v314_v8  ;;  %5947 = vmatprep.subr.msk.mxu1 %vm2074_vm7, %v7223_v16 }
  0x14   : > { %5418 = vmatprep.subr.msk.mxu0 %vm334_vm0, %v13192_v9  ;;  %vm330_vm4 = vcmp.eq.s32.totalorder %v7197_v11, %v318_v7  ;;  %vm329_vm5 = vcmp.eq.s32.totalorder %v7197_v11, %v314_v8  ;;  %vm328_vm6 = vcmp.eq.s32.totalorder %v7201_v12, %v318_v7  ;;  %vm327_vm8 = vcmp.eq.s32.totalorder %v7201_v12, %v314_v8 }
  0x15   : > { %5419 = vmatpush1.msk.msra.mxu0 %vm333_vm1, %v13192_v9  ;;  %vm326_vm9 = vcmp.eq.s32.totalorder %v7207_v13, %v318_v7  ;;  %vm325_vm11 = vcmp.eq.s32.totalorder %v7207_v13, %v314_v8  ;;  %vm324_vm12 = vcmp.eq.s32.totalorder %v7217_v15, %v318_v7  ;;  %5948 = vmatpush1.msk.msra.mxu1 %vm2074_vm7, %v7210_v14  ;;  %v7302_v27 = vadd.s32 88, %v7156_v1 }
  0x16   : > { %5420 = vmatprep.subr.msk.mxu0 %vm332_vm2, %v13192_v9  ;;  %vm323_vm13 = vcmp.eq.s32.totalorder %v7217_v15, %v314_v8  ;;  %5949 = vmatmul.mubr.msk.f32.vlgmr.msra.gmra.mxu1 %vm2070_vm10, %v2067_v18  ;;  %vm322_vm14 = vcmp.eq.s32.totalorder %v7228_v17, %v318_v7  ;;  %vm321_vm15 = vcmp.eq.s32.totalorder %v7228_v17, %v314_v8  ;;  %vm367_vm2 = vcmask 523264  }
  0x17   : > { %5421 = vmatpush1.msk.msra.mxu0 %vm331_vm3, %v13192_v9  ;;  %2223 = vmatprep.mubr.f32.mxu1 %v13184_v2  ;;  %vm320_vm0 = vcmp.eq.s32.totalorder %v7156_v1, %v318_v7  ;;  %vm319_vm1 = vcmp.eq.s32.totalorder %v7156_v1, %v314_v8  ;;  %v7265_v21 = vrot.slane %v7163_v3, %v7261_v20  ;;  %v7317_v28 = vadd.s32 80, %v7156_v1  ;;  %v6162_v7 = vld [vmem:[%s12809_s3 + $0xc] sm:$0xf] }
  0x18   : > { %5422 = vmatprep.subr.msk.mxu0 %vm330_vm4, %v13192_v9  ;;  %v7269_v22 = vrot.slane %v7176_v6, %v7261_v20  ;;  %v7332_v29 = vadd.s32 72, %v7156_v1  ;;  %v7347_v30 = vadd.s32 64, %v7156_v1  ;;  %v7458_v31 = vadd.s32 248, %v7156_v1 }
  0x19   : > { %5423 = vmatpush1.msk.msra.mxu0 %vm329_vm5, %v13192_v9  ;;  %vm505_vm3 = vcmp.eq.s32.totalorder %v7272_v23, %v7265_v21  ;;  %vm503_vm5 = vcmp.eq.s32.totalorder %v7275_v24, %v7265_v21  ;;  %v7473_v32 = vadd.s32 240, %v7156_v1  ;;  %v7488_v33 = vadd.s32 232, %v7156_v1 }
  0x1a   : > { %5424 = vmatprep.subr.msk.mxu0 %vm328_vm6, %v13192_v9  ;;  %vm504_vm4 = vcmp.eq.s32.totalorder %v7272_v23, %v7269_v22  ;;  %vm502_vm6 = vcmp.eq.s32.totalorder %v7275_v24, %v7269_v22  ;;  %v7503_v34 = vadd.s32 224, %v7156_v1  ;;  %v7518_v35 = vadd.s32 216, %v7156_v1 }
  0x1b   : > { %5425 = vmatpush1.msk.msra.mxu0 %vm327_vm8, %v13192_v9  ;;  %vm501_vm8 = vcmp.eq.s32.totalorder %v7278_v25, %v7265_v21  ;;  %v7533_v36 = vadd.s32 208, %v7156_v1  ;;  %v7548_v37 = vadd.s32 200, %v7156_v1  ;;  %v7563_v38 = vadd.s32 192, %v7156_v1 }
  0x1c   : > { %5426 = vmatprep.subr.msk.mxu0 %vm326_vm9, %v13192_v9  ;;  %vm12946_vm9 = vcmp.eq.s32.totalorder %v7278_v25, %v7269_v22  ;;  %v7578_v39 = vadd.s32 184, %v7156_v1  ;;  %v7593_v40 = vadd.s32 176, %v7156_v1  ;;  %v7608_v41 = vadd.s32 168, %v7156_v1 }
  0x1d   : > { %5427 = vmatpush1.msk.msra.mxu0 %vm325_vm11, %v13192_v9  ;;  %vm12943_vm11 = vcmp.eq.s32.totalorder %v7287_v26, %v7265_v21  ;;  %v7623_v42 = vadd.s32 160, %v7156_v1  ;;  %v7638_v43 = vadd.s32 152, %v7156_v1  ;;  %v7653_v44 = vadd.s32 144, %v7156_v1 }
  0x1e   : > { %5428 = vmatprep.subr.msk.mxu0 %vm324_vm12, %v13192_v9  ;;  %vm12940_vm12 = vcmp.eq.s32.totalorder %v7287_v26, %v7269_v22  ;;  %v668_v45 = vsub.s32 2, %v7156_v1  ;;  %v8035_v53 = vadd.s32 136, %v7156_v1  ;;  %v8054_v54 = vadd.s32 128, %v7156_v1 }
  0x1f   : > { %5429 = vmatpush1.msk.msra.mxu0 %vm323_vm13, %v13192_v9  ;;  %vm12814_vm13 = vcmp.eq.s32.totalorder %v7302_v27, %v7265_v21  ;;  %v1068_v58 = vsub.s32 4, %v7156_v1 }
  0x20   : > { %5430 = vmatprep.subr.msk.mxu0 %vm322_vm14, %v13192_v9  ;;  %vm12815_vm14 = vcmp.eq.s32.totalorder %v7302_v27, %v7269_v22  ;;  %v7702_v49 = vrot.slane %v7163_v3, %v668_v45  ;;  %v7716_v51 = vrot.slane %v7176_v6, %v668_v45 }
  0x21   : > { %5431 = vmatpush1.msk.msra.mxu0 %vm321_vm15, %v13192_v9  ;;  %vm12816_vm15 = vcmp.eq.s32.totalorder %v7317_v28, %v7265_v21  ;;  %v8154_v63 = vrot.slane %v7163_v3, %v1068_v58  ;;  %v8163_v8 = vrot.slane %v7176_v6, %v1068_v58 }
  0x22   : > { %5432 = vmatprep.subr.msk.mxu0 %vm320_vm0, %v13192_v9  ;;  %vm12817_vm0 = vcmp.eq.s32.totalorder %v7317_v28, %v7269_v22  ;;  %13332 = vst [vmem:[#allocation2_spill] sm:$0xff] %v7716_v51 }
  0x23   : > { %5433 = vmatpush1.msk.msra.mxu0 %vm319_vm1, %v13192_v9  ;;  %vm12818_vm1 = vcmp.eq.s32.totalorder %v7332_v29, %v7265_v21  ;;  %13333 = vst [vmem:[#allocation3_spill] sm:$0xff] %v8154_v63  ;;  %13334 = vst [vmem:[#allocation4_spill] sm:$0xff] %v8163_v8 }
  0x24   : > { %5434 = vmatmul.mubr.msk.f32.vlgmr.msra.gmra.mxu0 %vm367_vm2, %v296_v19  ;;  %6025 = vmatprep.subr.msk.mxu0 %vm505_vm3, %v13192_v9  ;;  %vm12819_vm2 = vcmp.eq.s32.totalorder %v7332_v29, %v7269_v22  ;;  %v868_v19 = vsub.s32 3, %v7156_v1 }
  0x25   : > { %6026 = vmatpush1.msk.msra.mxu0 %vm504_vm4, %v13192_v9 }
  0x26   : > { %6027 = vmatprep.subr.msk.mxu0 %vm503_vm5, %v13192_v9 }
  0x27   : > { %6028 = vmatpush1.msk.msra.mxu0 %vm502_vm6, %v13192_v9 }
  0x28   : > { %6029 = vmatprep.subr.msk.mxu0 %vm501_vm8, %v13192_v9 }
  0x29   : > { %6030 = vmatpush1.msk.msra.mxu0 %vm12946_vm9, %v13192_v9  ;;  %vm12955_vm9 = vcmp.eq.s32.totalorder %v7332_v29, %v8163_v8 }
  0x2a   : > { %6031 = vmatprep.subr.msk.mxu0 %vm12943_vm11, %v13192_v9 }
  0x2b   : > { %6032 = vmatpush1.msk.msra.mxu0 %vm12940_vm12, %v13192_v9  ;;  %vm12949_vm12 = vcmp.eq.s32.totalorder %v7317_v28, %v8154_v63 }
  0x2c   : > { %6033 = vmatprep.subr.msk.mxu0 %vm12814_vm13, %v13192_v9  ;;  %vm12820_vm13 = vcmp.eq.s32.totalorder %v7347_v30, %v7265_v21 }
  0x2d   : > { %6034 = vmatpush1.msk.msra.mxu0 %vm12815_vm14, %v13192_v9  ;;  %vm12821_vm14 = vcmp.eq.s32.totalorder %v7347_v30, %v7269_v22 }
  0x2e   : > { %6035 = vmatprep.subr.msk.mxu0 %vm12816_vm15, %v13192_v9  ;;  %vm12822_vm15 = vcmp.eq.s32.totalorder %v7166_v4, %v7265_v21 }
  0x2f   : > { %6036 = vmatpush1.msk.msra.mxu0 %vm12817_vm0, %v13192_v9  ;;  %vm12823_vm0 = vcmp.eq.s32.totalorder %v7166_v4, %v7269_v22 }
  0x30   : > { %6037 = vmatprep.subr.msk.mxu0 %vm12818_vm1, %v13192_v9  ;;  %vm12824_vm1 = vcmp.eq.s32.totalorder %v7194_v10, %v7265_v21 }
  0x31   : > { %6038 = vmatpush1.msk.msra.mxu0 %vm12819_vm2, %v13192_v9  ;;  %vm12825_vm2 = vcmp.eq.s32.totalorder %v7194_v10, %v7269_v22 }
  0x32   : > { %6039 = vmatprep.subr.msk.mxu0 %vm12820_vm13, %v13192_v9  ;;  %vm12826_vm13 = vcmp.eq.s32.totalorder %v7197_v11, %v7265_v21 }
  0x33   : > { %6040 = vmatpush1.msk.msra.mxu0 %vm12821_vm14, %v13192_v9  ;;  %vm12827_vm14 = vcmp.eq.s32.totalorder %v7197_v11, %v7269_v22 }
  0x34   : > { %6041 = vmatprep.subr.msk.mxu0 %vm12822_vm15, %v13192_v9  ;;  %vm12828_vm15 = vcmp.eq.s32.totalorder %v7201_v12, %v7265_v21 }
  0x35   : > { %6042 = vmatpush1.msk.msra.mxu0 %vm12823_vm0, %v13192_v9  ;;  %vm12857_vm0 = vcmp.eq.s32.totalorder %v7201_v12, %v7269_v22 }
  0x36   : > { %6043 = vmatprep.subr.msk.mxu0 %vm12824_vm1, %v13192_v9  ;;  %vm12829_vm1 = vcmp.eq.s32.totalorder %v7207_v13, %v7265_v21 }
  0x37   : > { %6044 = vmatpush1.msk.msra.mxu0 %vm12825_vm2, %v13192_v9  ;;  %vm12830_vm2 = vcmp.eq.s32.totalorder %v7207_v13, %v7269_v22 }
  0x38   : > { %6045 = vmatprep.subr.msk.mxu0 %vm12826_vm13, %v13192_v9  ;;  %vm12831_vm13 = vcmp.eq.s32.totalorder %v7217_v15, %v7265_v21 }
  0x39   : > { %6046 = vmatpush1.msk.msra.mxu0 %vm12827_vm14, %v13192_v9  ;;  %vm12832_vm14 = vcmp.eq.s32.totalorder %v7217_v15, %v7269_v22 }
  0x3a   : > { %6047 = vmatprep.subr.msk.mxu0 %vm12828_vm15, %v13192_v9  ;;  %vm12833_vm15 = vcmp.eq.s32.totalorder %v7228_v17, %v7265_v21 }
  0x3b   : > { %6048 = vmatpush1.msk.msra.mxu0 %vm12857_vm0, %v13192_v9  ;;  %vm12860_vm0 = vcmp.eq.s32.totalorder %v7638_v43, %v7269_v22 }
  0x3c   : > { %6049 = vmatprep.subr.msk.mxu0 %vm12829_vm1, %v13192_v9  ;;  %vm12834_vm1 = vcmp.eq.s32.totalorder %v7228_v17, %v7269_v22 }
  0x3d   : > { %6050 = vmatpush1.msk.msra.mxu0 %vm12830_vm2, %v13192_v9  ;;  %vm12835_vm2 = vcmp.eq.s32.totalorder %v7156_v1, %v7265_v21 }
  0x3e   : > { %6051 = vmatprep.subr.msk.mxu0 %vm12831_vm13, %v13192_v9  ;;  %vm12836_vm13 = vcmp.eq.s32.totalorder %v7156_v1, %v7269_v22 }
  0x3f   : > { %6052 = vmatpush1.msk.msra.mxu0 %vm12832_vm14, %v13192_v9  ;;  %vm12837_vm14 = vcmp.eq.s32.totalorder %v7458_v31, %v7265_v21 }
  0x40   : > { %6053 = vmatprep.subr.msk.mxu0 %vm12833_vm15, %v13192_v9  ;;  %vm12838_vm15 = vcmp.eq.s32.totalorder %v7458_v31, %v7269_v22 }
  0x41   : > { %6054 = vmatpush1.msk.msra.mxu0 %vm12834_vm1, %v13192_v9  ;;  %vm12839_vm1 = vcmp.eq.s32.totalorder %v7473_v32, %v7265_v21 }
  0x42   : > { %6055 = vmatprep.subr.msk.mxu0 %vm12835_vm2, %v13192_v9  ;;  %vm12840_vm2 = vcmp.eq.s32.totalorder %v7473_v32, %v7269_v22 }
  0x43   : > { %6056 = vmatpush1.msk.msra.mxu0 %vm12836_vm13, %v13192_v9  ;;  %vm12841_vm13 = vcmp.eq.s32.totalorder %v7488_v33, %v7265_v21 }
  0x44   : > { %6057 = vmatprep.subr.msk.mxu0 %vm12837_vm14, %v13192_v9  ;;  %vm12842_vm14 = vcmp.eq.s32.totalorder %v7488_v33, %v7269_v22 }
  0x45   : > { %6058 = vmatpush2.msk.msra.mxu0 %vm12838_vm15, %v13192_v9  ;;  %vm12843_vm15 = vcmp.eq.s32.totalorder %v7503_v34, %v7265_v21 }
  0x46   : > { %6059 = vmatprep.subr.msk.mxu0 %vm12839_vm1, %v13192_v9  ;;  %vm12844_vm1 = vcmp.eq.s32.totalorder %v7503_v34, %v7269_v22 }
  0x47   : > { %6060 = vmatpush2.msk.msra.mxu0 %vm12840_vm2, %v13192_v9  ;;  %vm12845_vm2 = vcmp.eq.s32.totalorder %v7518_v35, %v7265_v21 }
  0x48   : > { %6061 = vmatprep.subr.msk.mxu0 %vm12841_vm13, %v13192_v9  ;;  %vm12846_vm13 = vcmp.eq.s32.totalorder %v7518_v35, %v7269_v22 }
  0x49   : > { %6062 = vmatpush2.msk.msra.mxu0 %vm12842_vm14, %v13192_v9  ;;  %vm12847_vm14 = vcmp.eq.s32.totalorder %v7533_v36, %v7265_v21 }
  0x4a   : > { %6063 = vmatprep.subr.msk.mxu0 %vm12843_vm15, %v13192_v9  ;;  %vm12848_vm15 = vcmp.eq.s32.totalorder %v7533_v36, %v7269_v22 }
  0x4b   : > { %6064 = vmatpush2.msk.msra.mxu0 %vm12844_vm1, %v13192_v9  ;;  %vm12849_vm1 = vcmp.eq.s32.totalorder %v7548_v37, %v7265_v21 }
  0x4c   : > { %6065 = vmatprep.subr.msk.mxu0 %vm12845_vm2, %v13192_v9  ;;  %vm12850_vm2 = vcmp.eq.s32.totalorder %v7548_v37, %v7269_v22 }
  0x4d   : > { %6066 = vmatpush2.msk.msra.mxu0 %vm12846_vm13, %v13192_v9  ;;  %vm12851_vm13 = vcmp.eq.s32.totalorder %v7563_v38, %v7265_v21 }
  0x4e   : > { %6067 = vmatprep.subr.msk.mxu0 %vm12847_vm14, %v13192_v9  ;;  %vm12852_vm14 = vcmp.eq.s32.totalorder %v7563_v38, %v7269_v22 }
  0x4f   : > { %6068 = vmatpush2.msk.msra.mxu0 %vm12848_vm15, %v13192_v9  ;;  %vm12853_vm15 = vcmp.eq.s32.totalorder %v7578_v39, %v7265_v21 }
  0x50   : > { %6069 = vmatprep.subr.msk.mxu0 %vm12849_vm1, %v13192_v9  ;;  %vm12854_vm1 = vcmp.eq.s32.totalorder %v7578_v39, %v7269_v22 }
  0x51   : > { %6070 = vmatpush2.msk.msra.mxu0 %vm12850_vm2, %v13192_v9  ;;  %vm12855_vm2 = vcmp.eq.s32.totalorder %v7593_v40, %v7265_v21 }
  0x52   : > { %6071 = vmatprep.subr.msk.mxu0 %vm12851_vm13, %v13192_v9  ;;  %vm12856_vm13 = vcmp.eq.s32.totalorder %v7593_v40, %v7269_v22 }
  0x53   : > { %6072 = vmatpush2.msk.msra.mxu0 %vm12852_vm14, %v13192_v9  ;;  %vm12858_vm14 = vcmp.eq.s32.totalorder %v7608_v41, %v7265_v21 }
  0x54   : > { %6073 = vmatprep.subr.msk.mxu0 %vm12853_vm15, %v13192_v9  ;;  %vm12865_vm15 = vcmp.eq.s32.totalorder %v7608_v41, %v7269_v22 }
  0x55   : > { %6074 = vmatpush2.msk.msra.mxu0 %vm12854_vm1, %v13192_v9  ;;  %vm12863_vm1 = vcmp.eq.s32.totalorder %v7623_v42, %v7265_v21 }
  0x56   : > { %6075 = vmatprep.subr.msk.mxu0 %vm12855_vm2, %v13192_v9  ;;  %vm12862_vm2 = vcmp.eq.s32.totalorder %v7623_v42, %v7269_v22 }
  0x57   : > { %6076 = vmatpush2.msk.msra.mxu0 %vm12856_vm13, %v13192_v9  ;;  %vm12861_vm13 = vcmp.eq.s32.totalorder %v7638_v43, %v7265_v21 }
  0x58   : > { %6077 = vmatprep.subr.msk.mxu0 %vm12858_vm14, %v13192_v9  ;;  %vm12859_vm14 = vcmp.eq.s32.totalorder %v7653_v44, %v7265_v21 }
  0x59   : > { %6078 = vmatpush2.msk.msra.mxu0 %vm12865_vm15, %v13192_v9  ;;  %vm12871_vm15 = vcmp.eq.s32.totalorder %v7287_v26, %v7702_v49 }
  0x5a   : > { %6079 = vmatprep.subr.msk.mxu0 %vm12863_vm1, %v13192_v9  ;;  %vm12869_vm1 = vcmp.eq.s32.totalorder %v7278_v25, %v7702_v49 }
  0x5b   : > { %6080 = vmatpush2.msk.msra.mxu0 %vm12862_vm2, %v13192_v9  ;;  %vm12868_vm2 = vcmp.eq.s32.totalorder %v7275_v24, %v7716_v51 }
  0x5c   : > { %6081 = vmatprep.subr.msk.mxu0 %vm12861_vm13, %v13192_v9  ;;  %vm12867_vm13 = vcmp.eq.s32.totalorder %v7275_v24, %v7702_v49 }
  0x5d   : > { %6082 = vmatpush2.msk.msra.mxu0 %vm12860_vm0, %v13192_v9  ;;  %vm12866_vm0 = vcmp.eq.s32.totalorder %v7272_v23, %v7716_v51 }
  0x5e   : > { %6083 = vmatprep.subr.msk.mxu0 %vm12859_vm14, %v13192_v9  ;;  %vm12864_vm14 = vcmp.eq.s32.totalorder %v7272_v23, %v7702_v49 }
  0xd6   : > { %v2145_v55 = vpop.f32.mrf.mxu1 }
  0xd8   : > { %v2147_v56 = vpop.f32.mrf.mxu1 }
  0xe4   : > { %v7692_v46 = vpop.f32.mrf.mxu0 }
  0xe6   : > { %v7694_v47 = vpop.f32.mrf.mxu0 }
  0xe7   : > { %5950 = vmatprep.subr.msk.mxu1 %vm2074_vm7, %v7694_v47 }
  0xe8   : > { %5951 = vmatpush1.msk.msra.mxu1 %vm2074_vm7, %v7692_v46 }
  0xe9   : > { %5952 = vmatmul.mubr.msk.f32.vlgmr.msra.gmra.mxu1 %vm2070_vm10, %v2066_v48  ;;  %5955 = vmatprep.subr.msk.mxu1 %vm2074_vm7, %v7223_v16 }
  0xea   : > { %5956 = vmatpush1.msk.msra.mxu1 %vm2074_vm7, %v7210_v14  ;;  %2301 = vmatprep.mubr.f32.mxu1 %v13184_v2 }
  0xeb   : > { %5958 = vmatprep.subr.msk.mxu1 %vm2074_vm7, %v7694_v47 }
  0xed   : > { %5957 = vmatmul.mubr.msk.f32.vlgmr.msra.gmra.mxu1 %vm2070_vm10, %v5954_v50  ;;  %v6161_v50 = vld [vmem:[%s12808_s2 + $0xc] sm:$0xf] }
  0xee   : > { %5959 = vmatpush1.msk.msra.mxu1 %vm2074_vm7, %v7692_v46  ;;  %2375 = vmatprep.mubr.f32.mxu1 %v13184_v2 }
  0xef   : > { %5961 = vmatprep.subr.msk.mxu1 %vm12864_vm14, %v13192_v9  ;;  %vm12870_vm14 = vcmp.eq.s32.totalorder %v7278_v25, %v7716_v51 }
  0xf1   : > { %5960 = vmatmul.mubr.msk.f32.vlgmr.msra.gmra.mxu1 %vm2070_vm10, %v5953_v52 }
  0xf2   : > { %5962 = vmatpush1.msk.msra.mxu1 %vm12866_vm0, %v13192_v9  ;;  %vm12872_vm0 = vcmp.eq.s32.totalorder %v7287_v26, %v7716_v51 }
  0xf3   : > { %5963 = vmatprep.subr.msk.mxu1 %vm12867_vm13, %v13192_v9  ;;  %vm12873_vm13 = vcmp.eq.s32.totalorder %v7302_v27, %v7702_v49 }
  0xf4   : > { %5964 = vmatpush1.msk.msra.mxu1 %vm12868_vm2, %v13192_v9  ;;  %vm12874_vm2 = vcmp.eq.s32.totalorder %v7302_v27, %v7716_v51 }
  0xf5   : > { %5965 = vmatprep.subr.msk.mxu1 %vm12869_vm1, %v13192_v9  ;;  %vm12875_vm1 = vcmp.eq.s32.totalorder %v7317_v28, %v7702_v49 }
  0xf6   : > { %5966 = vmatpush1.msk.msra.mxu1 %vm12870_vm14, %v13192_v9  ;;  %vm12876_vm14 = vcmp.eq.s32.totalorder %v7317_v28, %v7716_v51 }
  0xf7   : > { %5967 = vmatprep.subr.msk.mxu1 %vm12871_vm15, %v13192_v9  ;;  %vm12877_vm15 = vcmp.eq.s32.totalorder %v7332_v29, %v7702_v49 }
  0xf8   : > { %5968 = vmatpush1.msk.msra.mxu1 %vm12872_vm0, %v13192_v9  ;;  %vm12878_vm0 = vcmp.eq.s32.totalorder %v7332_v29, %v7716_v51 }
  0xf9   : > { %5969 = vmatprep.subr.msk.mxu1 %vm12873_vm13, %v13192_v9  ;;  %vm12879_vm13 = vcmp.eq.s32.totalorder %v7347_v30, %v7702_v49 }
  0xfa   : > { %5970 = vmatpush1.msk.msra.mxu1 %vm12874_vm2, %v13192_v9  ;;  %vm12880_vm2 = vcmp.eq.s32.totalorder %v7347_v30, %v7716_v51 }
  0xfb   : > { %5971 = vmatprep.subr.msk.mxu1 %vm12875_vm1, %v13192_v9  ;;  %vm12881_vm1 = vcmp.eq.s32.totalorder %v7166_v4, %v7702_v49 }
  0xfc   : > { %5972 = vmatpush1.msk.msra.mxu1 %vm12876_vm14, %v13192_v9  ;;  %vm12882_vm14 = vcmp.eq.s32.totalorder %v7166_v4, %v7716_v51 }
  0xfd   : > { %5973 = vmatprep.subr.msk.mxu1 %vm12877_vm15, %v13192_v9  ;;  %vm12883_vm15 = vcmp.eq.s32.totalorder %v7194_v10, %v7702_v49 }
  0xfe   : > { %5974 = vmatpush1.msk.msra.mxu1 %vm12878_vm0, %v13192_v9  ;;  %vm12884_vm0 = vcmp.eq.s32.totalorder %v7194_v10, %v7716_v51 }
  0xff   : > { %5975 = vmatprep.subr.msk.mxu1 %vm12879_vm13, %v13192_v9  ;;  %vm12885_vm13 = vcmp.eq.s32.totalorder %v7197_v11, %v7702_v49 }
 0x100   : > { %5976 = vmatpush1.msk.msra.mxu1 %vm12880_vm2, %v13192_v9  ;;  %vm12886_vm2 = vcmp.eq.s32.totalorder %v7197_v11, %v7716_v51 }
 0x101   : > { %5977 = vmatprep.subr.msk.mxu1 %vm12881_vm1, %v13192_v9  ;;  %vm12887_vm1 = vcmp.eq.s32.totalorder %v7201_v12, %v7702_v49 }
 0x102   : > { %5978 = vmatpush1.msk.msra.mxu1 %vm12882_vm14, %v13192_v9  ;;  %vm12888_vm14 = vcmp.eq.s32.totalorder %v7201_v12, %v7716_v51 }
 0x103   : > { %5979 = vmatprep.subr.msk.mxu1 %vm12883_vm15, %v13192_v9  ;;  %vm12889_vm15 = vcmp.eq.s32.totalorder %v7207_v13, %v7702_v49 }
 0x104   : > { %5980 = vmatpush1.msk.msra.mxu1 %vm12884_vm0, %v13192_v9  ;;  %vm12890_vm0 = vcmp.eq.s32.totalorder %v7207_v13, %v7716_v51 }
 0x105   : > { %5981 = vmatprep.subr.msk.mxu1 %vm12885_vm13, %v13192_v9  ;;  %vm12891_vm13 = vcmp.eq.s32.totalorder %v7217_v15, %v7702_v49 }
 0x106   : > { %5982 = vmatpush1.msk.msra.mxu1 %vm12886_vm2, %v13192_v9  ;;  %vm12892_vm2 = vcmp.eq.s32.totalorder %v7217_v15, %v7716_v51 }
 0x107   : > { %5983 = vmatprep.subr.msk.mxu1 %vm12887_vm1, %v13192_v9  ;;  %vm12893_vm1 = vcmp.eq.s32.totalorder %v7228_v17, %v7702_v49 }
 0x108   : > { %5984 = vmatpush1.msk.msra.mxu1 %vm12888_vm14, %v13192_v9  ;;  %vm12894_vm14 = vcmp.eq.s32.totalorder %v7228_v17, %v7716_v51 }
 0x109   : > { %5985 = vmatprep.subr.msk.mxu1 %vm12889_vm15, %v13192_v9  ;;  %vm12895_vm15 = vcmp.eq.s32.totalorder %v7156_v1, %v7702_v49 }
 0x10a   : > { %5986 = vmatpush1.msk.msra.mxu1 %vm12890_vm0, %v13192_v9  ;;  %vm12896_vm0 = vcmp.eq.s32.totalorder %v7156_v1, %v7716_v51 }
 0x10b   : > { %5987 = vmatprep.subr.msk.mxu1 %vm12891_vm13, %v13192_v9  ;;  %vm12897_vm13 = vcmp.eq.s32.totalorder %v7458_v31, %v7702_v49 }
 0x10c   : > { %5988 = vmatpush1.msk.msra.mxu1 %vm12892_vm2, %v13192_v9  ;;  %vm12898_vm2 = vcmp.eq.s32.totalorder %v7458_v31, %v7716_v51 }
 0x10d   : > { %5989 = vmatprep.subr.msk.mxu1 %vm12893_vm1, %v13192_v9  ;;  %vm12899_vm1 = vcmp.eq.s32.totalorder %v7473_v32, %v7702_v49 }
 0x10e   : > { %5990 = vmatpush1.msk.msra.mxu1 %vm12894_vm14, %v13192_v9  ;;  %vm12900_vm14 = vcmp.eq.s32.totalorder %v7473_v32, %v7716_v51 }
 0x10f   : > { %5991 = vmatprep.subr.msk.mxu1 %vm12895_vm15, %v13192_v9  ;;  %vm12901_vm15 = vcmp.eq.s32.totalorder %v7488_v33, %v7702_v49 }
 0x110   : > { %5992 = vmatpush1.msk.msra.mxu1 %vm12896_vm0, %v13192_v9  ;;  %vm12902_vm0 = vcmp.eq.s32.totalorder %v7488_v33, %v7716_v51 }
 0x111   : > { %5993 = vmatprep.subr.msk.mxu1 %vm12897_vm13, %v13192_v9  ;;  %vm12903_vm13 = vcmp.eq.s32.totalorder %v7503_v34, %v7702_v49 }
 0x112   : > { %5994 = vmatpush2.msk.msra.mxu1 %vm12898_vm2, %v13192_v9  ;;  %vm12904_vm2 = vcmp.eq.s32.totalorder %v7503_v34, %v7716_v51 }
 0x113   : > { %5995 = vmatprep.subr.msk.mxu1 %vm12899_vm1, %v13192_v9  ;;  %vm12905_vm1 = vcmp.eq.s32.totalorder %v7518_v35, %v7702_v49 }
 0x114   : > { %5996 = vmatpush2.msk.msra.mxu1 %vm12900_vm14, %v13192_v9  ;;  %vm12906_vm14 = vcmp.eq.s32.totalorder %v7518_v35, %v7716_v51 }
 0x115   : > { %5997 = vmatprep.subr.msk.mxu1 %vm12901_vm15, %v13192_v9  ;;  %vm12907_vm15 = vcmp.eq.s32.totalorder %v7533_v36, %v7702_v49 }
 0x116   : > { %5998 = vmatpush2.msk.msra.mxu1 %vm12902_vm0, %v13192_v9  ;;  %vm12908_vm0 = vcmp.eq.s32.totalorder %v7533_v36, %v7716_v51 }
 0x117   : > { %5999 = vmatprep.subr.msk.mxu1 %vm12903_vm13, %v13192_v9  ;;  %vm12909_vm13 = vcmp.eq.s32.totalorder %v7548_v37, %v7702_v49 }
 0x118   : > { %6000 = vmatpush2.msk.msra.mxu1 %vm12904_vm2, %v13192_v9  ;;  %vm12917_vm2 = vcmp.eq.s32.totalorder %v7548_v37, %v7716_v51 }
 0x119   : > { %6001 = vmatprep.subr.msk.mxu1 %vm12905_vm1, %v13192_v9  ;;  %vm12911_vm1 = vcmp.eq.s32.totalorder %v7563_v38, %v7702_v49 }
 0x11a   : > { %6002 = vmatpush2.msk.msra.mxu1 %vm12906_vm14, %v13192_v9  ;;  %vm12910_vm14 = vcmp.eq.s32.totalorder %v7563_v38, %v7716_v51 }
 0x11b   : > { %6003 = vmatprep.subr.msk.mxu1 %vm12907_vm15, %v13192_v9  ;;  %vm12915_vm15 = vcmp.eq.s32.totalorder %v7578_v39, %v7702_v49 }
 0x11c   : > { %6004 = vmatpush2.msk.msra.mxu1 %vm12908_vm0, %v13192_v9  ;;  %vm12913_vm0 = vcmp.eq.s32.totalorder %v7578_v39, %v7716_v51 }
 0x11d   : > { %6005 = vmatprep.subr.msk.mxu1 %vm12909_vm13, %v13192_v9  ;;  %vm12912_vm13 = vcmp.eq.s32.totalorder %v7593_v40, %v7702_v49 }
 0x11e   : > { %6006 = vmatpush2.msk.msra.mxu1 %vm12917_vm2, %v13192_v9  ;;  %vm12934_vm2 = vcmp.eq.s32.totalorder %v8054_v54, %v7265_v21 }
 0x11f   : > { %6007 = vmatprep.subr.msk.mxu1 %vm12911_vm1, %v13192_v9  ;;  %vm12936_vm1 = vcmp.eq.s32.totalorder %v7653_v44, %v7269_v22 }
 0x120   : > { %6008 = vmatpush2.msk.msra.mxu1 %vm12910_vm14, %v13192_v9  ;;  %vm12914_vm14 = vcmp.eq.s32.totalorder %v7593_v40, %v7716_v51  ;;  %6084 = vmatpush2.msk.msra.mxu0 %vm12936_vm1, %v13192_v9 }
 0x121   : > { %6009 = vmatprep.subr.msk.mxu1 %vm12915_vm15, %v13192_v9  ;;  %vm12919_vm15 = vcmp.eq.s32.totalorder %v8035_v53, %v7269_v22 }
 0x122   : > { %6010 = vmatpush2.msk.msra.mxu1 %vm12913_vm0, %v13192_v9  ;;  %vm12920_vm0 = vcmp.eq.s32.totalorder %v8035_v53, %v7265_v21 }
 0x123   : > { %6011 = vmatprep.subr.msk.mxu1 %vm12912_vm13, %v13192_v9  ;;  %vm12916_vm13 = vcmp.eq.s32.totalorder %v7608_v41, %v7702_v49  ;;  %6085 = vmatprep.subr.msk.mxu0 %vm12920_vm0, %v13192_v9  ;;  %vm12923_vm0 = vcmp.eq.s32.totalorder %v7638_v43, %v7702_v49 }
 0x124   : > { %6012 = vmatpush2.msk.msra.mxu1 %vm12914_vm14, %v13192_v9  ;;  %vm12918_vm14 = vcmp.eq.s32.totalorder %v7608_v41, %v7716_v51  ;;  %6086 = vmatpush2.msk.msra.mxu0 %vm12919_vm15, %v13192_v9  ;;  %vm12924_vm15 = vcmp.eq.s32.totalorder %v8054_v54, %v7269_v22 }
 0x125   : > { %6013 = vmatprep.subr.msk.mxu1 %vm12916_vm13, %v13192_v9  ;;  %vm12921_vm13 = vcmp.eq.s32.totalorder %v7623_v42, %v7702_v49  ;;  %6087 = vmatprep.subr.msk.mxu0 %vm12934_vm2, %v13192_v9  ;;  %vm12941_vm2 = vcmp.eq.s32.totalorder %v7287_v26, %v8154_v63 }
 0x126   : > { %6014 = vmatpush2.msk.msra.mxu1 %vm12918_vm14, %v13192_v9  ;;  %vm12922_vm14 = vcmp.eq.s32.totalorder %v7623_v42, %v7716_v51  ;;  %6088 = vmatpush2.msk.msra.mxu0 %vm12924_vm15, %v13192_v9  ;;  %vm12931_vm15 = vcmp.eq.s32.totalorder %v8035_v53, %v7702_v49 }
 0x127   : > { %6015 = vmatprep.subr.msk.mxu1 %vm12921_vm13, %v13192_v9  ;;  %6163 = vmatprep.subr.msk.mxu0 %vm2074_vm7, %v7223_v16  ;;  %vm12925_vm13 = vcmp.eq.s32.totalorder %v7638_v43, %v7716_v51 }
 0x128   : > { %6016 = vmatpush2.msk.msra.mxu1 %vm12922_vm14, %v13192_v9  ;;  %vm12926_vm14 = vcmp.eq.s32.totalorder %v7653_v44, %v7702_v49 }
 0x129   : > { %6017 = vmatprep.subr.msk.mxu1 %vm12923_vm0, %v13192_v9  ;;  %vm12927_vm0 = vcmp.eq.s32.totalorder %v7653_v44, %v7716_v51 }
 0x12a   : > { %6018 = vmatpush2.msk.msra.mxu1 %vm12925_vm13, %v13192_v9  ;;  %vm12930_vm13 = vcmp.eq.s32.totalorder %v8035_v53, %v7716_v51 }
 0x12b   : > { %6019 = vmatprep.subr.msk.mxu1 %vm12926_vm14, %v13192_v9  ;;  %vm12929_vm14 = vcmp.eq.s32.totalorder %v8054_v54, %v7702_v49 }
 0x12c   : > { %6020 = vmatpush2.msk.msra.mxu1 %vm12927_vm0, %v13192_v9  ;;  %vm12928_vm0 = vcmp.eq.s32.totalorder %v8054_v54, %v7716_v51 }
 0x12d   : > { %6021 = vmatprep.subr.msk.mxu1 %vm12931_vm15, %v13192_v9  ;;  %vm12937_vm15 = vcmp.eq.s32.totalorder %v7275_v24, %v8163_v8 }
 0x12e   : > { %6022 = vmatpush2.msk.msra.mxu1 %vm12930_vm13, %v13192_v9  ;;  %vm12935_vm13 = vcmp.eq.s32.totalorder %v7275_v24, %v8154_v63 }
 0x12f   : > { %6023 = vmatprep.subr.msk.mxu1 %vm12929_vm14, %v13192_v9  ;;  %vm12933_vm14 = vcmp.eq.s32.totalorder %v7272_v23, %v8163_v8 }
 0x130   : > { %6024 = vmatpush2.msk.msra.mxu1 %vm12928_vm0, %v13192_v9  ;;  %vm12932_vm0 = vcmp.eq.s32.totalorder %v7272_v23, %v8154_v63 }
 0x131   : > { %6091 = vmatprep.subr.msk.mxu1 %vm2074_vm7, %v7223_v16 }
 0x1a9   : > { %v2225_v57 = vpop.f32.mrf.mxu1 }
 0x1aa   : > { %v2226_v61 = vadd.f32 %v2225_v57, %v2145_v55  ;;  %v8186_v55 = vrot.slane %v7163_v3, %v868_v19  ;;  %v6090_v3 = vld [vmem:[%s12809_s3 + $0x8] sm:$0xf] }
 0x1ab   : > { %v2227_v59 = vpop.f32.mrf.mxu1 }
 0x1ac   : > { %v2228_v60 = vadd.f32 %v2227_v59, %v2147_v56  ;;  %v8203_v56 = vrot.slane %v7176_v6, %v868_v19  ;;  %vm12944_vm1 = vcmp.eq.s32.totalorder %v7272_v23, %v8186_v55  ;;  %v6089_v6 = vld [vmem:[%s12808_s2 + $0x8] sm:$0xf] }
 0x1ad   : > { %v2303_v62 = vpop.f32.mrf.mxu1 }
 0x1ae   : > { %2517 = vmatprep.mubr.f32.mxu0 %v2228_v60  ;;  %13335 = vst [vmem:[#allocation5_spill] sm:$0xff] %v8203_v56  ;;  %vm12952_vm11 = vcmp.eq.s32.totalorder %v7275_v24, %v8203_v56 }
 0x1af   : > { %v2305_v0 = vpop.f32.mrf.mxu1  ;;  %2518 = vmatmul.mubr.f32.vlgmr.msra.gmra.mxu0 %v2226_v61 }
 0x1b0   : > { %6164 = vmatpush1.msk.msra.mxu0 %vm2074_vm7, %v7210_v14  ;;  %2820 = vmatprep.mubr.f32.mxu0 %v13184_v2 }
 0x1b1   : > { %6166 = vmatprep.subr.msk.mxu0 %vm2074_vm7, %v7694_v47  ;;  %v2377_v18 = vpop.f32.mrf.mxu1 }
 0x1b2   : > { %v2378_v52 = vadd.f32 %v2377_v18, %v2303_v62 }
 0x1b3   : > { %v2379_v45 = vpop.f32.mrf.mxu1  ;;  %6165 = vmatmul.mubr.msk.f32.vlgmr.msra.gmra.mxu0 %vm2070_vm10, %v6162_v7 }
 0x1b4   : > { %v2380_v48 = vadd.f32 %v2379_v45, %v2305_v0  ;;  %6167 = vmatpush1.msk.msra.mxu0 %vm2074_vm7, %v7692_v46  ;;  %2894 = vmatprep.mubr.f32.mxu0 %v13184_v2 }
 0x1b5   : > { %6169 = vmatprep.subr.msk.mxu0 %vm12932_vm0, %v13192_v9  ;;  %vm12938_vm0 = vcmp.eq.s32.totalorder %v7278_v25, %v8154_v63 }
 0x1b6   : > { %2446 = vmatprep.mubr.f32.mxu1 %v2380_v48 }
 0x1b7   : > { %2447 = vmatmul.mubr.f32.vlgmr.msra.gmra.mxu1 %v2378_v52  ;;  %6168 = vmatmul.mubr.msk.f32.vlgmr.msra.gmra.mxu0 %vm2070_vm10, %v6161_v50  ;;  %v1468_v50 = vsub.s32 7, %v7156_v1 }
 0x1b8   : > { %6092 = vmatpush1.msk.msra.mxu1 %vm2074_vm7, %v7210_v14  ;;  %6170 = vmatpush1.msk.msra.mxu0 %vm12933_vm14, %v13192_v9  ;;  %vm12939_vm14 = vcmp.eq.s32.totalorder %v7278_v25, %v8163_v8 }
 0x1b9   : > { %6094 = vmatprep.subr.msk.mxu1 %vm2074_vm7, %v7694_v47  ;;  %6171 = vmatprep.subr.msk.mxu0 %vm12935_vm13, %v13192_v9  ;;  %vm12942_vm13 = vcmp.eq.s32.totalorder %v7287_v26, %v8163_v8 }
 0x1ba   : > { %6172 = vmatpush1.msk.msra.mxu0 %vm12937_vm15, %v13192_v9  ;;  %2595 = vmatprep.mubr.f32.mxu1 %v13184_v2  ;;  %vm12945_vm15 = vcmp.eq.s32.totalorder %v7302_v27, %v8154_v63 }
 0x1bb   : > { %6173 = vmatprep.subr.msk.mxu0 %vm12938_vm0, %v13192_v9  ;;  %6093 = vmatmul.mubr.msk.f32.vlgmr.msra.gmra.mxu1 %vm2070_vm10, %v6090_v3  ;;  %vm12947_vm0 = vcmp.eq.s32.totalorder %v7302_v27, %v8163_v8  ;;  %v6241_v3 = vld [vmem:[%s12808_s2 + $0x14] sm:$0xf] }
 0x1bc   : > { %6095 = vmatpush1.msk.msra.mxu1 %vm2074_vm7, %v7692_v46  ;;  %6174 = vmatpush1.msk.msra.mxu0 %vm12939_vm14, %v13192_v9  ;;  %vm12948_vm14 = vcmp.eq.s32.totalorder %v7272_v23, %v8203_v56 }
 0x1bd   : > { %6175 = vmatprep.subr.msk.mxu0 %vm12941_vm2, %v13192_v9  ;;  %2669 = vmatprep.mubr.f32.mxu1 %v13184_v2  ;;  %vm12950_vm2 = vcmp.eq.s32.totalorder %v7275_v24, %v8186_v55 }
 0x1be   : > { %6176 = vmatpush1.msk.msra.mxu0 %vm12942_vm13, %v13192_v9  ;;  %6097 = vmatprep.subr.msk.mxu1 %vm12944_vm1, %v13192_v9  ;;  %vm12951_vm13 = vcmp.eq.s32.totalorder %v7317_v28, %v8163_v8  ;;  %vm12953_vm1 = vcmp.eq.s32.totalorder %v7332_v29, %v8154_v63 }
 0x1bf   : > { %6177 = vmatprep.subr.msk.mxu0 %vm12945_vm15, %v13192_v9  ;;  %6096 = vmatmul.mubr.msk.f32.vlgmr.msra.gmra.mxu1 %vm2070_vm10, %v6089_v6  ;;  %vm12954_vm15 = vcmp.eq.s32.totalorder %v7278_v25, %v8186_v55 }
 0x1c0   : > { %6178 = vmatpush1.msk.msra.mxu0 %vm12947_vm0, %v13192_v9  ;;  %6098 = vmatpush1.msk.msra.mxu1 %vm12948_vm14, %v13192_v9  ;;  %vm12956_vm0 = vcmp.eq.s32.totalorder %v7278_v25, %v8203_v56  ;;  %vm12957_vm14 = vcmp.eq.s32.totalorder %v7347_v30, %v8154_v63 }
 0x1c1   : > { %6179 = vmatprep.subr.msk.mxu0 %vm12949_vm12, %v13192_v9  ;;  %6099 = vmatprep.subr.msk.mxu1 %vm12950_vm2, %v13192_v9  ;;  %vm12958_vm12 = vcmp.eq.s32.totalorder %v7287_v26, %v8186_v55  ;;  %vm12959_vm2 = vcmp.eq.s32.totalorder %v7347_v30, %v8163_v8 }
 0x1c2   : > { %6180 = vmatpush1.msk.msra.mxu0 %vm12951_vm13, %v13192_v9  ;;  %6100 = vmatpush1.msk.msra.mxu1 %vm12952_vm11, %v13192_v9  ;;  %vm12960_vm13 = vcmp.eq.s32.totalorder %v7287_v26, %v8203_v56  ;;  %vm12961_vm11 = vcmp.eq.s32.totalorder %v7166_v4, %v8154_v63 }
 0x1c3   : > { %6181 = vmatprep.subr.msk.mxu0 %vm12953_vm1, %v13192_v9  ;;  %6101 = vmatprep.subr.msk.mxu1 %vm12954_vm15, %v13192_v9  ;;  %vm12962_vm1 = vcmp.eq.s32.totalorder %v7302_v27, %v8186_v55  ;;  %vm12963_vm15 = vcmp.eq.s32.totalorder %v7166_v4, %v8163_v8 }
 0x1c4   : > { %6182 = vmatpush1.msk.msra.mxu0 %vm12955_vm9, %v13192_v9  ;;  %6102 = vmatpush1.msk.msra.mxu1 %vm12956_vm0, %v13192_v9  ;;  %vm12964_vm9 = vcmp.eq.s32.totalorder %v7302_v27, %v8203_v56  ;;  %vm12965_vm0 = vcmp.eq.s32.totalorder %v7194_v10, %v8154_v63 }
 0x1c5   : > { %6183 = vmatprep.subr.msk.mxu0 %vm12957_vm14, %v13192_v9  ;;  %6103 = vmatprep.subr.msk.mxu1 %vm12958_vm12, %v13192_v9  ;;  %vm12966_vm14 = vcmp.eq.s32.totalorder %v7317_v28, %v8186_v55  ;;  %vm12967_vm12 = vcmp.eq.s32.totalorder %v7194_v10, %v8163_v8 }
 0x1c6   : > { %6184 = vmatpush1.msk.msra.mxu0 %vm12959_vm2, %v13192_v9  ;;  %6104 = vmatpush1.msk.msra.mxu1 %vm12960_vm13, %v13192_v9  ;;  %vm12968_vm2 = vcmp.eq.s32.totalorder %v7317_v28, %v8203_v56  ;;  %vm12969_vm13 = vcmp.eq.s32.totalorder %v7197_v11, %v8154_v63 }
 0x1c7   : > { %6185 = vmatprep.subr.msk.mxu0 %vm12961_vm11, %v13192_v9  ;;  %6105 = vmatprep.subr.msk.mxu1 %vm12962_vm1, %v13192_v9  ;;  %vm12970_vm11 = vcmp.eq.s32.totalorder %v7332_v29, %v8186_v55  ;;  %vm12971_vm1 = vcmp.eq.s32.totalorder %v7197_v11, %v8163_v8 }
 0x1c8   : > { %6186 = vmatpush1.msk.msra.mxu0 %vm12963_vm15, %v13192_v9  ;;  %6106 = vmatpush1.msk.msra.mxu1 %vm12964_vm9, %v13192_v9  ;;  %vm12972_vm15 = vcmp.eq.s32.totalorder %v7332_v29, %v8203_v56  ;;  %vm12973_vm9 = vcmp.eq.s32.totalorder %v7201_v12, %v8154_v63 }
 0x1c9   : > { %6187 = vmatprep.subr.msk.mxu0 %vm12965_vm0, %v13192_v9  ;;  %6107 = vmatprep.subr.msk.mxu1 %vm12966_vm14, %v13192_v9  ;;  %vm12974_vm0 = vcmp.eq.s32.totalorder %v7347_v30, %v8186_v55  ;;  %vm12975_vm14 = vcmp.eq.s32.totalorder %v7201_v12, %v8163_v8 }
 0x1ca   : > { %6188 = vmatpush1.msk.msra.mxu0 %vm12967_vm12, %v13192_v9  ;;  %6108 = vmatpush1.msk.msra.mxu1 %vm12968_vm2, %v13192_v9  ;;  %vm12976_vm12 = vcmp.eq.s32.totalorder %v7347_v30, %v8203_v56  ;;  %vm12977_vm2 = vcmp.eq.s32.totalorder %v7207_v13, %v8154_v63 }
 0x1cb   : > { %6189 = vmatprep.subr.msk.mxu0 %vm12969_vm13, %v13192_v9  ;;  %6109 = vmatprep.subr.msk.mxu1 %vm12970_vm11, %v13192_v9  ;;  %vm12978_vm13 = vcmp.eq.s32.totalorder %v7166_v4, %v8186_v55  ;;  %vm12979_vm11 = vcmp.eq.s32.totalorder %v7207_v13, %v8163_v8 }
 0x1cc   : > { %6190 = vmatpush1.msk.msra.mxu0 %vm12971_vm1, %v13192_v9  ;;  %6110 = vmatpush1.msk.msra.mxu1 %vm12972_vm15, %v13192_v9  ;;  %vm12980_vm1 = vcmp.eq.s32.totalorder %v7166_v4, %v8203_v56  ;;  %vm12981_vm15 = vcmp.eq.s32.totalorder %v7217_v15, %v8154_v63 }
 0x1cd   : > { %6191 = vmatprep.subr.msk.mxu0 %vm12973_vm9, %v13192_v9  ;;  %6111 = vmatprep.subr.msk.mxu1 %vm12974_vm0, %v13192_v9  ;;  %vm12982_vm9 = vcmp.eq.s32.totalorder %v7194_v10, %v8186_v55  ;;  %vm12983_vm0 = vcmp.eq.s32.totalorder %v7217_v15, %v8163_v8 }
 0x1ce   : > { %6192 = vmatpush1.msk.msra.mxu0 %vm12975_vm14, %v13192_v9  ;;  %6112 = vmatpush1.msk.msra.mxu1 %vm12976_vm12, %v13192_v9  ;;  %vm12984_vm14 = vcmp.eq.s32.totalorder %v7194_v10, %v8203_v56  ;;  %vm12985_vm12 = vcmp.eq.s32.totalorder %v7228_v17, %v8154_v63 }
 0x1cf   : > { %6193 = vmatprep.subr.msk.mxu0 %vm12977_vm2, %v13192_v9  ;;  %6113 = vmatprep.subr.msk.mxu1 %vm12978_vm13, %v13192_v9  ;;  %vm12986_vm2 = vcmp.eq.s32.totalorder %v7197_v11, %v8186_v55  ;;  %vm12987_vm13 = vcmp.eq.s32.totalorder %v7228_v17, %v8163_v8 }
 0x1d0   : > { %6194 = vmatpush1.msk.msra.mxu0 %vm12979_vm11, %v13192_v9  ;;  %6114 = vmatpush1.msk.msra.mxu1 %vm12980_vm1, %v13192_v9  ;;  %vm12988_vm11 = vcmp.eq.s32.totalorder %v7197_v11, %v8203_v56  ;;  %vm12989_vm1 = vcmp.eq.s32.totalorder %v7156_v1, %v8154_v63 }
 0x1d1   : > { %6195 = vmatprep.subr.msk.mxu0 %vm12981_vm15, %v13192_v9  ;;  %6115 = vmatprep.subr.msk.mxu1 %vm12982_vm9, %v13192_v9  ;;  %vm12990_vm15 = vcmp.eq.s32.totalorder %v7201_v12, %v8186_v55  ;;  %vm12991_vm9 = vcmp.eq.s32.totalorder %v7156_v1, %v8163_v8 }
 0x1d2   : > { %6196 = vmatpush1.msk.msra.mxu0 %vm12983_vm0, %v13192_v9  ;;  %6116 = vmatpush1.msk.msra.mxu1 %vm12984_vm14, %v13192_v9  ;;  %vm12992_vm0 = vcmp.eq.s32.totalorder %v7201_v12, %v8203_v56  ;;  %vm12993_vm14 = vcmp.eq.s32.totalorder %v7458_v31, %v8154_v63 }
 0x1d3   : > { %6197 = vmatprep.subr.msk.mxu0 %vm12985_vm12, %v13192_v9  ;;  %6117 = vmatprep.subr.msk.mxu1 %vm12986_vm2, %v13192_v9  ;;  %vm12994_vm12 = vcmp.eq.s32.totalorder %v7207_v13, %v8186_v55  ;;  %vm12995_vm2 = vcmp.eq.s32.totalorder %v7458_v31, %v8163_v8 }
 0x1d4   : > { %6198 = vmatpush1.msk.msra.mxu0 %vm12987_vm13, %v13192_v9  ;;  %6118 = vmatpush1.msk.msra.mxu1 %vm12988_vm11, %v13192_v9  ;;  %vm12996_vm13 = vcmp.eq.s32.totalorder %v7207_v13, %v8203_v56  ;;  %vm12997_vm11 = vcmp.eq.s32.totalorder %v7473_v32, %v8154_v63 }
 0x1d5   : > { %6199 = vmatprep.subr.msk.mxu0 %vm12989_vm1, %v13192_v9  ;;  %6119 = vmatprep.subr.msk.mxu1 %vm12990_vm15, %v13192_v9  ;;  %vm12998_vm1 = vcmp.eq.s32.totalorder %v7217_v15, %v8186_v55  ;;  %vm12999_vm15 = vcmp.eq.s32.totalorder %v7473_v32, %v8163_v8 }
 0x1d6   : > { %6200 = vmatpush1.msk.msra.mxu0 %vm12991_vm9, %v13192_v9  ;;  %6120 = vmatpush1.msk.msra.mxu1 %vm12992_vm0, %v13192_v9  ;;  %vm13000_vm9 = vcmp.eq.s32.totalorder %v7217_v15, %v8203_v56  ;;  %vm13001_vm0 = vcmp.eq.s32.totalorder %v7488_v33, %v8154_v63 }
 0x1d7   : > { %6201 = vmatprep.subr.msk.mxu0 %vm12993_vm14, %v13192_v9  ;;  %6121 = vmatprep.subr.msk.mxu1 %vm12994_vm12, %v13192_v9  ;;  %vm13002_vm14 = vcmp.eq.s32.totalorder %v7228_v17, %v8186_v55  ;;  %vm13003_vm12 = vcmp.eq.s32.totalorder %v7488_v33, %v8163_v8 }
 0x1d8   : > { %6202 = vmatpush2.msk.msra.mxu0 %vm12995_vm2, %v13192_v9  ;;  %6122 = vmatpush1.msk.msra.mxu1 %vm12996_vm13, %v13192_v9  ;;  %vm13004_vm2 = vcmp.eq.s32.totalorder %v7228_v17, %v8203_v56  ;;  %vm13005_vm13 = vcmp.eq.s32.totalorder %v7503_v34, %v8154_v63 }
 0x1d9   : > { %6203 = vmatprep.subr.msk.mxu0 %vm12997_vm11, %v13192_v9  ;;  %6123 = vmatprep.subr.msk.mxu1 %vm12998_vm1, %v13192_v9  ;;  %vm13006_vm11 = vcmp.eq.s32.totalorder %v7156_v1, %v8186_v55  ;;  %vm13007_vm1 = vcmp.eq.s32.totalorder %v7503_v34, %v8163_v8 }
 0x1da   : > { %6204 = vmatpush2.msk.msra.mxu0 %vm12999_vm15, %v13192_v9  ;;  %6124 = vmatpush1.msk.msra.mxu1 %vm13000_vm9, %v13192_v9  ;;  %vm13008_vm15 = vcmp.eq.s32.totalorder %v7156_v1, %v8203_v56  ;;  %vm13009_vm9 = vcmp.eq.s32.totalorder %v7518_v35, %v8154_v63 }
 0x1db   : > { %6205 = vmatprep.subr.msk.mxu0 %vm13001_vm0, %v13192_v9  ;;  %6125 = vmatprep.subr.msk.mxu1 %vm13002_vm14, %v13192_v9  ;;  %vm13010_vm0 = vcmp.eq.s32.totalorder %v7458_v31, %v8186_v55  ;;  %vm13011_vm14 = vcmp.eq.s32.totalorder %v7518_v35, %v8163_v8 }
 0x1dc   : > { %6206 = vmatpush2.msk.msra.mxu0 %vm13003_vm12, %v13192_v9  ;;  %6126 = vmatpush1.msk.msra.mxu1 %vm13004_vm2, %v13192_v9  ;;  %vm13012_vm12 = vcmp.eq.s32.totalorder %v7458_v31, %v8203_v56  ;;  %vm13013_vm2 = vcmp.eq.s32.totalorder %v7533_v36, %v8154_v63 }
 0x1dd   : > { %6207 = vmatprep.subr.msk.mxu0 %vm13005_vm13, %v13192_v9  ;;  %6127 = vmatprep.subr.msk.mxu1 %vm13006_vm11, %v13192_v9  ;;  %vm13014_vm13 = vcmp.eq.s32.totalorder %v7473_v32, %v8186_v55  ;;  %vm13015_vm11 = vcmp.eq.s32.totalorder %v7533_v36, %v8163_v8 }
 0x1de   : > { %6208 = vmatpush2.msk.msra.mxu0 %vm13007_vm1, %v13192_v9  ;;  %6128 = vmatpush1.msk.msra.mxu1 %vm13008_vm15, %v13192_v9  ;;  %vm13016_vm1 = vcmp.eq.s32.totalorder %v7473_v32, %v8203_v56  ;;  %vm13017_vm15 = vcmp.eq.s32.totalorder %v7548_v37, %v8154_v63 }
 0x1df   : > { %6209 = vmatprep.subr.msk.mxu0 %vm13009_vm9, %v13192_v9  ;;  %6129 = vmatprep.subr.msk.mxu1 %vm13010_vm0, %v13192_v9  ;;  %vm13018_vm9 = vcmp.eq.s32.totalorder %v7488_v33, %v8186_v55  ;;  %vm13019_vm0 = vcmp.eq.s32.totalorder %v7548_v37, %v8163_v8 }
 0x1e0   : > { %6210 = vmatpush2.msk.msra.mxu0 %vm13011_vm14, %v13192_v9  ;;  %6130 = vmatpush2.msk.msra.mxu1 %vm13012_vm12, %v13192_v9  ;;  %vm13020_vm14 = vcmp.eq.s32.totalorder %v7488_v33, %v8203_v56  ;;  %vm13021_vm12 = vcmp.eq.s32.totalorder %v7563_v38, %v8154_v63 }
 0x1e1   : > { %6211 = vmatprep.subr.msk.mxu0 %vm13013_vm2, %v13192_v9  ;;  %6131 = vmatprep.subr.msk.mxu1 %vm13014_vm13, %v13192_v9  ;;  %vm13022_vm2 = vcmp.eq.s32.totalorder %v7503_v34, %v8186_v55  ;;  %vm13023_vm13 = vcmp.eq.s32.totalorder %v7563_v38, %v8163_v8 }
 0x1e2   : > { %6212 = vmatpush2.msk.msra.mxu0 %vm13015_vm11, %v13192_v9  ;;  %6132 = vmatpush2.msk.msra.mxu1 %vm13016_vm1, %v13192_v9  ;;  %vm13037_vm11 = vcmp.eq.s32.totalorder %v7503_v34, %v8203_v56  ;;  %vm13024_vm1 = vcmp.eq.s32.totalorder %v7578_v39, %v8154_v63 }
 0x1e3   : > { %6213 = vmatprep.subr.msk.mxu0 %vm13017_vm15, %v13192_v9  ;;  %6133 = vmatprep.subr.msk.mxu1 %vm13018_vm9, %v13192_v9  ;;  %vm13036_vm15 = vcmp.eq.s32.totalorder %v7518_v35, %v8186_v55  ;;  %vm13025_vm9 = vcmp.eq.s32.totalorder %v7578_v39, %v8163_v8 }
 0x1e4   : > { %6214 = vmatpush2.msk.msra.mxu0 %vm13019_vm0, %v13192_v9  ;;  %6134 = vmatpush2.msk.msra.mxu1 %vm13020_vm14, %v13192_v9  ;;  %vm13032_vm0 = vcmp.eq.s32.totalorder %v7518_v35, %v8203_v56  ;;  %vm13026_vm14 = vcmp.eq.s32.totalorder %v7593_v40, %v8154_v63 }
 0x1e5   : > { %6215 = vmatprep.subr.msk.mxu0 %vm13021_vm12, %v13192_v9  ;;  %6135 = vmatprep.subr.msk.mxu1 %vm13022_vm2, %v13192_v9  ;;  %vm13027_vm12 = vcmp.eq.s32.totalorder %v7533_v36, %v8186_v55  ;;  %vm13028_vm2 = vcmp.eq.s32.totalorder %v7593_v40, %v8163_v8 }
 0x1e6   : > { %6216 = vmatpush2.msk.msra.mxu0 %vm13023_vm13, %v13192_v9  ;;  %6136 = vmatpush2.msk.msra.mxu1 %vm13037_vm11, %v13192_v9  ;;  %vm13029_vm13 = vcmp.eq.s32.totalorder %v7608_v41, %v8154_v63  ;;  %vm13066_vm11 = vcmp.eq.s32.totalorder %v7563_v38, %v8203_v56 }
 0x1e7   : > { %6217 = vmatprep.subr.msk.mxu0 %vm13024_vm1, %v13192_v9  ;;  %6137 = vmatprep.subr.msk.mxu1 %vm13036_vm15, %v13192_v9  ;;  %vm13030_vm1 = vcmp.eq.s32.totalorder %v7608_v41, %v8163_v8  ;;  %vm13069_vm15 = vcmp.eq.s32.totalorder %v7563_v38, %v8186_v55 }
 0x1e8   : > { %6218 = vmatpush2.msk.msra.mxu0 %vm13025_vm9, %v13192_v9  ;;  %6138 = vmatpush2.msk.msra.mxu1 %vm13032_vm0, %v13192_v9  ;;  %vm13031_vm9 = vcmp.eq.s32.totalorder %v7623_v42, %v8154_v63  ;;  %vm13039_vm0 = vcmp.eq.s32.totalorder %v7548_v37, %v8186_v55 }
 0x1e9   : > { %6219 = vmatprep.subr.msk.mxu0 %vm13026_vm14, %v13192_v9  ;;  %6139 = vmatprep.subr.msk.mxu1 %vm13027_vm12, %v13192_v9  ;;  %vm13033_vm14 = vcmp.eq.s32.totalorder %v7623_v42, %v8163_v8  ;;  %vm13034_vm12 = vcmp.eq.s32.totalorder %v7638_v43, %v8154_v63 }
 0x1ea   : > { %6220 = vmatpush2.msk.msra.mxu0 %vm13028_vm2, %v13192_v9  ;;  %vm13035_vm2 = vcmp.eq.s32.totalorder %v7638_v43, %v8163_v8 }
 0x1eb   : > { %6221 = vmatprep.subr.msk.mxu0 %vm13029_vm13, %v13192_v9  ;;  %vm13038_vm13 = vcmp.eq.s32.totalorder %v7653_v44, %v8154_v63 }
 0x1ec   : > { %6222 = vmatpush2.msk.msra.mxu0 %vm13030_vm1, %v13192_v9  ;;  %vm13040_vm1 = vcmp.eq.s32.totalorder %v7653_v44, %v8163_v8 }
 0x1ed   : > { %6223 = vmatprep.subr.msk.mxu0 %vm13031_vm9, %v13192_v9  ;;  %vm13041_vm9 = vcmp.eq.s32.totalorder %v7533_v36, %v8203_v56 }
 0x1ee   : > { %6224 = vmatpush2.msk.msra.mxu0 %vm13033_vm14, %v13192_v9  ;;  %vm13042_vm14 = vcmp.eq.s32.totalorder %v8035_v53, %v8154_v63  ;;  %6140 = vmatpush2.msk.msra.mxu1 %vm13041_vm9, %v13192_v9  ;;  %vm13061_vm9 = vcmp.eq.s32.totalorder %v7578_v39, %v8203_v56 }
 0x1ef   : > { %6225 = vmatprep.subr.msk.mxu0 %vm13034_vm12, %v13192_v9  ;;  %vm13045_vm12 = vcmp.eq.s32.totalorder %v8035_v53, %v8163_v8  ;;  %6141 = vmatprep.subr.msk.mxu1 %vm13039_vm0, %v13192_v9  ;;  %vm13044_vm0 = vcmp.eq.s32.totalorder %v8054_v54, %v8163_v8 }
 0x1f0   : > { %6226 = vmatpush2.msk.msra.mxu0 %vm13035_vm2, %v13192_v9  ;;  %vm924_vm2 = vcmp.eq.s32.totalorder %v7548_v37, %v8203_v56 }
 0x1f1   : > { %6227 = vmatprep.subr.msk.mxu0 %vm13038_vm13, %v13192_v9  ;;  %vm13043_vm13 = vcmp.eq.s32.totalorder %v8054_v54, %v8154_v63  ;;  %6142 = vmatpush2.msk.msra.mxu1 %vm924_vm2, %v13192_v9 }
 0x1f2   : > { %6228 = vmatpush2.msk.msra.mxu0 %vm13040_vm1, %v13192_v9  ;;  %6143 = vmatprep.subr.msk.mxu1 %vm13069_vm15, %v13192_v9  ;;  %vm13065_vm1 = vcmp.eq.s32.totalorder %v7578_v39, %v8186_v55 }
 0x1f3   : > { %6229 = vmatprep.subr.msk.mxu0 %vm13042_vm14, %v13192_v9  ;;  %6144 = vmatpush2.msk.msra.mxu1 %vm13066_vm11, %v13192_v9  ;;  %vm13046_vm14 = vcmp.eq.s32.totalorder %v7593_v40, %v8186_v55 }
 0x1f4   : > { %6230 = vmatpush2.msk.msra.mxu0 %vm13045_vm12, %v13192_v9  ;;  %6145 = vmatprep.subr.msk.mxu1 %vm13065_vm1, %v13192_v9  ;;  %vm13049_vm12 = vcmp.eq.s32.totalorder %v7608_v41, %v8203_v56 }
 0x1f5   : > { %6231 = vmatprep.subr.msk.mxu0 %vm13043_vm13, %v13192_v9  ;;  %6146 = vmatpush2.msk.msra.mxu1 %vm13061_vm9, %v13192_v9  ;;  %vm13047_vm13 = vcmp.eq.s32.totalorder %v7593_v40, %v8203_v56 }
 0x1f6   : > { %6232 = vmatpush2.msk.msra.mxu0 %vm13044_vm0, %v13192_v9  ;;  %6147 = vmatprep.subr.msk.mxu1 %vm13046_vm14, %v13192_v9  ;;  %vm13048_vm0 = vcmp.eq.s32.totalorder %v7608_v41, %v8186_v55  ;;  %vm13050_vm14 = vcmp.eq.s32.totalorder %v7623_v42, %v8186_v55 }
 0x1f7   : > { %6246 = vmatprep.subr.msk.mxu0 %vm2074_vm7, %v7694_v47  ;;  %6148 = vmatpush2.msk.msra.mxu1 %vm13047_vm13, %v13192_v9  ;;  %vm13051_vm13 = vcmp.eq.s32.totalorder %v7623_v42, %v8203_v56 }
 0x1f8   : > { %6149 = vmatprep.subr.msk.mxu1 %vm13048_vm0, %v13192_v9  ;;  %vm13052_vm0 = vcmp.eq.s32.totalorder %v7638_v43, %v8186_v55 }
 0x1f9   : > { %6150 = vmatpush2.msk.msra.mxu1 %vm13049_vm12, %v13192_v9  ;;  %vm13053_vm12 = vcmp.eq.s32.totalorder %v7638_v43, %v8203_v56 }
 0x1fa   : > { %6151 = vmatprep.subr.msk.mxu1 %vm13050_vm14, %v13192_v9  ;;  %vm13054_vm14 = vcmp.eq.s32.totalorder %v7653_v44, %v8186_v55 }
 0x1fb   : > { %6152 = vmatpush2.msk.msra.mxu1 %vm13051_vm13, %v13192_v9  ;;  %vm13055_vm13 = vcmp.eq.s32.totalorder %v7653_v44, %v8203_v56 }
 0x1fc   : > { %6153 = vmatprep.subr.msk.mxu1 %vm13052_vm0, %v13192_v9  ;;  %vm13060_vm0 = vcmp.eq.s32.totalorder %v8035_v53, %v8186_v55 }
 0x1fd   : > { %6154 = vmatpush2.msk.msra.mxu1 %vm13053_vm12, %v13192_v9  ;;  %vm13058_vm12 = vcmp.eq.s32.totalorder %v8035_v53, %v8203_v56 }
 0x1fe   : > { %6155 = vmatprep.subr.msk.mxu1 %vm13054_vm14, %v13192_v9  ;;  %vm13057_vm14 = vcmp.eq.s32.totalorder %v8054_v54, %v8186_v55 }
 0x1ff   : > { %6156 = vmatpush2.msk.msra.mxu1 %vm13055_vm13, %v13192_v9  ;;  %vm13056_vm13 = vcmp.eq.s32.totalorder %v8054_v54, %v8203_v56 }
 0x200   : > { %6157 = vmatprep.subr.msk.mxu1 %vm13060_vm0, %v13192_v9 }
 0x201   : > { %6158 = vmatpush2.msk.msra.mxu1 %vm13058_vm12, %v13192_v9 }
 0x202   : > { %6159 = vmatprep.subr.msk.mxu1 %vm13057_vm14, %v13192_v9 }
 0x203   : > { %6160 = vmatpush2.msk.msra.mxu1 %vm13056_vm13, %v13192_v9 }
 0x204   : > { %6235 = vmatprep.subr.msk.mxu1 %vm2074_vm7, %v7223_v16 }
 0x26f   : > { %v2519_v14 = vpop.f32.mrf.mxu0 }
 0x271   : > { %v2521_v57 = vpop.f32.mrf.mxu0 }
 0x273   : > { %v2822_v58 = vpop.f32.mrf.mxu0 }
 0x275   : > { %v2824_v59 = vpop.f32.mrf.mxu0 }
 0x277   : > { %v2448_v60 = vpop.f32.mrf.mxu1  ;;  %v2896_v61 = vpop.f32.mrf.mxu0 }
 0x278   : > { %v8970_v62 = vadd.f32 %v2519_v14, %v2448_v60  ;;  %v2897_v0 = vadd.f32 %v2896_v61, %v2822_v58  ;;  %v7094_v14 = vld [vmem:[%s12812_s6 + $0x8] sm:$0xff]  ;;  %v8990_v60 = vld [vmem:[%s7190_s10] sm:$0xff]  ;;  %v6314_v61 = vld [vmem:[%s12809_s3 + $0x18] sm:$0xf] }
 0x279   : > { %v2450_v7 = vpop.f32.mrf.mxu1  ;;  %v2898_v18 = vpop.f32.mrf.mxu0 }
 0x27a   : > { %v8972_v19 = vadd.f32 %v2521_v57, %v2450_v7  ;;  %v2899_v45 = vadd.f32 %v2898_v18, %v2824_v59  ;;  %v8986_v57 = vrot.slane %v7094_v14, %v1468_v50  ;;  %v1268_v7 = vsub.s32 6, %v7156_v1  ;;  %v7096_v18 = vld [vmem:[%s12812_s6] sm:$0xff] }
 0x27b   : > { %v2597_v48 = vpop.f32.mrf.mxu1 }
 0x27c   : > { %2965 = vmatprep.mubr.f32.mxu0 %v2899_v45  ;;  %13336 = vst [vmem:[#allocation6_spill] sm:$0xff] %v8986_v57  ;;  %v9004_v45 = vrot.slane %v7096_v18, %v1468_v50  ;;  %vm13059_vm13 = vcmp.eq.s32.totalorder %v7272_v23, %v8986_v57  ;;  %v6313_v50 = vld [vmem:[%s12808_s2 + $0x18] sm:$0xf]  ;;  %vm13063_vm12 = vcmp.eq.s32.totalorder %v7275_v24, %v8986_v57 }
 0x27d   : > { %v2599_v52 = vpop.f32.mrf.mxu1  ;;  %2966 = vmatmul.mubr.f32.vlgmr.msra.gmra.mxu0 %v2897_v0  ;;  %vm13067_vm0 = vcmp.eq.s32.totalorder %v7278_v25, %v8986_v57  ;;  %vm13074_vm11 = vcmp.eq.s32.totalorder %v7302_v27, %v8986_v57 }
 0x27e   : > { %6247 = vmatpush1.msk.msra.mxu0 %vm2074_vm7, %v7692_v46  ;;  %3273 = vmatprep.mubr.f32.mxu0 %v13184_v2  ;;  %13337 = vst [vmem:[#allocation7_spill] sm:$0xff] %v9004_v45  ;;  %vm13062_vm14 = vcmp.eq.s32.totalorder %v7272_v23, %v9004_v45 }
 0x27f   : > { %v2671_v6 = vpop.f32.mrf.mxu1  ;;  %6315 = vmatprep.subr.msk.mxu0 %vm2074_vm7, %v7223_v16 }
 0x280   : > { %v2672_v0 = vadd.f32 %v2671_v6, %v2597_v48  ;;  %v6234_v48 = vld [vmem:[%s12809_s3 + $0x10] sm:$0xf]  ;;  %v9043_v6 = vrot.slane %v7096_v18, %v1268_v7 }
 0x281   : > { %v2673_v58 = vpop.f32.mrf.mxu1  ;;  %6248 = vmatmul.mubr.msk.f32.vlgmr.msra.gmra.mxu0 %vm2070_vm10, %v6241_v3  ;;  %v6233_v3 = vld [vmem:[%s12808_s2 + $0x10] sm:$0xf] }
 0x282   : > { %v2674_v59 = vadd.f32 %v2673_v58, %v2599_v52  ;;  %6316 = vmatpush1.msk.msra.mxu0 %vm2074_vm7, %v8990_v60  ;;  %3424 = vmatprep.mubr.f32.mxu0 %v13184_v2  ;;  %v9022_v52 = vrot.slane %v7094_v14, %v1268_v7  ;;  %13339 = vst [vmem:[#allocation9_spill] sm:$0xff] %v9043_v6  ;;  %v6242_v14 = vld [vmem:[%s12809_s3 + $0x14] sm:$0xf] }
 0x283   : > { %6318 = vmatprep.subr.msk.mxu0 %vm2074_vm7, %v7694_v47  ;;  %vm13073_vm1 = vcmp.eq.s32.totalorder %v7272_v23, %v9043_v6  ;;  %vm13077_vm15 = vcmp.eq.s32.totalorder %v7275_v24, %v9043_v6 }
 0x284   : > { %2740 = vmatprep.mubr.f32.mxu1 %v2674_v59  ;;  %13338 = vst [vmem:[#allocation8_spill] sm:$0xff] %v9022_v52  ;;  %vm13068_vm9 = vcmp.eq.s32.totalorder %v7272_v23, %v9022_v52 }
 0x285   : > { %2741 = vmatmul.mubr.f32.vlgmr.msra.gmra.mxu1 %v2672_v0  ;;  %6317 = vmatmul.mubr.msk.f32.vlgmr.msra.gmra.mxu0 %vm2070_vm10, %v6314_v61 }
 0x286   : > { %6236 = vmatpush1.msk.msra.mxu1 %vm2074_vm7, %v8990_v60  ;;  %6319 = vmatpush1.msk.msra.mxu0 %vm2074_vm7, %v7692_v46 }
 0x287   : > { %6238 = vmatprep.subr.msk.mxu1 %vm2074_vm7, %v7694_v47  ;;  %3045 = vmatprep.mubr.f32.mxu1 %v13184_v2 }
 0x288   : > { %3498 = vmatprep.mubr.f32.mxu0 %v13184_v2  ;;  %6321 = vmatprep.subr.msk.mxu0 %vm13059_vm13, %v13192_v9  ;;  %vm13064_vm13 = vcmp.eq.s32.totalorder %v7275_v24, %v9004_v45 }
 0x289   : > { %6237 = vmatmul.mubr.msk.f32.vlgmr.msra.gmra.mxu1 %vm2070_vm10, %v6234_v48  ;;  %6320 = vmatmul.mubr.msk.f32.vlgmr.msra.gmra.mxu0 %vm2070_vm10, %v6313_v50 }
 0x28a   : > { %6239 = vmatpush1.msk.msra.mxu1 %vm2074_vm7, %v7692_v46  ;;  %3119 = vmatprep.mubr.f32.mxu1 %v13184_v2 }
 0x28b   : > { %6243 = vmatprep.subr.msk.mxu1 %vm2074_vm7, %v7223_v16  ;;  %6322 = vmatpush1.msk.msra.mxu0 %vm13062_vm14, %v13192_v9  ;;  %vm13070_vm14 = vcmp.eq.s32.totalorder %v7278_v25, %v9004_v45 }
 0x28c   : > { %6323 = vmatprep.subr.msk.mxu0 %vm13063_vm12, %v13192_v9  ;;  %vm13071_vm12 = vcmp.eq.s32.totalorder %v7287_v26, %v8986_v57 }
 0x28d   : > { %6240 = vmatmul.mubr.msk.f32.vlgmr.msra.gmra.mxu1 %vm2070_vm10, %v6233_v3  ;;  %6324 = vmatpush1.msk.msra.mxu0 %vm13064_vm13, %v13192_v9  ;;  %vm13072_vm13 = vcmp.eq.s32.totalorder %v7287_v26, %v9004_v45 }
 0x28e   : > { %6244 = vmatpush1.msk.msra.mxu1 %vm2074_vm7, %v8990_v60  ;;  %3199 = vmatprep.mubr.f32.mxu1 %v13184_v2 }
 0x28f   : > { %6325 = vmatprep.subr.msk.mxu0 %vm13067_vm0, %v13192_v9  ;;  %6249 = vmatprep.subr.msk.mxu1 %vm13068_vm9, %v13192_v9  ;;  %vm13075_vm0 = vcmp.eq.s32.totalorder %v7275_v24, %v9022_v52  ;;  %vm13076_vm9 = vcmp.eq.s32.totalorder %v7302_v27, %v9004_v45 }
 0x290   : > { %6326 = vmatpush1.msk.msra.mxu0 %vm13070_vm14, %v13192_v9  ;;  %vm13078_vm14 = vcmp.eq.s32.totalorder %v7317_v28, %v8986_v57 }
 0x291   : > { %6245 = vmatmul.mubr.msk.f32.vlgmr.msra.gmra.mxu1 %vm2070_vm10, %v6242_v14  ;;  %6327 = vmatprep.subr.msk.mxu0 %vm13071_vm12, %v13192_v9  ;;  %vm13079_vm12 = vcmp.eq.s32.totalorder %v7278_v25, %v9022_v52 }
 0x292   : > { %6328 = vmatpush1.msk.msra.mxu0 %vm13072_vm13, %v13192_v9  ;;  %6250 = vmatpush1.msk.msra.mxu1 %vm13073_vm1, %v13192_v9  ;;  %vm13080_vm13 = vcmp.eq.s32.totalorder %v7317_v28, %v9004_v45  ;;  %vm13081_vm1 = vcmp.eq.s32.totalorder %v7278_v25, %v9043_v6 }
 0x293   : > { %6329 = vmatprep.subr.msk.mxu0 %vm13074_vm11, %v13192_v9  ;;  %6251 = vmatprep.subr.msk.mxu1 %vm13075_vm0, %v13192_v9  ;;  %vm13082_vm11 = vcmp.eq.s32.totalorder %v7332_v29, %v8986_v57  ;;  %vm13083_vm0 = vcmp.eq.s32.totalorder %v7287_v26, %v9022_v52 }
 0x294   : > { %6330 = vmatpush1.msk.msra.mxu0 %vm13076_vm9, %v13192_v9  ;;  %6252 = vmatpush1.msk.msra.mxu1 %vm13077_vm15, %v13192_v9  ;;  %vm13084_vm9 = vcmp.eq.s32.totalorder %v7332_v29, %v9004_v45  ;;  %vm13085_vm15 = vcmp.eq.s32.totalorder %v7287_v26, %v9043_v6 }
 0x295   : > { %6331 = vmatprep.subr.msk.mxu0 %vm13078_vm14, %v13192_v9  ;;  %6253 = vmatprep.subr.msk.mxu1 %vm13079_vm12, %v13192_v9  ;;  %vm13086_vm14 = vcmp.eq.s32.totalorder %v7347_v30, %v8986_v57  ;;  %vm13087_vm12 = vcmp.eq.s32.totalorder %v7302_v27, %v9022_v52 }
 0x296   : > { %6332 = vmatpush1.msk.msra.mxu0 %vm13080_vm13, %v13192_v9  ;;  %6254 = vmatpush1.msk.msra.mxu1 %vm13081_vm1, %v13192_v9  ;;  %vm13088_vm13 = vcmp.eq.s32.totalorder %v7347_v30, %v9004_v45  ;;  %vm13089_vm1 = vcmp.eq.s32.totalorder %v7302_v27, %v9043_v6 }
 0x297   : > { %6333 = vmatprep.subr.msk.mxu0 %vm13082_vm11, %v13192_v9  ;;  %6255 = vmatprep.subr.msk.mxu1 %vm13083_vm0, %v13192_v9  ;;  %vm13090_vm11 = vcmp.eq.s32.totalorder %v7166_v4, %v8986_v57  ;;  %vm13091_vm0 = vcmp.eq.s32.totalorder %v7317_v28, %v9022_v52 }
 0x298   : > { %6334 = vmatpush1.msk.msra.mxu0 %vm13084_vm9, %v13192_v9  ;;  %6256 = vmatpush1.msk.msra.mxu1 %vm13085_vm15, %v13192_v9  ;;  %vm13092_vm9 = vcmp.eq.s32.totalorder %v7166_v4, %v9004_v45  ;;  %vm13093_vm15 = vcmp.eq.s32.totalorder %v7317_v28, %v9043_v6 }
 0x299   : > { %6335 = vmatprep.subr.msk.mxu0 %vm13086_vm14, %v13192_v9  ;;  %6257 = vmatprep.subr.msk.mxu1 %vm13087_vm12, %v13192_v9  ;;  %vm13094_vm14 = vcmp.eq.s32.totalorder %v7194_v10, %v8986_v57  ;;  %vm13095_vm12 = vcmp.eq.s32.totalorder %v7332_v29, %v9022_v52 }
 0x29a   : > { %6336 = vmatpush1.msk.msra.mxu0 %vm13088_vm13, %v13192_v9  ;;  %6258 = vmatpush1.msk.msra.mxu1 %vm13089_vm1, %v13192_v9  ;;  %vm13096_vm13 = vcmp.eq.s32.totalorder %v7194_v10, %v9004_v45  ;;  %vm13097_vm1 = vcmp.eq.s32.totalorder %v7332_v29, %v9043_v6 }
 0x29b   : > { %6337 = vmatprep.subr.msk.mxu0 %vm13090_vm11, %v13192_v9  ;;  %6259 = vmatprep.subr.msk.mxu1 %vm13091_vm0, %v13192_v9  ;;  %vm13098_vm11 = vcmp.eq.s32.totalorder %v7197_v11, %v8986_v57  ;;  %vm13099_vm0 = vcmp.eq.s32.totalorder %v7347_v30, %v9022_v52 }
 0x29c   : > { %6338 = vmatpush1.msk.msra.mxu0 %vm13092_vm9, %v13192_v9  ;;  %6260 = vmatpush1.msk.msra.mxu1 %vm13093_vm15, %v13192_v9  ;;  %vm13100_vm9 = vcmp.eq.s32.totalorder %v7197_v11, %v9004_v45  ;;  %vm13101_vm15 = vcmp.eq.s32.totalorder %v7347_v30, %v9043_v6 }
 0x29d   : > { %6339 = vmatprep.subr.msk.mxu0 %vm13094_vm14, %v13192_v9  ;;  %6261 = vmatprep.subr.msk.mxu1 %vm13095_vm12, %v13192_v9  ;;  %vm13102_vm14 = vcmp.eq.s32.totalorder %v7201_v12, %v8986_v57  ;;  %vm13103_vm12 = vcmp.eq.s32.totalorder %v7166_v4, %v9022_v52 }
 0x29e   : > { %6340 = vmatpush1.msk.msra.mxu0 %vm13096_vm13, %v13192_v9  ;;  %6262 = vmatpush1.msk.msra.mxu1 %vm13097_vm1, %v13192_v9  ;;  %vm13104_vm13 = vcmp.eq.s32.totalorder %v7201_v12, %v9004_v45  ;;  %vm13105_vm1 = vcmp.eq.s32.totalorder %v7166_v4, %v9043_v6 }
 0x29f   : > { %6341 = vmatprep.subr.msk.mxu0 %vm13098_vm11, %v13192_v9  ;;  %6263 = vmatprep.subr.msk.mxu1 %vm13099_vm0, %v13192_v9  ;;  %vm13106_vm11 = vcmp.eq.s32.totalorder %v7207_v13, %v8986_v57  ;;  %vm13107_vm0 = vcmp.eq.s32.totalorder %v7194_v10, %v9022_v52 }
 0x2a0   : > { %6342 = vmatpush1.msk.msra.mxu0 %vm13100_vm9, %v13192_v9  ;;  %6264 = vmatpush1.msk.msra.mxu1 %vm13101_vm15, %v13192_v9  ;;  %vm13108_vm9 = vcmp.eq.s32.totalorder %v7207_v13, %v9004_v45  ;;  %vm13109_vm15 = vcmp.eq.s32.totalorder %v7194_v10, %v9043_v6 }
 0x2a1   : > { %6343 = vmatprep.subr.msk.mxu0 %vm13102_vm14, %v13192_v9  ;;  %6265 = vmatprep.subr.msk.mxu1 %vm13103_vm12, %v13192_v9  ;;  %vm13110_vm14 = vcmp.eq.s32.totalorder %v7217_v15, %v8986_v57  ;;  %vm13111_vm12 = vcmp.eq.s32.totalorder %v7197_v11, %v9022_v52 }
 0x2a2   : > { %6344 = vmatpush1.msk.msra.mxu0 %vm13104_vm13, %v13192_v9  ;;  %6266 = vmatpush1.msk.msra.mxu1 %vm13105_vm1, %v13192_v9  ;;  %vm13112_vm13 = vcmp.eq.s32.totalorder %v7217_v15, %v9004_v45  ;;  %vm13113_vm1 = vcmp.eq.s32.totalorder %v7197_v11, %v9043_v6 }
 0x2a3   : > { %6345 = vmatprep.subr.msk.mxu0 %vm13106_vm11, %v13192_v9  ;;  %6267 = vmatprep.subr.msk.mxu1 %vm13107_vm0, %v13192_v9  ;;  %vm13114_vm11 = vcmp.eq.s32.totalorder %v7228_v17, %v8986_v57  ;;  %vm13115_vm0 = vcmp.eq.s32.totalorder %v7201_v12, %v9022_v52 }
 0x2a4   : > { %6346 = vmatpush1.msk.msra.mxu0 %vm13108_vm9, %v13192_v9  ;;  %6268 = vmatpush1.msk.msra.mxu1 %vm13109_vm15, %v13192_v9  ;;  %vm13116_vm9 = vcmp.eq.s32.totalorder %v7228_v17, %v9004_v45  ;;  %vm13117_vm15 = vcmp.eq.s32.totalorder %v7201_v12, %v9043_v6 }
 0x2a5   : > { %6347 = vmatprep.subr.msk.mxu0 %vm13110_vm14, %v13192_v9  ;;  %6269 = vmatprep.subr.msk.mxu1 %vm13111_vm12, %v13192_v9  ;;  %vm13118_vm14 = vcmp.eq.s32.totalorder %v7156_v1, %v8986_v57  ;;  %vm13119_vm12 = vcmp.eq.s32.totalorder %v7207_v13, %v9022_v52 }
 0x2a6   : > { %6348 = vmatpush1.msk.msra.mxu0 %vm13112_vm13, %v13192_v9  ;;  %6270 = vmatpush1.msk.msra.mxu1 %vm13113_vm1, %v13192_v9  ;;  %vm13120_vm13 = vcmp.eq.s32.totalorder %v7156_v1, %v9004_v45  ;;  %vm13121_vm1 = vcmp.eq.s32.totalorder %v7207_v13, %v9043_v6 }
 0x2a7   : > { %6349 = vmatprep.subr.msk.mxu0 %vm13114_vm11, %v13192_v9  ;;  %6271 = vmatprep.subr.msk.mxu1 %vm13115_vm0, %v13192_v9  ;;  %vm13122_vm11 = vcmp.eq.s32.totalorder %v7458_v31, %v8986_v57  ;;  %vm13123_vm0 = vcmp.eq.s32.totalorder %v7217_v15, %v9022_v52 }
 0x2a8   : > { %6350 = vmatpush1.msk.msra.mxu0 %vm13116_vm9, %v13192_v9  ;;  %6272 = vmatpush1.msk.msra.mxu1 %vm13117_vm15, %v13192_v9  ;;  %vm13124_vm9 = vcmp.eq.s32.totalorder %v7458_v31, %v9004_v45  ;;  %vm13125_vm15 = vcmp.eq.s32.totalorder %v7217_v15, %v9043_v6 }
 0x2a9   : > { %6351 = vmatprep.subr.msk.mxu0 %vm13118_vm14, %v13192_v9  ;;  %6273 = vmatprep.subr.msk.mxu1 %vm13119_vm12, %v13192_v9  ;;  %vm13126_vm14 = vcmp.eq.s32.totalorder %v7473_v32, %v8986_v57  ;;  %vm13127_vm12 = vcmp.eq.s32.totalorder %v7228_v17, %v9022_v52 }
 0x2aa   : > { %6352 = vmatpush1.msk.msra.mxu0 %vm13120_vm13, %v13192_v9  ;;  %6274 = vmatpush1.msk.msra.mxu1 %vm13121_vm1, %v13192_v9  ;;  %vm13128_vm13 = vcmp.eq.s32.totalorder %v7473_v32, %v9004_v45  ;;  %vm13129_vm1 = vcmp.eq.s32.totalorder %v7228_v17, %v9043_v6 }
 0x2ab   : > { %6353 = vmatprep.subr.msk.mxu0 %vm13122_vm11, %v13192_v9  ;;  %6275 = vmatprep.subr.msk.mxu1 %vm13123_vm0, %v13192_v9  ;;  %vm13130_vm11 = vcmp.eq.s32.totalorder %v7488_v33, %v8986_v57  ;;  %vm13131_vm0 = vcmp.eq.s32.totalorder %v7156_v1, %v9022_v52 }
 0x2ac   : > { %6354 = vmatpush2.msk.msra.mxu0 %vm13124_vm9, %v13192_v9  ;;  %6276 = vmatpush1.msk.msra.mxu1 %vm13125_vm15, %v13192_v9  ;;  %vm13132_vm9 = vcmp.eq.s32.totalorder %v7488_v33, %v9004_v45  ;;  %vm13133_vm15 = vcmp.eq.s32.totalorder %v7156_v1, %v9043_v6 }
 0x2ad   : > { %6355 = vmatprep.subr.msk.mxu0 %vm13126_vm14, %v13192_v9  ;;  %6277 = vmatprep.subr.msk.mxu1 %vm13127_vm12, %v13192_v9  ;;  %vm13134_vm14 = vcmp.eq.s32.totalorder %v7503_v34, %v8986_v57  ;;  %vm13135_vm12 = vcmp.eq.s32.totalorder %v7458_v31, %v9022_v52 }
 0x2ae   : > { %6356 = vmatpush2.msk.msra.mxu0 %vm13128_vm13, %v13192_v9  ;;  %6278 = vmatpush1.msk.msra.mxu1 %vm13129_vm1, %v13192_v9  ;;  %vm13136_vm13 = vcmp.eq.s32.totalorder %v7503_v34, %v9004_v45  ;;  %vm13137_vm1 = vcmp.eq.s32.totalorder %v7458_v31, %v9043_v6 }
 0x2af   : > { %6357 = vmatprep.subr.msk.mxu0 %vm13130_vm11, %v13192_v9  ;;  %6279 = vmatprep.subr.msk.mxu1 %vm13131_vm0, %v13192_v9  ;;  %vm13138_vm11 = vcmp.eq.s32.totalorder %v7518_v35, %v8986_v57  ;;  %vm13139_vm0 = vcmp.eq.s32.totalorder %v7473_v32, %v9022_v52 }
 0x2b0   : > { %6358 = vmatpush2.msk.msra.mxu0 %vm13132_vm9, %v13192_v9  ;;  %6280 = vmatpush1.msk.msra.mxu1 %vm13133_vm15, %v13192_v9  ;;  %vm13140_vm9 = vcmp.eq.s32.totalorder %v7518_v35, %v9004_v45  ;;  %vm13217_vm15 = vcmp.eq.s32.totalorder %v7473_v32, %v9043_v6 }
 0x2b1   : > { %6359 = vmatprep.subr.msk.mxu0 %vm13134_vm14, %v13192_v9  ;;  %6281 = vmatprep.subr.msk.mxu1 %vm13135_vm12, %v13192_v9  ;;  %vm13141_vm14 = vcmp.eq.s32.totalorder %v7533_v36, %v8986_v57  ;;  %vm13214_vm12 = vcmp.eq.s32.totalorder %v7488_v33, %v9022_v52 }
 0x2b2   : > { %6360 = vmatpush2.msk.msra.mxu0 %vm13136_vm13, %v13192_v9  ;;  %6282 = vmatpush2.msk.msra.mxu1 %vm13137_vm1, %v13192_v9  ;;  %vm13142_vm13 = vcmp.eq.s32.totalorder %v7533_v36, %v9004_v45  ;;  %vm13144_vm1 = vcmp.eq.s32.totalorder %v7488_v33, %v9043_v6 }
 0x2b3   : > { %6361 = vmatprep.subr.msk.mxu0 %vm13138_vm11, %v13192_v9  ;;  %6283 = vmatprep.subr.msk.mxu1 %vm13139_vm0, %v13192_v9  ;;  %vm13143_vm11 = vcmp.eq.s32.totalorder %v7548_v37, %v8986_v57  ;;  %vm13145_vm0 = vcmp.eq.s32.totalorder %v7503_v34, %v9022_v52 }
 0x2b4   : > { %6362 = vmatpush2.msk.msra.mxu0 %vm13140_vm9, %v13192_v9  ;;  %6284 = vmatpush2.msk.msra.mxu1 %vm13217_vm15, %v13192_v9  ;;  %vm13147_vm9 = vcmp.eq.s32.totalorder %v7548_v37, %v9004_v45 }
 0x2b5   : > { %6363 = vmatprep.subr.msk.mxu0 %vm13141_vm14, %v13192_v9  ;;  %6285 = vmatprep.subr.msk.mxu1 %vm13214_vm12, %v13192_v9  ;;  %vm13146_vm14 = vcmp.eq.s32.totalorder %v7563_v38, %v8986_v57 }
 0x2b6   : > { %6364 = vmatpush2.msk.msra.mxu0 %vm13142_vm13, %v13192_v9  ;;  %6286 = vmatpush2.msk.msra.mxu1 %vm13144_vm1, %v13192_v9  ;;  %vm13148_vm13 = vcmp.eq.s32.totalorder %v7503_v34, %v9043_v6  ;;  %vm13213_vm1 = vcmp.eq.s32.totalorder %v7518_v35, %v9022_v52 }
 0x2b7   : > { %6365 = vmatprep.subr.msk.mxu0 %vm13143_vm11, %v13192_v9  ;;  %6287 = vmatprep.subr.msk.mxu1 %vm13145_vm0, %v13192_v9  ;;  %vm13150_vm11 = vcmp.eq.s32.totalorder %v7563_v38, %v9004_v45  ;;  %vm13149_vm0 = vcmp.eq.s32.totalorder %v7578_v39, %v8986_v57 }
 0x2b8   : > { %6366 = vmatpush2.msk.msra.mxu0 %vm13147_vm9, %v13192_v9  ;;  %6288 = vmatpush2.msk.msra.mxu1 %vm13148_vm13, %v13192_v9  ;;  %vm13152_vm9 = vcmp.eq.s32.totalorder %v7578_v39, %v9004_v45  ;;  %vm13155_vm13 = vcmp.eq.s32.totalorder %v7533_v36, %v9022_v52 }
 0x2b9   : > { %6367 = vmatprep.subr.msk.mxu0 %vm13146_vm14, %v13192_v9  ;;  %6289 = vmatprep.subr.msk.mxu1 %vm13213_vm1, %v13192_v9  ;;  %vm13151_vm14 = vcmp.eq.s32.totalorder %v7518_v35, %v9043_v6 }
 0x2ba   : > { %6368 = vmatpush2.msk.msra.mxu0 %vm13150_vm11, %v13192_v9  ;;  %6290 = vmatpush2.msk.msra.mxu1 %vm13151_vm14, %v13192_v9  ;;  %vm13154_vm11 = vcmp.eq.s32.totalorder %v7533_v36, %v9043_v6  ;;  %vm13156_vm14 = vcmp.eq.s32.totalorder %v7593_v40, %v9004_v45 }
 0x2bb   : > { %6369 = vmatprep.subr.msk.mxu0 %vm13149_vm0, %v13192_v9  ;;  %vm13153_vm0 = vcmp.eq.s32.totalorder %v7593_v40, %v8986_v57  ;;  %6291 = vmatprep.subr.msk.mxu1 %vm13155_vm13, %v13192_v9  ;;  %vm13160_vm13 = vcmp.eq.s32.totalorder %v7608_v41, %v9004_v45 }
 0x2bc   : > { %6370 = vmatpush2.msk.msra.mxu0 %vm13152_vm9, %v13192_v9  ;;  %vm13159_vm9 = vcmp.eq.s32.totalorder %v7548_v37, %v9022_v52  ;;  %6292 = vmatpush2.msk.msra.mxu1 %vm13154_vm11, %v13192_v9  ;;  %vm13158_vm11 = vcmp.eq.s32.totalorder %v7548_v37, %v9043_v6 }
 0x2bd   : > { %6371 = vmatprep.subr.msk.mxu0 %vm13153_vm0, %v13192_v9  ;;  %vm13157_vm0 = vcmp.eq.s32.totalorder %v7608_v41, %v8986_v57  ;;  %6293 = vmatprep.subr.msk.mxu1 %vm13159_vm9, %v13192_v9  ;;  %vm13163_vm9 = vcmp.eq.s32.totalorder %v7623_v42, %v9004_v45 }
 0x2be   : > { %6372 = vmatpush2.msk.msra.mxu0 %vm13156_vm14, %v13192_v9  ;;  %vm13209_vm14 = vcmp.eq.s32.totalorder %v7563_v38, %v9022_v52  ;;  %6294 = vmatpush2.msk.msra.mxu1 %vm13158_vm11, %v13192_v9  ;;  %vm13162_vm11 = vcmp.eq.s32.totalorder %v7563_v38, %v9043_v6 }
 0x2bf   : > { %6373 = vmatprep.subr.msk.mxu0 %vm13157_vm0, %v13192_v9  ;;  %vm13161_vm0 = vcmp.eq.s32.totalorder %v7623_v42, %v8986_v57  ;;  %6295 = vmatprep.subr.msk.mxu1 %vm13209_vm14, %v13192_v9 }
 0x2c0   : > { %6374 = vmatpush2.msk.msra.mxu0 %vm13160_vm13, %v13192_v9  ;;  %6296 = vmatpush2.msk.msra.mxu1 %vm13162_vm11, %v13192_v9  ;;  %vm13164_vm13 = vcmp.eq.s32.totalorder %v7578_v39, %v9022_v52  ;;  %vm13166_vm11 = vcmp.eq.s32.totalorder %v7578_v39, %v9043_v6 }
 0x2c1   : > { %6375 = vmatprep.subr.msk.mxu0 %vm13161_vm0, %v13192_v9  ;;  %vm13165_vm0 = vcmp.eq.s32.totalorder %v7638_v43, %v8986_v57  ;;  %6297 = vmatprep.subr.msk.mxu1 %vm13164_vm13, %v13192_v9  ;;  %vm13168_vm13 = vcmp.eq.s32.totalorder %v7593_v40, %v9022_v52 }
 0x2c2   : > { %6376 = vmatpush2.msk.msra.mxu0 %vm13163_vm9, %v13192_v9  ;;  %vm13167_vm9 = vcmp.eq.s32.totalorder %v7638_v43, %v9004_v45  ;;  %6298 = vmatpush2.msk.msra.mxu1 %vm13166_vm11, %v13192_v9  ;;  %vm13170_vm11 = vcmp.eq.s32.totalorder %v7593_v40, %v9043_v6 }
 0x2c3   : > { %6377 = vmatprep.subr.msk.mxu0 %vm13165_vm0, %v13192_v9  ;;  %vm13169_vm0 = vcmp.eq.s32.totalorder %v7653_v44, %v8986_v57  ;;  %6299 = vmatprep.subr.msk.mxu1 %vm13168_vm13, %v13192_v9  ;;  %vm13172_vm13 = vcmp.eq.s32.totalorder %v7608_v41, %v9022_v52 }
 0x2c4   : > { %6378 = vmatpush2.msk.msra.mxu0 %vm13167_vm9, %v13192_v9  ;;  %vm13171_vm9 = vcmp.eq.s32.totalorder %v7653_v44, %v9004_v45  ;;  %6300 = vmatpush2.msk.msra.mxu1 %vm13170_vm11, %v13192_v9  ;;  %vm13174_vm11 = vcmp.eq.s32.totalorder %v7608_v41, %v9043_v6 }
 0x2c5   : > { %6379 = vmatprep.subr.msk.mxu0 %vm13169_vm0, %v13192_v9  ;;  %vm13173_vm0 = vcmp.eq.s32.totalorder %v8035_v53, %v8986_v57  ;;  %6301 = vmatprep.subr.msk.mxu1 %vm13172_vm13, %v13192_v9  ;;  %vm13176_vm13 = vcmp.eq.s32.totalorder %v7623_v42, %v9022_v52 }
 0x2c6   : > { %6380 = vmatpush2.msk.msra.mxu0 %vm13171_vm9, %v13192_v9  ;;  %vm13175_vm9 = vcmp.eq.s32.totalorder %v8035_v53, %v9004_v45  ;;  %6302 = vmatpush2.msk.msra.mxu1 %vm13174_vm11, %v13192_v9  ;;  %vm13180_vm11 = vcmp.eq.s32.totalorder %v7623_v42, %v9043_v6 }
 0x2c7   : > { %6381 = vmatprep.subr.msk.mxu0 %vm13173_vm0, %v13192_v9  ;;  %vm13177_vm0 = vcmp.eq.s32.totalorder %v8054_v54, %v8986_v57  ;;  %6303 = vmatprep.subr.msk.mxu1 %vm13176_vm13, %v13192_v9  ;;  %vm13179_vm13 = vcmp.eq.s32.totalorder %v7638_v43, %v9022_v52 }
 0x2c8   : > { %6382 = vmatpush2.msk.msra.mxu0 %vm13175_vm9, %v13192_v9  ;;  %vm13178_vm9 = vcmp.eq.s32.totalorder %v8054_v54, %v9004_v45  ;;  %6304 = vmatpush2.msk.msra.mxu1 %vm13180_vm11, %v13192_v9  ;;  %vm13208_vm11 = vcmp.eq.s32.totalorder %v8035_v53, %v9022_v52 }
 0x2c9   : > { %6383 = vmatprep.subr.msk.mxu0 %vm13177_vm0, %v13192_v9  ;;  %6305 = vmatprep.subr.msk.mxu1 %vm13179_vm13, %v13192_v9  ;;  %vm13181_vm0 = vcmp.eq.s32.totalorder %v7638_v43, %v9043_v6  ;;  %vm13183_vm13 = vcmp.eq.s32.totalorder %v7653_v44, %v9043_v6 }
 0x2ca   : > { %6384 = vmatpush2.msk.msra.mxu0 %vm13178_vm9, %v13192_v9  ;;  %6306 = vmatpush2.msk.msra.mxu1 %vm13181_vm0, %v13192_v9  ;;  %vm13182_vm9 = vcmp.eq.s32.totalorder %v7653_v44, %v9022_v52  ;;  %vm13206_vm0 = vcmp.eq.s32.totalorder %v8035_v53, %v9043_v6 }
 0x2cb   : > { %6459 = vmatprep.subr.msk.mxu0 %vm2074_vm7, %v7223_v16  ;;  %6307 = vmatprep.subr.msk.mxu1 %vm13182_vm9, %v13192_v9  ;;  %vm13205_vm9 = vcmp.eq.s32.totalorder %v8054_v54, %v9022_v52 }
 0x2cc   : > { %6308 = vmatpush2.msk.msra.mxu1 %vm13183_vm13, %v13192_v9  ;;  %vm13204_vm13 = vcmp.eq.s32.totalorder %v8054_v54, %v9043_v6 }
 0x2cd   : > { %6309 = vmatprep.subr.msk.mxu1 %vm13208_vm11, %v13192_v9 }
 0x2ce   : > { %6310 = vmatpush2.msk.msra.mxu1 %vm13206_vm0, %v13192_v9 }
 0x2cf   : > { %6311 = vmatprep.subr.msk.mxu1 %vm13205_vm9, %v13192_v9 }
 0x2d0   : > { %6312 = vmatpush2.msk.msra.mxu1 %vm13204_vm13, %v13192_v9 }
 0x2d1   : > { %6387 = vmatprep.subr.msk.mxu1 %vm2074_vm7, %v7223_v16  ;;  %v301_v16 = vld [vmem:[%s12812_s6 + $0x18] sm:$0x3] }
 0x33d   : > { %v2967_v58 = vpop.f32.mrf.mxu0 }
 0x33f   : > { %v2969_v59 = vpop.f32.mrf.mxu0 }
 0x341   : > { %v3275_v61 = vpop.f32.mrf.mxu0 }
 0x343   : > { %v3277_v0 = vpop.f32.mrf.mxu0 }
 0x345   : > { %v2742_v7 = vpop.f32.mrf.mxu1  ;;  %v3426_v18 = vpop.f32.mrf.mxu0 }
 0x346   : > { %v2747_v48 = vadd.f32 %v2742_v7, %v8970_v62  ;;  %v9821_v62 = vrot.slane %v301_v16, %v7261_v20 }
 0x347   : > { %v2744_v50 = vpop.f32.mrf.mxu1  ;;  %v3428_v3 = vpop.f32.mrf.mxu0 }
 0x348   : > { %v2972_v14 = vadd.f32 %v2967_v58, %v2747_v48  ;;  %v2748_v2 = vadd.f32 %v2744_v50, %v8972_v19  ;;  %v300_v19 = vld [vmem:[%s12812_s6 + $0x10] sm:$0x3]  ;;  %vm13207_vm13 = vcmp.eq.s32.totalorder %v7272_v23, %v9821_v62  ;;  %vm13211_vm0 = vcmp.eq.s32.totalorder %v7275_v24, %v9821_v62 }
 0x349   : > { %v3047_v45 = vpop.f32.mrf.mxu1  ;;  %v3500_v57 = vpop.f32.mrf.mxu0  ;;  %vm13215_vm11 = vcmp.eq.s32.totalorder %v7278_v25, %v9821_v62  ;;  %vm13222_vm12 = vcmp.eq.s32.totalorder %v7302_v27, %v9821_v62 }
 0x34a   : > { %v2973_v6 = vadd.f32 %v2969_v59, %v2748_v2  ;;  %v3501_v9 = vadd.f32 %v3500_v57, %v3426_v18  ;;  %v13340_v57 = vmov 0.0   ;;  %v13341_v18 = vmov 1.0  }
 0x34b   : > { %v3049_v52 = vpop.f32.mrf.mxu1  ;;  %v3502_v8 = vpop.f32.mrf.mxu0 }
 0x34c   : > { %v3503_v63 = vadd.f32 %v3502_v8, %v3428_v3  ;;  %v6458_v8 = vld [vmem:[%s12809_s3 + $0x20] sm:$0xf] }
 0x34d   : > { %v3121_v56 = vpop.f32.mrf.mxu1 }
 0x34e   : > { %v3122_v51 = vadd.f32 %v3121_v56, %v3047_v45  ;;  %3569 = vmatprep.mubr.f32.mxu0 %v3503_v63 }
 0x34f   : > { %v3123_v58 = vpop.f32.mrf.mxu1  ;;  %3570 = vmatmul.mubr.f32.vlgmr.msra.gmra.mxu0 %v3501_v9  ;;  %v9839_v9 = vrot.slane %v300_v19, %v7261_v20  ;;  %v9855_v20 = vrot.slane %v301_v16, %v7169_v5 }
 0x350   : > { %v3124_v2 = vadd.f32 %v3123_v58, %v3049_v52  ;;  %6460 = vmatpush1.msk.msra.mxu0 %vm2074_vm7, %v8990_v60  ;;  %3874 = vmatprep.mubr.f32.mxu0 %v13340_v57  ;;  %v9832_v63 = vadd.f32 %v3122_v51, %v2972_v14  ;;  %v6457_v51 = vld [vmem:[%s12808_s2 + $0x20] sm:$0xf] }
 0x351   : > { %6462 = vmatprep.subr.msk.mxu0 %vm2074_vm7, %v7694_v47  ;;  %v3201_v56 = vpop.f32.mrf.mxu1  ;;  %vm13210_vm9 = vcmp.eq.s32.totalorder %v7272_v23, %v9839_v9  ;;  %vm13216_vm14 = vcmp.eq.s32.totalorder %v7272_v23, %v9855_v20 }
 0x352   : > { %v9841_v45 = vadd.f32 %v3124_v2, %v2973_v6  ;;  %v3276_v7 = vadd.f32 %v3275_v61, %v3201_v56  ;;  %v6386_v6 = vld [vmem:[%s12809_s3 + $0x1c] sm:$0xf]  ;;  %v9871_v61 = vrot.slane %v300_v19, %v7169_v5 }
 0x353   : > { %v3203_v52 = vpop.f32.mrf.mxu1  ;;  %6461 = vmatmul.mubr.msk.f32.vlgmr.msra.gmra.mxu0 %vm2070_vm10, %v6458_v8  ;;  %v6385_v5 = vld [vmem:[%s12808_s2 + $0x1c] sm:$0xf] }
 0x354   : > { %v3278_v59 = vadd.f32 %v3277_v0, %v3203_v52  ;;  %6463 = vmatpush1.msk.msra.mxu0 %vm2074_vm7, %v7692_v46  ;;  %3948 = vmatprep.mubr.f32.mxu0 %v13340_v57  ;;  %vm13221_vm1 = vcmp.eq.s32.totalorder %v7272_v23, %v9871_v61  ;;  %vm13225_vm15 = vcmp.eq.s32.totalorder %v7275_v24, %v9871_v61 }
 0x355   : > { %6465 = vmatprep.subr.msk.mxu0 %vm13207_vm13, %v13341_v18  ;;  %vm13212_vm13 = vcmp.eq.s32.totalorder %v7275_v24, %v9839_v9 }
 0x356   : > { %3344 = vmatprep.mubr.f32.mxu1 %v3278_v59 }
 0x357   : > { %3345 = vmatmul.mubr.f32.vlgmr.msra.gmra.mxu1 %v3276_v7  ;;  %6464 = vmatmul.mubr.msk.f32.vlgmr.msra.gmra.mxu0 %vm2070_vm10, %v6457_v51 }
 0x358   : > { %6388 = vmatpush1.msk.msra.mxu1 %vm2074_vm7, %v8990_v60  ;;  %3649 = vmatprep.mubr.f32.mxu1 %v13340_v57  ;;  %v7076_v60 = vld [vmem:[%s12811_s5 + $0x4] sm:$0xf] }
 0x359   : > { %6390 = vmatprep.subr.msk.mxu1 %vm2074_vm7, %v7694_v47  ;;  %6466 = vmatpush1.msk.msra.mxu0 %vm13210_vm9, %v13341_v18  ;;  %vm13218_vm9 = vcmp.eq.s32.totalorder %v7278_v25, %v9839_v9  ;;  %v7107_v47 = vmov 0  }
 0x35a   : > { %6467 = vmatprep.subr.msk.mxu0 %vm13211_vm0, %v13341_v18  ;;  %vm13219_vm0 = vcmp.eq.s32.totalorder %v7287_v26, %v9821_v62  ;;  %7092 = vset.pattern.permute.xlu0 %v7107_v47 }
 0x35b   : > { %6389 = vmatmul.mubr.msk.f32.vlgmr.msra.gmra.mxu1 %vm2070_vm10, %v6386_v6  ;;  %6468 = vmatpush1.msk.msra.mxu0 %vm13212_vm13, %v13341_v18  ;;  %vm13220_vm13 = vcmp.eq.s32.totalorder %v7287_v26, %v9839_v9 }
 0x35c   : > { %6391 = vmatpush1.msk.msra.mxu1 %vm2074_vm7, %v7692_v46  ;;  %3723 = vmatprep.mubr.f32.mxu1 %v13340_v57  ;;  %v4028_v46 = vld [vmem:[%s12811_s5] sm:$0xf] }
 0x35d   : > { %6469 = vmatprep.subr.msk.mxu0 %vm13215_vm11, %v13341_v18  ;;  %6393 = vmatprep.subr.msk.mxu1 %vm13216_vm14, %v13341_v18  ;;  %vm13223_vm11 = vcmp.eq.s32.totalorder %v7275_v24, %v9855_v20  ;;  %vm13224_vm14 = vcmp.eq.s32.totalorder %v7302_v27, %v9839_v9 }
 0x35e   : > { %6470 = vmatpush1.msk.msra.mxu0 %vm13218_vm9, %v13341_v18  ;;  %vm13226_vm9 = vcmp.eq.s32.totalorder %v7317_v28, %v9821_v62  ;;  %4031 = vperm.xlu0 %7092, %v4028_v46  }
 0x35f   : > { %6392 = vmatmul.mubr.msk.f32.vlgmr.msra.gmra.mxu1 %vm2070_vm10, %v6385_v5  ;;  %6471 = vmatprep.subr.msk.mxu0 %vm13219_vm0, %v13341_v18  ;;  %vm13227_vm0 = vcmp.eq.s32.totalorder %v7278_v25, %v9855_v20 }
 0x360   : > { %6472 = vmatpush1.msk.msra.mxu0 %vm13220_vm13, %v13341_v18  ;;  %6394 = vmatpush1.msk.msra.mxu1 %vm13221_vm1, %v13341_v18  ;;  %vm13228_vm13 = vcmp.eq.s32.totalorder %v7317_v28, %v9839_v9  ;;  %vm13229_vm1 = vcmp.eq.s32.totalorder %v7278_v25, %v9871_v61 }
 0x361   : > { %6473 = vmatprep.subr.msk.mxu0 %vm13222_vm12, %v13341_v18  ;;  %6395 = vmatprep.subr.msk.mxu1 %vm13223_vm11, %v13341_v18  ;;  %vm13230_vm12 = vcmp.eq.s32.totalorder %v7332_v29, %v9821_v62  ;;  %vm13231_vm11 = vcmp.eq.s32.totalorder %v7287_v26, %v9855_v20 }
 0x362   : > { %6474 = vmatpush1.msk.msra.mxu0 %vm13224_vm14, %v13341_v18  ;;  %6396 = vmatpush1.msk.msra.mxu1 %vm13225_vm15, %v13341_v18  ;;  %vm13232_vm14 = vcmp.eq.s32.totalorder %v7332_v29, %v9839_v9  ;;  %vm13233_vm15 = vcmp.eq.s32.totalorder %v7287_v26, %v9871_v61 }
 0x363   : > { %6475 = vmatprep.subr.msk.mxu0 %vm13226_vm9, %v13341_v18  ;;  %6397 = vmatprep.subr.msk.mxu1 %vm13227_vm0, %v13341_v18  ;;  %vm13234_vm9 = vcmp.eq.s32.totalorder %v7347_v30, %v9821_v62  ;;  %vm13235_vm0 = vcmp.eq.s32.totalorder %v7302_v27, %v9855_v20 }
 0x364   : > { %6476 = vmatpush1.msk.msra.mxu0 %vm13228_vm13, %v13341_v18  ;;  %6398 = vmatpush1.msk.msra.mxu1 %vm13229_vm1, %v13341_v18  ;;  %vm13236_vm13 = vcmp.eq.s32.totalorder %v7347_v30, %v9839_v9  ;;  %vm13237_vm1 = vcmp.eq.s32.totalorder %v7302_v27, %v9871_v61 }
 0x365   : > { %6477 = vmatprep.subr.msk.mxu0 %vm13230_vm12, %v13341_v18  ;;  %6399 = vmatprep.subr.msk.mxu1 %vm13231_vm11, %v13341_v18  ;;  %vm13238_vm12 = vcmp.eq.s32.totalorder %v7166_v4, %v9821_v62  ;;  %vm13239_vm11 = vcmp.eq.s32.totalorder %v7317_v28, %v9855_v20 }
 0x366   : > { %6478 = vmatpush1.msk.msra.mxu0 %vm13232_vm14, %v13341_v18  ;;  %6400 = vmatpush1.msk.msra.mxu1 %vm13233_vm15, %v13341_v18  ;;  %vm13240_vm14 = vcmp.eq.s32.totalorder %v7166_v4, %v9839_v9  ;;  %vm13241_vm15 = vcmp.eq.s32.totalorder %v7317_v28, %v9871_v61 }
 0x367   : > { %6479 = vmatprep.subr.msk.mxu0 %vm13234_vm9, %v13341_v18  ;;  %6401 = vmatprep.subr.msk.mxu1 %vm13235_vm0, %v13341_v18  ;;  %vm13242_vm9 = vcmp.eq.s32.totalorder %v7194_v10, %v9821_v62  ;;  %vm13243_vm0 = vcmp.eq.s32.totalorder %v7332_v29, %v9855_v20 }
 0x368   : > { %6480 = vmatpush1.msk.msra.mxu0 %vm13236_vm13, %v13341_v18  ;;  %6402 = vmatpush1.msk.msra.mxu1 %vm13237_vm1, %v13341_v18  ;;  %vm13244_vm13 = vcmp.eq.s32.totalorder %v7194_v10, %v9839_v9  ;;  %vm13245_vm1 = vcmp.eq.s32.totalorder %v7332_v29, %v9871_v61 }
 0x369   : > { %6481 = vmatprep.subr.msk.mxu0 %vm13238_vm12, %v13341_v18  ;;  %6403 = vmatprep.subr.msk.mxu1 %vm13239_vm11, %v13341_v18  ;;  %vm13246_vm12 = vcmp.eq.s32.totalorder %v7197_v11, %v9821_v62  ;;  %vm13247_vm11 = vcmp.eq.s32.totalorder %v7347_v30, %v9855_v20 }
 0x36a   : > { %6482 = vmatpush1.msk.msra.mxu0 %vm13240_vm14, %v13341_v18  ;;  %6404 = vmatpush1.msk.msra.mxu1 %vm13241_vm15, %v13341_v18  ;;  %vm13248_vm14 = vcmp.eq.s32.totalorder %v7197_v11, %v9839_v9  ;;  %vm13249_vm15 = vcmp.eq.s32.totalorder %v7347_v30, %v9871_v61 }
 0x36b   : > { %6483 = vmatprep.subr.msk.mxu0 %vm13242_vm9, %v13341_v18  ;;  %6405 = vmatprep.subr.msk.mxu1 %vm13243_vm0, %v13341_v18  ;;  %vm13250_vm9 = vcmp.eq.s32.totalorder %v7201_v12, %v9821_v62  ;;  %vm13251_vm0 = vcmp.eq.s32.totalorder %v7166_v4, %v9855_v20 }
 0x36c   : > { %6484 = vmatpush1.msk.msra.mxu0 %vm13244_vm13, %v13341_v18  ;;  %6406 = vmatpush1.msk.msra.mxu1 %vm13245_vm1, %v13341_v18  ;;  %vm13252_vm13 = vcmp.eq.s32.totalorder %v7201_v12, %v9839_v9  ;;  %vm13253_vm1 = vcmp.eq.s32.totalorder %v7166_v4, %v9871_v61 }
 0x36d   : > { %6485 = vmatprep.subr.msk.mxu0 %vm13246_vm12, %v13341_v18  ;;  %6407 = vmatprep.subr.msk.mxu1 %vm13247_vm11, %v13341_v18  ;;  %vm13254_vm12 = vcmp.eq.s32.totalorder %v7207_v13, %v9821_v62  ;;  %vm13255_vm11 = vcmp.eq.s32.totalorder %v7194_v10, %v9855_v20 }
 0x36e   : > { %6486 = vmatpush1.msk.msra.mxu0 %vm13248_vm14, %v13341_v18  ;;  %6408 = vmatpush1.msk.msra.mxu1 %vm13249_vm15, %v13341_v18  ;;  %vm13256_vm14 = vcmp.eq.s32.totalorder %v7207_v13, %v9839_v9  ;;  %vm13257_vm15 = vcmp.eq.s32.totalorder %v7194_v10, %v9871_v61 }
 0x36f   : > { %6487 = vmatprep.subr.msk.mxu0 %vm13250_vm9, %v13341_v18  ;;  %6409 = vmatprep.subr.msk.mxu1 %vm13251_vm0, %v13341_v18  ;;  %vm13258_vm9 = vcmp.eq.s32.totalorder %v7217_v15, %v9821_v62  ;;  %vm13259_vm0 = vcmp.eq.s32.totalorder %v7197_v11, %v9855_v20 }
 0x370   : > { %6488 = vmatpush1.msk.msra.mxu0 %vm13252_vm13, %v13341_v18  ;;  %6410 = vmatpush1.msk.msra.mxu1 %vm13253_vm1, %v13341_v18  ;;  %vm13260_vm13 = vcmp.eq.s32.totalorder %v7217_v15, %v9839_v9  ;;  %vm13261_vm1 = vcmp.eq.s32.totalorder %v7197_v11, %v9871_v61 }
 0x371   : > { %6489 = vmatprep.subr.msk.mxu0 %vm13254_vm12, %v13341_v18  ;;  %6411 = vmatprep.subr.msk.mxu1 %vm13255_vm11, %v13341_v18  ;;  %vm13262_vm12 = vcmp.eq.s32.totalorder %v7228_v17, %v9821_v62  ;;  %vm13263_vm11 = vcmp.eq.s32.totalorder %v7201_v12, %v9855_v20 }
 0x372   : > { %6490 = vmatpush1.msk.msra.mxu0 %vm13256_vm14, %v13341_v18  ;;  %6412 = vmatpush1.msk.msra.mxu1 %vm13257_vm15, %v13341_v18  ;;  %vm13264_vm14 = vcmp.eq.s32.totalorder %v7228_v17, %v9839_v9  ;;  %vm13265_vm15 = vcmp.eq.s32.totalorder %v7201_v12, %v9871_v61 }
 0x373   : > { %6491 = vmatprep.subr.msk.mxu0 %vm13258_vm9, %v13341_v18  ;;  %6413 = vmatprep.subr.msk.mxu1 %vm13259_vm0, %v13341_v18  ;;  %vm13266_vm9 = vcmp.eq.s32.totalorder %v7156_v1, %v9821_v62  ;;  %vm13267_vm0 = vcmp.eq.s32.totalorder %v7207_v13, %v9855_v20 }
 0x374   : > { %6492 = vmatpush1.msk.msra.mxu0 %vm13260_vm13, %v13341_v18  ;;  %6414 = vmatpush1.msk.msra.mxu1 %vm13261_vm1, %v13341_v18  ;;  %vm13268_vm13 = vcmp.eq.s32.totalorder %v7156_v1, %v9839_v9  ;;  %vm13269_vm1 = vcmp.eq.s32.totalorder %v7207_v13, %v9871_v61 }
 0x375   : > { %6493 = vmatprep.subr.msk.mxu0 %vm13262_vm12, %v13341_v18  ;;  %6415 = vmatprep.subr.msk.mxu1 %vm13263_vm11, %v13341_v18  ;;  %vm13270_vm12 = vcmp.eq.s32.totalorder %v7458_v31, %v9821_v62  ;;  %vm13271_vm11 = vcmp.eq.s32.totalorder %v7217_v15, %v9855_v20 }
 0x376   : > { %6494 = vmatpush1.msk.msra.mxu0 %vm13264_vm14, %v13341_v18  ;;  %6416 = vmatpush1.msk.msra.mxu1 %vm13265_vm15, %v13341_v18  ;;  %vm13272_vm14 = vcmp.eq.s32.totalorder %v7458_v31, %v9839_v9  ;;  %vm13273_vm15 = vcmp.eq.s32.totalorder %v7217_v15, %v9871_v61 }
 0x377   : > { %6495 = vmatprep.subr.msk.mxu0 %vm13266_vm9, %v13341_v18  ;;  %6417 = vmatprep.subr.msk.mxu1 %vm13267_vm0, %v13341_v18  ;;  %vm13274_vm9 = vcmp.eq.s32.totalorder %v7473_v32, %v9821_v62  ;;  %vm13275_vm0 = vcmp.eq.s32.totalorder %v7228_v17, %v9855_v20 }
 0x378   : > { %6496 = vmatpush1.msk.msra.mxu0 %vm13268_vm13, %v13341_v18  ;;  %6418 = vmatpush1.msk.msra.mxu1 %vm13269_vm1, %v13341_v18  ;;  %vm13276_vm13 = vcmp.eq.s32.totalorder %v7473_v32, %v9839_v9  ;;  %vm13277_vm1 = vcmp.eq.s32.totalorder %v7228_v17, %v9871_v61 }
 0x379   : > { %6497 = vmatprep.subr.msk.mxu0 %vm13270_vm12, %v13341_v18  ;;  %6419 = vmatprep.subr.msk.mxu1 %vm13271_vm11, %v13341_v18  ;;  %vm13278_vm12 = vcmp.eq.s32.totalorder %v7488_v33, %v9821_v62  ;;  %vm13279_vm11 = vcmp.eq.s32.totalorder %v7156_v1, %v9855_v20 }
 0x37a   : > { %6498 = vmatpush2.msk.msra.mxu0 %vm13272_vm14, %v13341_v18  ;;  %6420 = vmatpush1.msk.msra.mxu1 %vm13273_vm15, %v13341_v18  ;;  %vm13280_vm14 = vcmp.eq.s32.totalorder %v7488_v33, %v9839_v9  ;;  %vm13281_vm15 = vcmp.eq.s32.totalorder %v7156_v1, %v9871_v61 }
 0x37b   : > { %6499 = vmatprep.subr.msk.mxu0 %vm13274_vm9, %v13341_v18  ;;  %6421 = vmatprep.subr.msk.mxu1 %vm13275_vm0, %v13341_v18  ;;  %vm13282_vm9 = vcmp.eq.s32.totalorder %v7503_v34, %v9821_v62  ;;  %vm13283_vm0 = vcmp.eq.s32.totalorder %v7458_v31, %v9855_v20 }
 0x37c   : > { %6500 = vmatpush2.msk.msra.mxu0 %vm13276_vm13, %v13341_v18  ;;  %6422 = vmatpush1.msk.msra.mxu1 %vm13277_vm1, %v13341_v18  ;;  %vm13284_vm13 = vcmp.eq.s32.totalorder %v7503_v34, %v9839_v9  ;;  %vm13285_vm1 = vcmp.eq.s32.totalorder %v7458_v31, %v9871_v61 }
 0x37d   : > { %6501 = vmatprep.subr.msk.mxu0 %vm13278_vm12, %v13341_v18  ;;  %6423 = vmatprep.subr.msk.mxu1 %vm13279_vm11, %v13341_v18  ;;  %vm13286_vm12 = vcmp.eq.s32.totalorder %v7518_v35, %v9821_v62  ;;  %vm13287_vm11 = vcmp.eq.s32.totalorder %v7473_v32, %v9855_v20 }
 0x37e   : > { %6502 = vmatpush2.msk.msra.mxu0 %vm13280_vm14, %v13341_v18  ;;  %6424 = vmatpush1.msk.msra.mxu1 %vm13281_vm15, %v13341_v18  ;;  %vm13288_vm14 = vcmp.eq.s32.totalorder %v7518_v35, %v9839_v9  ;;  %vm13289_vm15 = vcmp.eq.s32.totalorder %v7473_v32, %v9871_v61 }
 0x37f   : > { %6503 = vmatprep.subr.msk.mxu0 %vm13282_vm9, %v13341_v18  ;;  %6425 = vmatprep.subr.msk.mxu1 %vm13283_vm0, %v13341_v18  ;;  %vm13290_vm9 = vcmp.eq.s32.totalorder %v7533_v36, %v9821_v62  ;;  %vm13291_vm0 = vcmp.eq.s32.totalorder %v7488_v33, %v9855_v20 }
 0x380   : > { %6504 = vmatpush2.msk.msra.mxu0 %vm13284_vm13, %v13341_v18  ;;  %6426 = vmatpush2.msk.msra.mxu1 %vm13285_vm1, %v13341_v18  ;;  %vm13292_vm13 = vcmp.eq.s32.totalorder %v7533_v36, %v9839_v9  ;;  %vm13293_vm1 = vcmp.eq.s32.totalorder %v7488_v33, %v9871_v61 }
 0x381   : > { %6505 = vmatprep.subr.msk.mxu0 %vm13286_vm12, %v13341_v18  ;;  %6427 = vmatprep.subr.msk.mxu1 %vm13287_vm11, %v13341_v18  ;;  %vm13294_vm12 = vcmp.eq.s32.totalorder %v7548_v37, %v9821_v62  ;;  %vm13295_vm11 = vcmp.eq.s32.totalorder %v7503_v34, %v9855_v20 }
 0x382   : > { %6506 = vmatpush2.msk.msra.mxu0 %vm13288_vm14, %v13341_v18  ;;  %6428 = vmatpush2.msk.msra.mxu1 %vm13289_vm15, %v13341_v18  ;;  %vm13296_vm14 = vcmp.eq.s32.totalorder %v7548_v37, %v9839_v9  ;;  %vm1730_vm15 = vcmp.eq.s32.totalorder %v7503_v34, %v9871_v61 }
 0x383   : > { %6507 = vmatprep.subr.msk.mxu0 %vm13290_vm9, %v13341_v18  ;;  %6429 = vmatprep.subr.msk.mxu1 %vm13291_vm0, %v13341_v18  ;;  %vm13298_vm9 = vcmp.eq.s32.totalorder %v7563_v38, %v9821_v62  ;;  %vm1729_vm0 = vcmp.eq.s32.totalorder %v7518_v35, %v9855_v20 }
 0x384   : > { %6508 = vmatpush2.msk.msra.mxu0 %vm13292_vm13, %v13341_v18  ;;  %6430 = vmatpush2.msk.msra.mxu1 %vm13293_vm1, %v13341_v18  ;;  %vm13297_vm13 = vcmp.eq.s32.totalorder %v7563_v38, %v9839_v9  ;;  %vm13299_vm1 = vcmp.eq.s32.totalorder %v7518_v35, %v9871_v61 }
 0x385   : > { %6509 = vmatprep.subr.msk.mxu0 %vm13294_vm12, %v13341_v18  ;;  %6431 = vmatprep.subr.msk.mxu1 %vm13295_vm11, %v13341_v18  ;;  %vm13300_vm12 = vcmp.eq.s32.totalorder %v7578_v39, %v9821_v62  ;;  %vm13303_vm11 = vcmp.eq.s32.totalorder %v7533_v36, %v9855_v20 }
 0x386   : > { %6510 = vmatpush2.msk.msra.mxu0 %vm13296_vm14, %v13341_v18  ;;  %6432 = vmatpush2.msk.msra.mxu1 %vm1730_vm15, %v13341_v18  ;;  %vm13301_vm14 = vcmp.eq.s32.totalorder %v7578_v39, %v9839_v9 }
 0x387   : > { %6511 = vmatprep.subr.msk.mxu0 %vm13298_vm9, %v13341_v18  ;;  %6433 = vmatprep.subr.msk.mxu1 %vm1729_vm0, %v13341_v18  ;;  %vm13305_vm9 = vcmp.eq.s32.totalorder %v7593_v40, %v9821_v62 }
 0x388   : > { %6512 = vmatpush2.msk.msra.mxu0 %vm13297_vm13, %v13341_v18  ;;  %6434 = vmatpush2.msk.msra.mxu1 %vm13299_vm1, %v13341_v18  ;;  %vm13302_vm13 = vcmp.eq.s32.totalorder %v7533_v36, %v9871_v61  ;;  %vm13308_vm1 = vcmp.eq.s32.totalorder %v7548_v37, %v9855_v20 }
 0x389   : > { %6513 = vmatprep.subr.msk.mxu0 %vm13300_vm12, %v13341_v18  ;;  %6435 = vmatprep.subr.msk.mxu1 %vm13303_vm11, %v13341_v18  ;;  %vm13304_vm12 = vcmp.eq.s32.totalorder %v7593_v40, %v9839_v9  ;;  %vm1723_vm11 = vcmp.eq.s32.totalorder %v7563_v38, %v9855_v20 }
 0x38a   : > { %6514 = vmatpush2.msk.msra.mxu0 %vm13301_vm14, %v13341_v18  ;;  %6436 = vmatpush2.msk.msra.mxu1 %vm13302_vm13, %v13341_v18  ;;  %vm13306_vm14 = vcmp.eq.s32.totalorder %v7548_v37, %v9871_v61  ;;  %vm13307_vm13 = vcmp.eq.s32.totalorder %v7608_v41, %v9821_v62 }
 0x38b   : > { %6515 = vmatprep.subr.msk.mxu0 %vm13305_vm9, %v13341_v18  ;;  %6437 = vmatprep.subr.msk.mxu1 %vm13308_vm1, %v13341_v18  ;;  %vm13310_vm9 = vcmp.eq.s32.totalorder %v7563_v38, %v9871_v61  ;;  %vm13313_vm1 = vcmp.eq.s32.totalorder %v7623_v42, %v9839_v9 }
 0x38c   : > { %6516 = vmatpush2.msk.msra.mxu0 %vm13304_vm12, %v13341_v18  ;;  %6438 = vmatpush2.msk.msra.mxu1 %vm13306_vm14, %v13341_v18  ;;  %vm13309_vm12 = vcmp.eq.s32.totalorder %v7608_v41, %v9839_v9  ;;  %vm13311_vm14 = vcmp.eq.s32.totalorder %v7623_v42, %v9821_v62 }
 0x38d   : > { %6517 = vmatprep.subr.msk.mxu0 %vm13307_vm13, %v13341_v18  ;;  %6439 = vmatprep.subr.msk.mxu1 %vm1723_vm11, %v13341_v18  ;;  %vm13312_vm13 = vcmp.eq.s32.totalorder %v7578_v39, %v9855_v20 }
 0x38e   : > { %6518 = vmatpush2.msk.msra.mxu0 %vm13309_vm12, %v13341_v18  ;;  %6440 = vmatpush2.msk.msra.mxu1 %vm13310_vm9, %v13341_v18  ;;  %vm13321_vm12 = vcmp.eq.s32.totalorder %v7578_v39, %v9871_v61  ;;  %vm13314_vm9 = vcmp.eq.s32.totalorder %v7638_v43, %v9821_v62 }
 0x38f   : > { %6519 = vmatprep.subr.msk.mxu0 %vm13311_vm14, %v13341_v18  ;;  %6441 = vmatprep.subr.msk.mxu1 %vm13312_vm13, %v13341_v18  ;;  %vm13315_vm14 = vcmp.eq.s32.totalorder %v7593_v40, %v9855_v20  ;;  %vm13316_vm13 = vcmp.eq.s32.totalorder %v7638_v43, %v9839_v9 }
 0x390   : > { %6520 = vmatpush2.msk.msra.mxu0 %vm13313_vm1, %v13341_v18  ;;  %6442 = vmatpush2.msk.msra.mxu1 %vm13321_vm12, %v13341_v18  ;;  %vm13317_vm1 = vcmp.eq.s32.totalorder %v7593_v40, %v9871_v61  ;;  %vm1714_vm12 = vcmp.eq.s32.totalorder %v7623_v42, %v9871_v61 }
 0x391   : > { %6521 = vmatprep.subr.msk.mxu0 %vm13314_vm9, %v13341_v18  ;;  %6443 = vmatprep.subr.msk.mxu1 %vm13315_vm14, %v13341_v18  ;;  %vm13318_vm9 = vcmp.eq.s32.totalorder %v7653_v44, %v9821_v62  ;;  %vm13319_vm14 = vcmp.eq.s32.totalorder %v7608_v41, %v9855_v20 }
 0x392   : > { %6522 = vmatpush2.msk.msra.mxu0 %vm13316_vm13, %v13341_v18  ;;  %6444 = vmatpush2.msk.msra.mxu1 %vm13317_vm1, %v13341_v18  ;;  %vm13320_vm13 = vcmp.eq.s32.totalorder %v7653_v44, %v9839_v9  ;;  %vm13324_vm1 = vcmp.eq.s32.totalorder %v7608_v41, %v9871_v61 }
 0x393   : > { %6523 = vmatprep.subr.msk.mxu0 %vm13318_vm9, %v13341_v18  ;;  %6445 = vmatprep.subr.msk.mxu1 %vm13319_vm14, %v13341_v18  ;;  %vm13322_vm9 = vcmp.eq.s32.totalorder %v8035_v53, %v9821_v62  ;;  %vm13323_vm14 = vcmp.eq.s32.totalorder %v7623_v42, %v9855_v20 }
 0x394   : > { %6524 = vmatpush2.msk.msra.mxu0 %vm13320_vm13, %v13341_v18  ;;  %6446 = vmatpush2.msk.msra.mxu1 %vm13324_vm1, %v13341_v18  ;;  %vm13325_vm13 = vcmp.eq.s32.totalorder %v8035_v53, %v9839_v9  ;;  %vm13327_vm1 = vcmp.eq.s32.totalorder %v8054_v54, %v9839_v9 }
 0x395   : > { %6525 = vmatprep.subr.msk.mxu0 %vm13322_vm9, %v13341_v18  ;;  %6447 = vmatprep.subr.msk.mxu1 %vm13323_vm14, %v13341_v18  ;;  %vm13326_vm9 = vcmp.eq.s32.totalorder %v8054_v54, %v9821_v62  ;;  %vm13330_vm14 = vcmp.eq.s32.totalorder %v7638_v43, %v9855_v20 }
 0x396   : > { %6526 = vmatpush2.msk.msra.mxu0 %vm13325_vm13, %v13341_v18  ;;  %6448 = vmatpush2.msk.msra.mxu1 %vm1714_vm12, %v13341_v18  ;;  %vm13328_vm13 = vcmp.eq.s32.totalorder %v7638_v43, %v9871_v61 }
 0x397   : > { %6527 = vmatprep.subr.msk.mxu0 %vm13326_vm9, %v13341_v18  ;;  %6449 = vmatprep.subr.msk.mxu1 %vm13330_vm14, %v13341_v18  ;;  %vm13329_vm9 = vcmp.eq.s32.totalorder %v7653_v44, %v9855_v20  ;;  %vm13331_vm14 = vcmp.eq.s32.totalorder %v8054_v54, %v9871_v61 }
 0x398   : > { %6528 = vmatpush2.msk.msra.mxu0 %vm13327_vm1, %v13341_v18  ;;  %6450 = vmatpush2.msk.msra.mxu1 %vm13328_vm13, %v13341_v18  ;;  %vm1710_vm1 = vcmp.eq.s32.totalorder %v7653_v44, %v9871_v61  ;;  %vm1709_vm13 = vcmp.eq.s32.totalorder %v8035_v53, %v9855_v20 }
 0x399   : > { %6600 = vmatprep.subr.msk.mxu0 %vm505_vm3, %v13341_v18  ;;  %6451 = vmatprep.subr.msk.mxu1 %vm13329_vm9, %v13341_v18  ;;  %vm1708_vm3 = vcmp.eq.s32.totalorder %v8035_v53, %v9871_v61  ;;  %vm1707_vm9 = vcmp.eq.s32.totalorder %v8054_v54, %v9855_v20 }
 0x39a   : > { %6452 = vmatpush2.msk.msra.mxu1 %vm1710_vm1, %v13341_v18  ;;  %5313 = vperm.xlu0 %7092, %v7076_v60  }
 0x39b   : > { %6453 = vmatprep.subr.msk.mxu1 %vm1709_vm13, %v13341_v18 }
 0x39c   : > { %6454 = vmatpush2.msk.msra.mxu1 %vm1708_vm3, %v13341_v18 }
 0x39d   : > { %6455 = vmatprep.subr.msk.mxu1 %vm1707_vm9, %v13341_v18 }
 0x39e   : > { %6456 = vmatpush2.msk.msra.mxu1 %vm13331_vm14, %v13341_v18  ;;  %vm13350_vm14 = vcmp.eq.s32.totalorder %v7332_v29, %v7269_v22 }
 0x40f   : > { %v3571_v0 = vpop.f32.mrf.mxu0 }
 0x411   : > { %v3573_v48 = vpop.f32.mrf.mxu0 }
 0x413   : > { %v3876_v50 = vpop.f32.mrf.mxu0 }
 0x415   : > { %v3878_v3 = vpop.f32.mrf.mxu0 }
 0x417   : > { %v3346_v14 = vpop.f32.mrf.mxu1  ;;  %v3950_v16 = vpop.f32.mrf.mxu0 }
 0x418   : > { %v3351_v19 = vadd.f32 %v3346_v14, %v9832_v63  ;;  %v3951_v58 = vadd.f32 %v3950_v16, %v3876_v50  ;;  %v4032_v14 = vpop.permute.xlu0 %4031 }
 0x419   : > { %v3348_v2 = vpop.f32.mrf.mxu1  ;;  %v3952_v8 = vpop.f32.mrf.mxu0 }
 0x41a   : > { %v3352_v56 = vadd.f32 %v3348_v2, %v9841_v45  ;;  %v3953_v52 = vadd.f32 %v3952_v8, %v3878_v3  ;;  %v10651_v59 = vadd.f32 %v3571_v0, %v3351_v19  ;;  %v4038_v8 = vld [vmem:[%s12810_s4] sm:$0xf] }
 0x41b   : > { %v3651_v51 = vpop.f32.mrf.mxu1 }
 0x41c   : > { %4019 = vmatprep.mubr.f32.mxu0 %v3953_v52  ;;  %v10653_v7 = vadd.f32 %v3573_v48, %v3352_v56  ;;  %v6532_v56 = vld [vmem:[%s12810_s4 + $0x4] sm:$0xf] }
 0x41d   : > { %v3653_v6 = vpop.f32.mrf.mxu1  ;;  %4020 = vmatmul.mubr.f32.vlgmr.msra.gmra.mxu0 %v3951_v58  ;;  %v13403_v52 = vld [vmem:[#allocation2_spill] sm:$0xff] }
 0x41e   : > { %6601 = vmatpush1.msk.msra.mxu0 %vm504_vm4, %v13341_v18  ;;  %vm13342_vm4 = vcmp.eq.s32.totalorder %v7278_v25, %v7269_v22 }
 0x41f   : > { %v3725_v63 = vpop.f32.mrf.mxu1  ;;  %6602 = vmatprep.subr.msk.mxu0 %vm503_vm5, %v13341_v18  ;;  %vm13343_vm5 = vcmp.eq.s32.totalorder %v7287_v26, %v7265_v21 }
 0x420   : > { %6603 = vmatpush1.msk.msra.mxu0 %vm502_vm6, %v13341_v18  ;;  %v3726_v46 = vadd.f32 %v3725_v63, %v3651_v51  ;;  %vm13344_vm6 = vcmp.eq.s32.totalorder %v7287_v26, %v7269_v22  ;;  %v6664_v63 = vld [vmem:[%s12810_s4 + $0x8] sm:$0xf] }
 0x421   : > { %v3727_v45 = vpop.f32.mrf.mxu1  ;;  %6604 = vmatprep.subr.msk.mxu0 %vm501_vm8, %v13341_v18  ;;  %vm13345_vm8 = vcmp.eq.s32.totalorder %v7302_v27, %v7265_v21 }
 0x422   : > { %v3728_v5 = vadd.f32 %v3727_v45, %v3653_v6  ;;  %6605 = vmatpush1.msk.msra.mxu0 %vm13342_vm4, %v13341_v18  ;;  %vm13346_vm4 = vcmp.eq.s32.totalorder %v7302_v27, %v7269_v22  ;;  %v13467_v6 = vld [vmem:[#allocation5_spill] sm:$0xff]  ;;  %v6732_v45 = vld [vmem:[%s12810_s4 + $0xc] sm:$0xf] }
 0x423   : > { %6606 = vmatprep.subr.msk.mxu0 %vm13343_vm5, %v13341_v18  ;;  %vm13347_vm5 = vcmp.eq.s32.totalorder %v7317_v28, %v7265_v21 }
 0x424   : > { %3794 = vmatprep.mubr.f32.mxu1 %v3728_v5  ;;  %6607 = vmatpush1.msk.msra.mxu0 %vm13344_vm6, %v13341_v18  ;;  %vm13348_vm6 = vcmp.eq.s32.totalorder %v7317_v28, %v7269_v22  ;;  %v13479_v5 = vld [vmem:[#allocation3_spill] sm:$0xff] }
 0x425   : > { %3795 = vmatmul.mubr.f32.vlgmr.msra.gmra.mxu1 %v3726_v46  ;;  %6608 = vmatprep.subr.msk.mxu0 %vm13345_vm8, %v13341_v18  ;;  %vm13349_vm8 = vcmp.eq.s32.totalorder %v7332_v29, %v7265_v21  ;;  %v13483_v46 = vld [vmem:[#allocation4_spill] sm:$0xff] }
 0x426   : > { %4112 = vmatprep.mubr.f32.mxu1 %v13340_v57  ;;  %6609 = vmatpush1.msk.msra.mxu0 %vm13346_vm4, %v13341_v18  ;;  %vm13351_vm4 = vcmp.eq.s32.totalorder %v7347_v30, %v7265_v21 }
 0x427   : > { %6610 = vmatprep.subr.msk.mxu0 %vm13347_vm5, %v13341_v18  ;;  %vm13352_vm5 = vcmp.eq.s32.totalorder %v7347_v30, %v7269_v22 }
 0x428   : > { %6611 = vmatpush1.msk.msra.mxu0 %vm13348_vm6, %v13341_v18  ;;  %vm13353_vm6 = vcmp.eq.s32.totalorder %v7166_v4, %v7265_v21 }
 0x429   : > { %6612 = vmatprep.subr.msk.mxu0 %vm13349_vm8, %v13341_v18  ;;  %vm13354_vm8 = vcmp.eq.s32.totalorder %v7166_v4, %v7269_v22 }
 0x42a   : > { %6613 = vmatpush1.msk.msra.mxu0 %vm13350_vm14, %v13341_v18  ;;  %vm13355_vm14 = vcmp.eq.s32.totalorder %v7194_v10, %v7265_v21 }
 0x42b   : > { %6614 = vmatprep.subr.msk.mxu0 %vm13351_vm4, %v13341_v18  ;;  %vm13356_vm4 = vcmp.eq.s32.totalorder %v7194_v10, %v7269_v22 }
 0x42c   : > { %6615 = vmatpush1.msk.msra.mxu0 %vm13352_vm5, %v13341_v18  ;;  %vm13357_vm5 = vcmp.eq.s32.totalorder %v7197_v11, %v7265_v21 }
 0x42d   : > { %6616 = vmatprep.subr.msk.mxu0 %vm13353_vm6, %v13341_v18  ;;  %vm13358_vm6 = vcmp.eq.s32.totalorder %v7197_v11, %v7269_v22 }
 0x42e   : > { %6617 = vmatpush1.msk.msra.mxu0 %vm13354_vm8, %v13341_v18  ;;  %vm13359_vm8 = vcmp.eq.s32.totalorder %v7201_v12, %v7265_v21 }
 0x42f   : > { %6618 = vmatprep.subr.msk.mxu0 %vm13355_vm14, %v13341_v18  ;;  %vm13360_vm14 = vcmp.eq.s32.totalorder %v7201_v12, %v7269_v22 }
 0x430   : > { %6619 = vmatpush1.msk.msra.mxu0 %vm13356_vm4, %v13341_v18  ;;  %vm13361_vm4 = vcmp.eq.s32.totalorder %v7207_v13, %v7265_v21 }
 0x431   : > { %6620 = vmatprep.subr.msk.mxu0 %vm13357_vm5, %v13341_v18  ;;  %vm13362_vm5 = vcmp.eq.s32.totalorder %v7207_v13, %v7269_v22 }
 0x432   : > { %6621 = vmatpush1.msk.msra.mxu0 %vm13358_vm6, %v13341_v18  ;;  %vm13363_vm6 = vcmp.eq.s32.totalorder %v7217_v15, %v7265_v21 }
 0x433   : > { %6622 = vmatprep.subr.msk.mxu0 %vm13359_vm8, %v13341_v18  ;;  %vm13364_vm8 = vcmp.eq.s32.totalorder %v7217_v15, %v7269_v22 }
 0x434   : > { %6623 = vmatpush1.msk.msra.mxu0 %vm13360_vm14, %v13341_v18  ;;  %vm13365_vm14 = vcmp.eq.s32.totalorder %v7228_v17, %v7265_v21 }
 0x435   : > { %6624 = vmatprep.subr.msk.mxu0 %vm13361_vm4, %v13341_v18  ;;  %vm13366_vm4 = vcmp.eq.s32.totalorder %v7228_v17, %v7269_v22 }
 0x436   : > { %6625 = vmatpush1.msk.msra.mxu0 %vm13362_vm5, %v13341_v18  ;;  %vm13367_vm5 = vcmp.eq.s32.totalorder %v7156_v1, %v7265_v21 }
 0x437   : > { %6626 = vmatprep.subr.msk.mxu0 %vm13363_vm6, %v13341_v18  ;;  %vm13368_vm6 = vcmp.eq.s32.totalorder %v7156_v1, %v7269_v22 }
 0x438   : > { %6627 = vmatpush1.msk.msra.mxu0 %vm13364_vm8, %v13341_v18  ;;  %vm13369_vm8 = vcmp.eq.s32.totalorder %v7458_v31, %v7265_v21 }
 0x439   : > { %6628 = vmatprep.subr.msk.mxu0 %vm13365_vm14, %v13341_v18  ;;  %vm13370_vm14 = vcmp.eq.s32.totalorder %v7458_v31, %v7269_v22 }
 0x43a   : > { %6629 = vmatpush1.msk.msra.mxu0 %vm13366_vm4, %v13341_v18  ;;  %vm13371_vm4 = vcmp.eq.s32.totalorder %v7473_v32, %v7265_v21 }
 0x43b   : > { %6630 = vmatprep.subr.msk.mxu0 %vm13367_vm5, %v13341_v18  ;;  %vm13372_vm5 = vcmp.eq.s32.totalorder %v7473_v32, %v7269_v22 }
 0x43c   : > { %6631 = vmatpush1.msk.msra.mxu0 %vm13368_vm6, %v13341_v18  ;;  %vm13373_vm6 = vcmp.eq.s32.totalorder %v7488_v33, %v7265_v21 }
 0x43d   : > { %6632 = vmatprep.subr.msk.mxu0 %vm13369_vm8, %v13341_v18  ;;  %vm13374_vm8 = vcmp.eq.s32.totalorder %v7488_v33, %v7269_v22 }
 0x43e   : > { %6633 = vmatpush2.msk.msra.mxu0 %vm13370_vm14, %v13341_v18  ;;  %vm13375_vm14 = vcmp.eq.s32.totalorder %v7503_v34, %v7265_v21 }
 0x43f   : > { %6634 = vmatprep.subr.msk.mxu0 %vm13371_vm4, %v13341_v18  ;;  %vm13376_vm4 = vcmp.eq.s32.totalorder %v7503_v34, %v7269_v22 }
 0x440   : > { %6635 = vmatpush2.msk.msra.mxu0 %vm13372_vm5, %v13341_v18  ;;  %vm13377_vm5 = vcmp.eq.s32.totalorder %v7518_v35, %v7265_v21 }
 0x441   : > { %6636 = vmatprep.subr.msk.mxu0 %vm13373_vm6, %v13341_v18  ;;  %vm13378_vm6 = vcmp.eq.s32.totalorder %v7518_v35, %v7269_v22 }
 0x442   : > { %6637 = vmatpush2.msk.msra.mxu0 %vm13374_vm8, %v13341_v18  ;;  %vm13379_vm8 = vcmp.eq.s32.totalorder %v7533_v36, %v7265_v21 }
 0x443   : > { %6638 = vmatprep.subr.msk.mxu0 %vm13375_vm14, %v13341_v18  ;;  %vm13380_vm14 = vcmp.eq.s32.totalorder %v7533_v36, %v7269_v22 }
 0x444   : > { %6639 = vmatpush2.msk.msra.mxu0 %vm13376_vm4, %v13341_v18  ;;  %vm13381_vm4 = vcmp.eq.s32.totalorder %v7548_v37, %v7265_v21 }
 0x445   : > { %6640 = vmatprep.subr.msk.mxu0 %vm13377_vm5, %v13341_v18  ;;  %vm13382_vm5 = vcmp.eq.s32.totalorder %v7548_v37, %v7269_v22 }
 0x446   : > { %6641 = vmatpush2.msk.msra.mxu0 %vm13378_vm6, %v13341_v18  ;;  %vm13383_vm6 = vcmp.eq.s32.totalorder %v7563_v38, %v7265_v21 }
 0x447   : > { %6642 = vmatprep.subr.msk.mxu0 %vm13379_vm8, %v13341_v18  ;;  %vm13384_vm8 = vcmp.eq.s32.totalorder %v7563_v38, %v7269_v22 }
 0x448   : > { %6643 = vmatpush2.msk.msra.mxu0 %vm13380_vm14, %v13341_v18  ;;  %vm13385_vm14 = vcmp.eq.s32.totalorder %v7578_v39, %v7265_v21 }
 0x449   : > { %6644 = vmatprep.subr.msk.mxu0 %vm13381_vm4, %v13341_v18  ;;  %vm13386_vm4 = vcmp.eq.s32.totalorder %v7578_v39, %v7269_v22 }
 0x44a   : > { %6645 = vmatpush2.msk.msra.mxu0 %vm13382_vm5, %v13341_v18  ;;  %vm13387_vm5 = vcmp.eq.s32.totalorder %v7593_v40, %v7265_v21 }
 0x44b   : > { %6646 = vmatprep.subr.msk.mxu0 %vm13383_vm6, %v13341_v18  ;;  %vm13388_vm6 = vcmp.eq.s32.totalorder %v7593_v40, %v7269_v22 }
 0x44c   : > { %6647 = vmatpush2.msk.msra.mxu0 %vm13384_vm8, %v13341_v18  ;;  %vm13389_vm8 = vcmp.eq.s32.totalorder %v7608_v41, %v7265_v21 }
 0x44d   : > { %6648 = vmatprep.subr.msk.mxu0 %vm13385_vm14, %v13341_v18  ;;  %vm13390_vm14 = vcmp.eq.s32.totalorder %v7608_v41, %v7269_v22 }
 0x44e   : > { %6649 = vmatpush2.msk.msra.mxu0 %vm13386_vm4, %v13341_v18  ;;  %vm13391_vm4 = vcmp.eq.s32.totalorder %v7623_v42, %v7265_v21 }
 0x44f   : > { %6650 = vmatprep.subr.msk.mxu0 %vm13387_vm5, %v13341_v18  ;;  %vm13392_vm5 = vcmp.eq.s32.totalorder %v7623_v42, %v7269_v22 }
 0x450   : > { %6651 = vmatpush2.msk.msra.mxu0 %vm13388_vm6, %v13341_v18  ;;  %vm13393_vm6 = vcmp.eq.s32.totalorder %v7638_v43, %v7265_v21 }
 0x451   : > { %6652 = vmatprep.subr.msk.mxu0 %vm13389_vm8, %v13341_v18  ;;  %vm13394_vm8 = vcmp.eq.s32.totalorder %v7638_v43, %v7269_v22 }
 0x452   : > { %6653 = vmatpush2.msk.msra.mxu0 %vm13390_vm14, %v13341_v18  ;;  %vm13395_vm14 = vcmp.eq.s32.totalorder %v7653_v44, %v7265_v21 }
 0x453   : > { %6654 = vmatprep.subr.msk.mxu0 %vm13391_vm4, %v13341_v18  ;;  %vm13396_vm4 = vcmp.eq.s32.totalorder %v7653_v44, %v7269_v22 }
 0x454   : > { %6655 = vmatpush2.msk.msra.mxu0 %vm13392_vm5, %v13341_v18  ;;  %vm13397_vm5 = vcmp.eq.s32.totalorder %v8035_v53, %v7265_v21 }
 0x455   : > { %6656 = vmatprep.subr.msk.mxu0 %vm13393_vm6, %v13341_v18  ;;  %vm13398_vm6 = vcmp.eq.s32.totalorder %v8035_v53, %v7269_v22 }
 0x456   : > { %6657 = vmatpush2.msk.msra.mxu0 %vm13394_vm8, %v13341_v18  ;;  %vm13399_vm8 = vcmp.eq.s32.totalorder %v8054_v54, %v7265_v21 }
 0x457   : > { %6658 = vmatprep.subr.msk.mxu0 %vm13395_vm14, %v13341_v18  ;;  %vm13400_vm14 = vcmp.eq.s32.totalorder %v8054_v54, %v7269_v22 }
 0x458   : > { %6659 = vmatpush2.msk.msra.mxu0 %vm13396_vm4, %v13341_v18  ;;  %vm13401_vm4 = vcmp.eq.s32.totalorder %v7272_v23, %v8186_v55 }
 0x459   : > { %6660 = vmatprep.subr.msk.mxu0 %vm13397_vm5, %v13341_v18  ;;  %vm13402_vm5 = vcmp.eq.s32.totalorder %v7272_v23, %v7702_v49 }
 0x45a   : > { %6661 = vmatpush2.msk.msra.mxu0 %vm13398_vm6, %v13341_v18  ;;  %vm13404_vm6 = vcmp.eq.s32.totalorder %v7272_v23, %v13403_v52 }
 0x45b   : > { %6662 = vmatprep.subr.msk.mxu0 %vm13399_vm8, %v13341_v18  ;;  %vm13405_vm8 = vcmp.eq.s32.totalorder %v7275_v24, %v7702_v49 }
 0x45c   : > { %6663 = vmatpush2.msk.msra.mxu0 %vm13400_vm14, %v13341_v18  ;;  %vm13406_vm14 = vcmp.eq.s32.totalorder %v7275_v24, %v13403_v52 }
 0x45d   : > { %6668 = vmatprep.subr.msk.mxu0 %vm13401_vm4, %v13341_v18  ;;  %vm13407_vm4 = vcmp.eq.s32.totalorder %v7278_v25, %v7702_v49 }
 0x4dd   : > { %v4021_v47 = vpop.f32.mrf.mxu0 }
 0x4df   : > { %v4023_v21 = vpop.f32.mrf.mxu0 }
 0x4e5   : > { %v3796_v60 = vpop.f32.mrf.mxu1 }
 0x4e6   : > { %v3801_v0 = vadd.f32 %v3796_v60, %v10651_v59 }
 0x4e7   : > { %v3798_v48 = vpop.f32.mrf.mxu1 }
 0x4e8   : > { %v4026_v50 = vadd.f32 %v4021_v47, %v3801_v0  ;;  %v3802_v3 = vadd.f32 %v3798_v48, %v10653_v7 }
 0x4ea   : > { %v4027_v16 = vadd.f32 %v4023_v21, %v3802_v3  ;;  %v4034_v19 = vadd.f32 %v4032_v14, %v4026_v50 }
 0x4ec   : > { %v4035_v58 = vadd.f32 %v4032_v14, %v4027_v16  ;;  %v10916_v2 = vmax.f32 %v4034_v19, 0.0  ;;  %v6800_v14 = vld [vmem:[%s12810_s4 + $0x10] sm:$0xf]  ;;  %v13598_v19 = vld [vmem:[#allocation9_spill] sm:$0xff] }
 0x4ee   : > { %v10914_v22 = vmax.f32 %v4035_v58, 0.0  ;;  %v6804_v58 = vld [vmem:[%s12810_s4 + $0x14] sm:$0xf] }
 0x4f0   : > { %6529 = vmatprep.subr.msk.mxu1 %vm2074_vm7, %v10914_v22 }
 0x4f1   : > { %6530 = vmatpush1.msk.msra.mxu1 %vm2074_vm7, %v10916_v2 }
 0x4f2   : > { %6531 = vmatmul.mubr.msk.f32.vlgmr.msra.gmra.mxu1 %vm2070_vm10, %v4038_v8  ;;  %6533 = vmatprep.subr.msk.mxu1 %vm2074_vm7, %v10914_v22  ;;  %v6872_v8 = vld [vmem:[%s12810_s4 + $0x18] sm:$0xf] }
 0x4f3   : > { %6534 = vmatpush1.msk.msra.mxu1 %vm2074_vm7, %v10916_v2  ;;  %4188 = vmatprep.mubr.f32.mxu1 %v13340_v57 }
 0x4f4   : > { %6536 = vmatprep.subr.msk.mxu1 %vm13402_vm5, %v13341_v18  ;;  %vm13408_vm5 = vcmp.eq.s32.totalorder %v7278_v25, %v13403_v52 }
 0x4f6   : > { %6535 = vmatmul.mubr.msk.f32.vlgmr.msra.gmra.mxu1 %vm2070_vm10, %v6532_v56  ;;  %v13606_v56 = vld [vmem:[#allocation6_spill] sm:$0xff] }
 0x4f7   : > { %6537 = vmatpush1.msk.msra.mxu1 %vm13404_vm6, %v13341_v18  ;;  %vm13409_vm6 = vcmp.eq.s32.totalorder %v7287_v26, %v7702_v49 }
 0x4f8   : > { %6538 = vmatprep.subr.msk.mxu1 %vm13405_vm8, %v13341_v18  ;;  %vm13410_vm8 = vcmp.eq.s32.totalorder %v7287_v26, %v13403_v52 }
 0x4f9   : > { %6539 = vmatpush1.msk.msra.mxu1 %vm13406_vm14, %v13341_v18  ;;  %vm13411_vm14 = vcmp.eq.s32.totalorder %v7302_v27, %v7702_v49 }
 0x4fa   : > { %6540 = vmatprep.subr.msk.mxu1 %vm13407_vm4, %v13341_v18  ;;  %vm13412_vm4 = vcmp.eq.s32.totalorder %v7302_v27, %v13403_v52 }
 0x4fb   : > { %6541 = vmatpush1.msk.msra.mxu1 %vm13408_vm5, %v13341_v18  ;;  %vm13413_vm5 = vcmp.eq.s32.totalorder %v7317_v28, %v7702_v49 }
 0x4fc   : > { %6542 = vmatprep.subr.msk.mxu1 %vm13409_vm6, %v13341_v18  ;;  %vm13414_vm6 = vcmp.eq.s32.totalorder %v7317_v28, %v13403_v52 }
 0x4fd   : > { %6543 = vmatpush1.msk.msra.mxu1 %vm13410_vm8, %v13341_v18  ;;  %vm13415_vm8 = vcmp.eq.s32.totalorder %v7332_v29, %v7702_v49 }
 0x4fe   : > { %6544 = vmatprep.subr.msk.mxu1 %vm13411_vm14, %v13341_v18  ;;  %vm13416_vm14 = vcmp.eq.s32.totalorder %v7332_v29, %v13403_v52 }
 0x4ff   : > { %6545 = vmatpush1.msk.msra.mxu1 %vm13412_vm4, %v13341_v18  ;;  %vm13417_vm4 = vcmp.eq.s32.totalorder %v7347_v30, %v7702_v49 }
 0x500   : > { %6546 = vmatprep.subr.msk.mxu1 %vm13413_vm5, %v13341_v18  ;;  %vm13418_vm5 = vcmp.eq.s32.totalorder %v7347_v30, %v13403_v52 }
 0x501   : > { %6547 = vmatpush1.msk.msra.mxu1 %vm13414_vm6, %v13341_v18  ;;  %vm13419_vm6 = vcmp.eq.s32.totalorder %v7166_v4, %v7702_v49 }
 0x502   : > { %6548 = vmatprep.subr.msk.mxu1 %vm13415_vm8, %v13341_v18  ;;  %vm13420_vm8 = vcmp.eq.s32.totalorder %v7166_v4, %v13403_v52 }
 0x503   : > { %6549 = vmatpush1.msk.msra.mxu1 %vm13416_vm14, %v13341_v18  ;;  %vm13421_vm14 = vcmp.eq.s32.totalorder %v7194_v10, %v7702_v49 }
 0x504   : > { %6550 = vmatprep.subr.msk.mxu1 %vm13417_vm4, %v13341_v18  ;;  %vm13422_vm4 = vcmp.eq.s32.totalorder %v7194_v10, %v13403_v52 }
 0x505   : > { %6551 = vmatpush1.msk.msra.mxu1 %vm13418_vm5, %v13341_v18  ;;  %vm13423_vm5 = vcmp.eq.s32.totalorder %v7197_v11, %v7702_v49 }
 0x506   : > { %6552 = vmatprep.subr.msk.mxu1 %vm13419_vm6, %v13341_v18  ;;  %vm13424_vm6 = vcmp.eq.s32.totalorder %v7197_v11, %v13403_v52 }
 0x507   : > { %6553 = vmatpush1.msk.msra.mxu1 %vm13420_vm8, %v13341_v18  ;;  %vm13425_vm8 = vcmp.eq.s32.totalorder %v7201_v12, %v7702_v49 }
 0x508   : > { %6554 = vmatprep.subr.msk.mxu1 %vm13421_vm14, %v13341_v18  ;;  %vm13426_vm14 = vcmp.eq.s32.totalorder %v7201_v12, %v13403_v52 }
 0x509   : > { %6555 = vmatpush1.msk.msra.mxu1 %vm13422_vm4, %v13341_v18  ;;  %vm13427_vm4 = vcmp.eq.s32.totalorder %v7207_v13, %v7702_v49 }
 0x50a   : > { %6556 = vmatprep.subr.msk.mxu1 %vm13423_vm5, %v13341_v18  ;;  %vm13428_vm5 = vcmp.eq.s32.totalorder %v7207_v13, %v13403_v52 }
 0x50b   : > { %6557 = vmatpush1.msk.msra.mxu1 %vm13424_vm6, %v13341_v18  ;;  %vm13429_vm6 = vcmp.eq.s32.totalorder %v7217_v15, %v7702_v49 }
 0x50c   : > { %6558 = vmatprep.subr.msk.mxu1 %vm13425_vm8, %v13341_v18  ;;  %vm13430_vm8 = vcmp.eq.s32.totalorder %v7217_v15, %v13403_v52 }
 0x50d   : > { %6559 = vmatpush1.msk.msra.mxu1 %vm13426_vm14, %v13341_v18  ;;  %vm13431_vm14 = vcmp.eq.s32.totalorder %v7228_v17, %v7702_v49 }
 0x50e   : > { %6560 = vmatprep.subr.msk.mxu1 %vm13427_vm4, %v13341_v18  ;;  %vm13432_vm4 = vcmp.eq.s32.totalorder %v7228_v17, %v13403_v52 }
 0x50f   : > { %6561 = vmatpush1.msk.msra.mxu1 %vm13428_vm5, %v13341_v18  ;;  %vm13433_vm5 = vcmp.eq.s32.totalorder %v7156_v1, %v7702_v49 }
 0x510   : > { %6562 = vmatprep.subr.msk.mxu1 %vm13429_vm6, %v13341_v18  ;;  %vm13434_vm6 = vcmp.eq.s32.totalorder %v7156_v1, %v13403_v52 }
 0x511   : > { %6563 = vmatpush1.msk.msra.mxu1 %vm13430_vm8, %v13341_v18  ;;  %vm13435_vm8 = vcmp.eq.s32.totalorder %v7458_v31, %v7702_v49 }
 0x512   : > { %6564 = vmatprep.subr.msk.mxu1 %vm13431_vm14, %v13341_v18  ;;  %vm13436_vm14 = vcmp.eq.s32.totalorder %v7458_v31, %v13403_v52 }
 0x513   : > { %6565 = vmatpush1.msk.msra.mxu1 %vm13432_vm4, %v13341_v18  ;;  %vm13437_vm4 = vcmp.eq.s32.totalorder %v7473_v32, %v7702_v49 }
 0x514   : > { %6566 = vmatprep.subr.msk.mxu1 %vm13433_vm5, %v13341_v18  ;;  %vm13438_vm5 = vcmp.eq.s32.totalorder %v7473_v32, %v13403_v52 }
 0x515   : > { %6567 = vmatpush1.msk.msra.mxu1 %vm13434_vm6, %v13341_v18  ;;  %vm13439_vm6 = vcmp.eq.s32.totalorder %v7488_v33, %v7702_v49 }
 0x516   : > { %6568 = vmatprep.subr.msk.mxu1 %vm13435_vm8, %v13341_v18  ;;  %vm13440_vm8 = vcmp.eq.s32.totalorder %v7488_v33, %v13403_v52 }
 0x517   : > { %6569 = vmatpush2.msk.msra.mxu1 %vm13436_vm14, %v13341_v18  ;;  %vm13441_vm14 = vcmp.eq.s32.totalorder %v7503_v34, %v7702_v49 }
 0x518   : > { %6570 = vmatprep.subr.msk.mxu1 %vm13437_vm4, %v13341_v18  ;;  %vm13442_vm4 = vcmp.eq.s32.totalorder %v7503_v34, %v13403_v52 }
 0x519   : > { %6571 = vmatpush2.msk.msra.mxu1 %vm13438_vm5, %v13341_v18  ;;  %vm13443_vm5 = vcmp.eq.s32.totalorder %v7518_v35, %v7702_v49 }
 0x51a   : > { %6572 = vmatprep.subr.msk.mxu1 %vm13439_vm6, %v13341_v18  ;;  %vm13444_vm6 = vcmp.eq.s32.totalorder %v7518_v35, %v13403_v52 }
 0x51b   : > { %6573 = vmatpush2.msk.msra.mxu1 %vm13440_vm8, %v13341_v18  ;;  %vm13445_vm8 = vcmp.eq.s32.totalorder %v7533_v36, %v7702_v49 }
 0x51c   : > { %6574 = vmatprep.subr.msk.mxu1 %vm13441_vm14, %v13341_v18  ;;  %vm13446_vm14 = vcmp.eq.s32.totalorder %v7533_v36, %v13403_v52 }
 0x51d   : > { %6575 = vmatpush2.msk.msra.mxu1 %vm13442_vm4, %v13341_v18  ;;  %vm13447_vm4 = vcmp.eq.s32.totalorder %v7548_v37, %v7702_v49 }
 0x51e   : > { %6576 = vmatprep.subr.msk.mxu1 %vm13443_vm5, %v13341_v18  ;;  %vm13448_vm5 = vcmp.eq.s32.totalorder %v7548_v37, %v13403_v52 }
 0x51f   : > { %6577 = vmatpush2.msk.msra.mxu1 %vm13444_vm6, %v13341_v18  ;;  %vm13449_vm6 = vcmp.eq.s32.totalorder %v7563_v38, %v7702_v49 }
 0x520   : > { %6578 = vmatprep.subr.msk.mxu1 %vm13445_vm8, %v13341_v18  ;;  %vm13450_vm8 = vcmp.eq.s32.totalorder %v7563_v38, %v13403_v52 }
 0x521   : > { %6579 = vmatpush2.msk.msra.mxu1 %vm13446_vm14, %v13341_v18  ;;  %vm13451_vm14 = vcmp.eq.s32.totalorder %v7578_v39, %v7702_v49 }
 0x522   : > { %6580 = vmatprep.subr.msk.mxu1 %vm13447_vm4, %v13341_v18  ;;  %vm13452_vm4 = vcmp.eq.s32.totalorder %v7578_v39, %v13403_v52 }
 0x523   : > { %6581 = vmatpush2.msk.msra.mxu1 %vm13448_vm5, %v13341_v18  ;;  %vm13453_vm5 = vcmp.eq.s32.totalorder %v7593_v40, %v7702_v49 }
 0x524   : > { %6582 = vmatprep.subr.msk.mxu1 %vm13449_vm6, %v13341_v18  ;;  %vm13454_vm6 = vcmp.eq.s32.totalorder %v7593_v40, %v13403_v52 }
 0x525   : > { %6583 = vmatpush2.msk.msra.mxu1 %vm13450_vm8, %v13341_v18  ;;  %vm13455_vm8 = vcmp.eq.s32.totalorder %v7608_v41, %v7702_v49 }
 0x526   : > { %6584 = vmatprep.subr.msk.mxu1 %vm13451_vm14, %v13341_v18  ;;  %vm13456_vm14 = vcmp.eq.s32.totalorder %v7608_v41, %v13403_v52 }
 0x527   : > { %6585 = vmatpush2.msk.msra.mxu1 %vm13452_vm4, %v13341_v18  ;;  %vm13457_vm4 = vcmp.eq.s32.totalorder %v7623_v42, %v7702_v49 }
 0x528   : > { %6586 = vmatprep.subr.msk.mxu1 %vm13453_vm5, %v13341_v18  ;;  %vm13458_vm5 = vcmp.eq.s32.totalorder %v7623_v42, %v13403_v52 }
 0x529   : > { %6587 = vmatpush2.msk.msra.mxu1 %vm13454_vm6, %v13341_v18  ;;  %vm13459_vm6 = vcmp.eq.s32.totalorder %v7638_v43, %v7702_v49 }
 0x52a   : > { %6588 = vmatprep.subr.msk.mxu1 %vm13455_vm8, %v13341_v18  ;;  %vm13460_vm8 = vcmp.eq.s32.totalorder %v7638_v43, %v13403_v52 }
 0x52b   : > { %6589 = vmatpush2.msk.msra.mxu1 %vm13456_vm14, %v13341_v18  ;;  %vm13461_vm14 = vcmp.eq.s32.totalorder %v7653_v44, %v7702_v49 }
 0x52c   : > { %6590 = vmatprep.subr.msk.mxu1 %vm13457_vm4, %v13341_v18  ;;  %vm13462_vm4 = vcmp.eq.s32.totalorder %v7653_v44, %v13403_v52 }
 0x52d   : > { %6591 = vmatpush2.msk.msra.mxu1 %vm13458_vm5, %v13341_v18  ;;  %vm13463_vm5 = vcmp.eq.s32.totalorder %v8035_v53, %v7702_v49 }
 0x52e   : > { %6592 = vmatprep.subr.msk.mxu1 %vm13459_vm6, %v13341_v18  ;;  %vm13464_vm6 = vcmp.eq.s32.totalorder %v8035_v53, %v13403_v52 }
 0x52f   : > { %6593 = vmatpush2.msk.msra.mxu1 %vm13460_vm8, %v13341_v18  ;;  %vm13465_vm8 = vcmp.eq.s32.totalorder %v8054_v54, %v7702_v49 }
 0x530   : > { %6594 = vmatprep.subr.msk.mxu1 %vm13461_vm14, %v13341_v18  ;;  %vm13466_vm14 = vcmp.eq.s32.totalorder %v8054_v54, %v13403_v52  ;;  %v13610_v52 = vld [vmem:[#allocation7_spill] sm:$0xff] }
 0x531   : > { %6595 = vmatpush2.msk.msra.mxu1 %vm13462_vm4, %v13341_v18  ;;  %vm13468_vm4 = vcmp.eq.s32.totalorder %v7272_v23, %v13467_v6 }
 0x532   : > { %6596 = vmatprep.subr.msk.mxu1 %vm13463_vm5, %v13341_v18  ;;  %vm13469_vm5 = vcmp.eq.s32.totalorder %v7275_v24, %v8186_v55 }
 0x533   : > { %6597 = vmatpush2.msk.msra.mxu1 %vm13464_vm6, %v13341_v18  ;;  %vm13470_vm6 = vcmp.eq.s32.totalorder %v7275_v24, %v13467_v6 }
 0x534   : > { %6598 = vmatprep.subr.msk.mxu1 %vm13465_vm8, %v13341_v18  ;;  %vm13471_vm8 = vcmp.eq.s32.totalorder %v7278_v25, %v8186_v55 }
 0x535   : > { %6599 = vmatpush2.msk.msra.mxu1 %vm13466_vm14, %v13341_v18  ;;  %vm13472_vm14 = vcmp.eq.s32.totalorder %v7278_v25, %v13467_v6 }
 0x536   : > { %6665 = vmatprep.subr.msk.mxu1 %vm2074_vm7, %v10914_v22 }
 0x5b2   : > { %v4114_v59 = vpop.f32.mrf.mxu1 }
 0x5b4   : > { %v4116_v51 = vpop.f32.mrf.mxu1 }
 0x5b5   : > { %4330 = vmatprep.mubr.f32.mxu0 %v4116_v51 }
 0x5b6   : > { %v4190_v7 = vpop.f32.mrf.mxu1  ;;  %4331 = vmatmul.mubr.f32.vlgmr.msra.gmra.mxu0 %v4114_v59 }
 0x5b7   : > { %6669 = vmatpush1.msk.msra.mxu0 %vm13468_vm4, %v13341_v18  ;;  %vm13473_vm4 = vcmp.eq.s32.totalorder %v7287_v26, %v8186_v55 }
 0x5b8   : > { %6670 = vmatprep.subr.msk.mxu0 %vm13469_vm5, %v13341_v18  ;;  %v4192_v49 = vpop.f32.mrf.mxu1  ;;  %vm13474_vm5 = vcmp.eq.s32.totalorder %v7287_v26, %v13467_v6 }
 0x5b9   : > { %6671 = vmatpush1.msk.msra.mxu0 %vm13470_vm6, %v13341_v18  ;;  %4259 = vmatprep.mubr.f32.mxu1 %v4192_v49  ;;  %vm13475_vm6 = vcmp.eq.s32.totalorder %v7302_v27, %v8186_v55 }
 0x5ba   : > { %6672 = vmatprep.subr.msk.mxu0 %vm13471_vm8, %v13341_v18  ;;  %4260 = vmatmul.mubr.f32.vlgmr.msra.gmra.mxu1 %v4190_v7  ;;  %vm13476_vm8 = vcmp.eq.s32.totalorder %v7302_v27, %v13467_v6 }
 0x5bb   : > { %6666 = vmatpush1.msk.msra.mxu1 %vm2074_vm7, %v10916_v2  ;;  %6673 = vmatpush1.msk.msra.mxu0 %vm13472_vm14, %v13341_v18  ;;  %vm13477_vm14 = vcmp.eq.s32.totalorder %v7317_v28, %v8186_v55 }
 0x5bc   : > { %6674 = vmatprep.subr.msk.mxu0 %vm13473_vm4, %v13341_v18  ;;  %6733 = vmatprep.subr.msk.mxu1 %vm2074_vm7, %v10914_v22  ;;  %vm13478_vm4 = vcmp.eq.s32.totalorder %v7317_v28, %v13467_v6 }
 0x5bd   : > { %6675 = vmatpush1.msk.msra.mxu0 %vm13474_vm5, %v13341_v18  ;;  %4406 = vmatprep.mubr.f32.mxu1 %v13340_v57  ;;  %vm13480_vm5 = vcmp.eq.s32.totalorder %v7272_v23, %v13479_v5 }
 0x5be   : > { %6676 = vmatprep.subr.msk.mxu0 %vm13475_vm6, %v13341_v18  ;;  %6667 = vmatmul.mubr.msk.f32.vlgmr.msra.gmra.mxu1 %vm2070_vm10, %v6664_v63  ;;  %vm13481_vm6 = vcmp.eq.s32.totalorder %v7332_v29, %v8186_v55 }
 0x5bf   : > { %6677 = vmatpush1.msk.msra.mxu0 %vm13476_vm8, %v13341_v18  ;;  %6734 = vmatpush1.msk.msra.mxu1 %vm2074_vm7, %v10916_v2  ;;  %vm13482_vm8 = vcmp.eq.s32.totalorder %v7332_v29, %v13467_v6 }
 0x5c0   : > { %6678 = vmatprep.subr.msk.mxu0 %vm13477_vm14, %v13341_v18  ;;  %4555 = vmatprep.mubr.f32.mxu1 %v13340_v57  ;;  %vm13484_vm14 = vcmp.eq.s32.totalorder %v7272_v23, %v13483_v46 }
 0x5c1   : > { %6679 = vmatpush1.msk.msra.mxu0 %vm13478_vm4, %v13341_v18  ;;  %6736 = vmatprep.subr.msk.mxu1 %vm13480_vm5, %v13341_v18  ;;  %vm13485_vm4 = vcmp.eq.s32.totalorder %v7347_v30, %v8186_v55  ;;  %vm13486_vm5 = vcmp.eq.s32.totalorder %v7275_v24, %v13479_v5 }
 0x5c2   : > { %6680 = vmatprep.subr.msk.mxu0 %vm13481_vm6, %v13341_v18  ;;  %6735 = vmatmul.mubr.msk.f32.vlgmr.msra.gmra.mxu1 %vm2070_vm10, %v6732_v45  ;;  %vm13487_vm6 = vcmp.eq.s32.totalorder %v7347_v30, %v13467_v6 }
 0x5c3   : > { %6681 = vmatpush1.msk.msra.mxu0 %vm13482_vm8, %v13341_v18  ;;  %6737 = vmatpush1.msk.msra.mxu1 %vm13484_vm14, %v13341_v18  ;;  %vm13488_vm8 = vcmp.eq.s32.totalorder %v7275_v24, %v13483_v46  ;;  %vm13489_vm14 = vcmp.eq.s32.totalorder %v7166_v4, %v8186_v55 }
 0x5c4   : > { %6682 = vmatprep.subr.msk.mxu0 %vm13485_vm4, %v13341_v18  ;;  %6738 = vmatprep.subr.msk.mxu1 %vm13486_vm5, %v13341_v18  ;;  %vm13490_vm4 = vcmp.eq.s32.totalorder %v7278_v25, %v13479_v5  ;;  %vm13491_vm5 = vcmp.eq.s32.totalorder %v7166_v4, %v13467_v6 }
 0x5c5   : > { %6683 = vmatpush1.msk.msra.mxu0 %vm13487_vm6, %v13341_v18  ;;  %6739 = vmatpush1.msk.msra.mxu1 %vm13488_vm8, %v13341_v18  ;;  %vm13492_vm6 = vcmp.eq.s32.totalorder %v7278_v25, %v13483_v46  ;;  %vm13493_vm8 = vcmp.eq.s32.totalorder %v7194_v10, %v8186_v55 }
 0x5c6   : > { %6684 = vmatprep.subr.msk.mxu0 %vm13489_vm14, %v13341_v18  ;;  %6740 = vmatprep.subr.msk.mxu1 %vm13490_vm4, %v13341_v18  ;;  %vm13494_vm14 = vcmp.eq.s32.totalorder %v7287_v26, %v13479_v5  ;;  %vm13495_vm4 = vcmp.eq.s32.totalorder %v7194_v10, %v13467_v6 }
 0x5c7   : > { %6685 = vmatpush1.msk.msra.mxu0 %vm13491_vm5, %v13341_v18  ;;  %6741 = vmatpush1.msk.msra.mxu1 %vm13492_vm6, %v13341_v18  ;;  %vm13496_vm5 = vcmp.eq.s32.totalorder %v7287_v26, %v13483_v46  ;;  %vm13497_vm6 = vcmp.eq.s32.totalorder %v7197_v11, %v8186_v55 }
 0x5c8   : > { %6686 = vmatprep.subr.msk.mxu0 %vm13493_vm8, %v13341_v18  ;;  %6742 = vmatprep.subr.msk.mxu1 %vm13494_vm14, %v13341_v18  ;;  %vm13498_vm8 = vcmp.eq.s32.totalorder %v7302_v27, %v13479_v5  ;;  %vm13499_vm14 = vcmp.eq.s32.totalorder %v7197_v11, %v13467_v6 }
 0x5c9   : > { %6687 = vmatpush1.msk.msra.mxu0 %vm13495_vm4, %v13341_v18  ;;  %6743 = vmatpush1.msk.msra.mxu1 %vm13496_vm5, %v13341_v18  ;;  %vm13500_vm4 = vcmp.eq.s32.totalorder %v7302_v27, %v13483_v46  ;;  %vm13501_vm5 = vcmp.eq.s32.totalorder %v7201_v12, %v8186_v55 }
 0x5ca   : > { %6688 = vmatprep.subr.msk.mxu0 %vm13497_vm6, %v13341_v18  ;;  %6744 = vmatprep.subr.msk.mxu1 %vm13498_vm8, %v13341_v18  ;;  %vm13502_vm6 = vcmp.eq.s32.totalorder %v7317_v28, %v13479_v5  ;;  %vm13503_vm8 = vcmp.eq.s32.totalorder %v7201_v12, %v13467_v6 }
 0x5cb   : > { %6689 = vmatpush1.msk.msra.mxu0 %vm13499_vm14, %v13341_v18  ;;  %6745 = vmatpush1.msk.msra.mxu1 %vm13500_vm4, %v13341_v18  ;;  %vm13504_vm14 = vcmp.eq.s32.totalorder %v7317_v28, %v13483_v46  ;;  %vm13505_vm4 = vcmp.eq.s32.totalorder %v7207_v13, %v8186_v55 }
 0x5cc   : > { %6690 = vmatprep.subr.msk.mxu0 %vm13501_vm5, %v13341_v18  ;;  %6746 = vmatprep.subr.msk.mxu1 %vm13502_vm6, %v13341_v18  ;;  %vm13506_vm5 = vcmp.eq.s32.totalorder %v7332_v29, %v13479_v5  ;;  %vm13507_vm6 = vcmp.eq.s32.totalorder %v7207_v13, %v13467_v6 }
 0x5cd   : > { %6691 = vmatpush1.msk.msra.mxu0 %vm13503_vm8, %v13341_v18  ;;  %6747 = vmatpush1.msk.msra.mxu1 %vm13504_vm14, %v13341_v18  ;;  %vm13508_vm8 = vcmp.eq.s32.totalorder %v7332_v29, %v13483_v46  ;;  %vm13509_vm14 = vcmp.eq.s32.totalorder %v7217_v15, %v8186_v55 }
 0x5ce   : > { %6692 = vmatprep.subr.msk.mxu0 %vm13505_vm4, %v13341_v18  ;;  %6748 = vmatprep.subr.msk.mxu1 %vm13506_vm5, %v13341_v18  ;;  %vm13510_vm4 = vcmp.eq.s32.totalorder %v7347_v30, %v13479_v5  ;;  %vm13511_vm5 = vcmp.eq.s32.totalorder %v7217_v15, %v13467_v6 }
 0x5cf   : > { %6693 = vmatpush1.msk.msra.mxu0 %vm13507_vm6, %v13341_v18  ;;  %6749 = vmatpush1.msk.msra.mxu1 %vm13508_vm8, %v13341_v18  ;;  %vm13512_vm6 = vcmp.eq.s32.totalorder %v7347_v30, %v13483_v46  ;;  %vm13513_vm8 = vcmp.eq.s32.totalorder %v7228_v17, %v8186_v55 }
 0x5d0   : > { %6694 = vmatprep.subr.msk.mxu0 %vm13509_vm14, %v13341_v18  ;;  %6750 = vmatprep.subr.msk.mxu1 %vm13510_vm4, %v13341_v18  ;;  %vm13514_vm14 = vcmp.eq.s32.totalorder %v7166_v4, %v13479_v5  ;;  %vm13515_vm4 = vcmp.eq.s32.totalorder %v7228_v17, %v13467_v6 }
 0x5d1   : > { %6695 = vmatpush1.msk.msra.mxu0 %vm13511_vm5, %v13341_v18  ;;  %6751 = vmatpush1.msk.msra.mxu1 %vm13512_vm6, %v13341_v18  ;;  %vm13516_vm5 = vcmp.eq.s32.totalorder %v7166_v4, %v13483_v46  ;;  %vm13517_vm6 = vcmp.eq.s32.totalorder %v7156_v1, %v8186_v55 }
 0x5d2   : > { %6696 = vmatprep.subr.msk.mxu0 %vm13513_vm8, %v13341_v18  ;;  %6752 = vmatprep.subr.msk.mxu1 %vm13514_vm14, %v13341_v18  ;;  %vm13518_vm8 = vcmp.eq.s32.totalorder %v7194_v10, %v13479_v5  ;;  %vm13519_vm14 = vcmp.eq.s32.totalorder %v7156_v1, %v13467_v6 }
 0x5d3   : > { %6697 = vmatpush1.msk.msra.mxu0 %vm13515_vm4, %v13341_v18  ;;  %6753 = vmatpush1.msk.msra.mxu1 %vm13516_vm5, %v13341_v18  ;;  %vm13520_vm4 = vcmp.eq.s32.totalorder %v7194_v10, %v13483_v46  ;;  %vm13521_vm5 = vcmp.eq.s32.totalorder %v7458_v31, %v8186_v55 }
 0x5d4   : > { %6698 = vmatprep.subr.msk.mxu0 %vm13517_vm6, %v13341_v18  ;;  %6754 = vmatprep.subr.msk.mxu1 %vm13518_vm8, %v13341_v18  ;;  %vm13522_vm6 = vcmp.eq.s32.totalorder %v7197_v11, %v13479_v5  ;;  %vm13523_vm8 = vcmp.eq.s32.totalorder %v7458_v31, %v13467_v6 }
 0x5d5   : > { %6699 = vmatpush1.msk.msra.mxu0 %vm13519_vm14, %v13341_v18  ;;  %6755 = vmatpush1.msk.msra.mxu1 %vm13520_vm4, %v13341_v18  ;;  %vm13524_vm14 = vcmp.eq.s32.totalorder %v7197_v11, %v13483_v46  ;;  %vm13525_vm4 = vcmp.eq.s32.totalorder %v7473_v32, %v8186_v55 }
 0x5d6   : > { %6700 = vmatprep.subr.msk.mxu0 %vm13521_vm5, %v13341_v18  ;;  %6756 = vmatprep.subr.msk.mxu1 %vm13522_vm6, %v13341_v18  ;;  %vm13526_vm5 = vcmp.eq.s32.totalorder %v7201_v12, %v13479_v5  ;;  %vm13527_vm6 = vcmp.eq.s32.totalorder %v7473_v32, %v13467_v6 }
 0x5d7   : > { %6701 = vmatpush2.msk.msra.mxu0 %vm13523_vm8, %v13341_v18  ;;  %6757 = vmatpush1.msk.msra.mxu1 %vm13524_vm14, %v13341_v18  ;;  %vm13528_vm8 = vcmp.eq.s32.totalorder %v7201_v12, %v13483_v46  ;;  %vm13529_vm14 = vcmp.eq.s32.totalorder %v7488_v33, %v8186_v55 }
 0x5d8   : > { %6702 = vmatprep.subr.msk.mxu0 %vm13525_vm4, %v13341_v18  ;;  %6758 = vmatprep.subr.msk.mxu1 %vm13526_vm5, %v13341_v18  ;;  %vm13530_vm4 = vcmp.eq.s32.totalorder %v7207_v13, %v13479_v5  ;;  %vm13531_vm5 = vcmp.eq.s32.totalorder %v7488_v33, %v13467_v6 }
 0x5d9   : > { %6703 = vmatpush2.msk.msra.mxu0 %vm13527_vm6, %v13341_v18  ;;  %6759 = vmatpush1.msk.msra.mxu1 %vm13528_vm8, %v13341_v18  ;;  %vm13532_vm6 = vcmp.eq.s32.totalorder %v7207_v13, %v13483_v46  ;;  %vm13533_vm8 = vcmp.eq.s32.totalorder %v7503_v34, %v8186_v55 }
 0x5da   : > { %6704 = vmatprep.subr.msk.mxu0 %vm13529_vm14, %v13341_v18  ;;  %6760 = vmatprep.subr.msk.mxu1 %vm13530_vm4, %v13341_v18  ;;  %vm13534_vm14 = vcmp.eq.s32.totalorder %v7217_v15, %v13479_v5  ;;  %vm13535_vm4 = vcmp.eq.s32.totalorder %v7503_v34, %v13467_v6 }
 0x5db   : > { %6705 = vmatpush2.msk.msra.mxu0 %vm13531_vm5, %v13341_v18  ;;  %6761 = vmatpush1.msk.msra.mxu1 %vm13532_vm6, %v13341_v18  ;;  %vm13536_vm5 = vcmp.eq.s32.totalorder %v7217_v15, %v13483_v46  ;;  %vm13537_vm6 = vcmp.eq.s32.totalorder %v7518_v35, %v8186_v55 }
 0x5dc   : > { %6706 = vmatprep.subr.msk.mxu0 %vm13533_vm8, %v13341_v18  ;;  %6762 = vmatprep.subr.msk.mxu1 %vm13534_vm14, %v13341_v18  ;;  %vm13538_vm8 = vcmp.eq.s32.totalorder %v7228_v17, %v13479_v5  ;;  %vm13539_vm14 = vcmp.eq.s32.totalorder %v7518_v35, %v13467_v6 }
 0x5dd   : > { %6707 = vmatpush2.msk.msra.mxu0 %vm13535_vm4, %v13341_v18  ;;  %6763 = vmatpush1.msk.msra.mxu1 %vm13536_vm5, %v13341_v18  ;;  %vm13540_vm4 = vcmp.eq.s32.totalorder %v7228_v17, %v13483_v46  ;;  %vm13541_vm5 = vcmp.eq.s32.totalorder %v7533_v36, %v8186_v55 }
 0x5de   : > { %6708 = vmatprep.subr.msk.mxu0 %vm13537_vm6, %v13341_v18  ;;  %6764 = vmatprep.subr.msk.mxu1 %vm13538_vm8, %v13341_v18  ;;  %vm13542_vm6 = vcmp.eq.s32.totalorder %v7156_v1, %v13479_v5  ;;  %vm13543_vm8 = vcmp.eq.s32.totalorder %v7533_v36, %v13467_v6 }
 0x5df   : > { %6709 = vmatpush2.msk.msra.mxu0 %vm13539_vm14, %v13341_v18  ;;  %6765 = vmatpush1.msk.msra.mxu1 %vm13540_vm4, %v13341_v18  ;;  %vm13544_vm14 = vcmp.eq.s32.totalorder %v7156_v1, %v13483_v46  ;;  %vm13545_vm4 = vcmp.eq.s32.totalorder %v7548_v37, %v8186_v55 }
 0x5e0   : > { %6710 = vmatprep.subr.msk.mxu0 %vm13541_vm5, %v13341_v18  ;;  %6766 = vmatprep.subr.msk.mxu1 %vm13542_vm6, %v13341_v18  ;;  %vm13546_vm5 = vcmp.eq.s32.totalorder %v7458_v31, %v13479_v5  ;;  %vm13547_vm6 = vcmp.eq.s32.totalorder %v7458_v31, %v13483_v46 }
 0x5e1   : > { %6711 = vmatpush2.msk.msra.mxu0 %vm13543_vm8, %v13341_v18  ;;  %6767 = vmatpush1.msk.msra.mxu1 %vm13544_vm14, %v13341_v18  ;;  %vm13548_vm8 = vcmp.eq.s32.totalorder %v7563_v38, %v8186_v55  ;;  %vm13549_vm14 = vcmp.eq.s32.totalorder %v7473_v32, %v13479_v5 }
 0x5e2   : > { %6712 = vmatprep.subr.msk.mxu0 %vm13545_vm4, %v13341_v18  ;;  %6768 = vmatprep.subr.msk.mxu1 %vm13546_vm5, %v13341_v18  ;;  %vm13550_vm4 = vcmp.eq.s32.totalorder %v7563_v38, %v13467_v6  ;;  %vm13552_vm5 = vcmp.eq.s32.totalorder %v7578_v39, %v8186_v55 }
 0x5e3   : > { %6713 = vmatpush2.msk.msra.mxu0 %vm924_vm2, %v13341_v18  ;;  %6769 = vmatpush2.msk.msra.mxu1 %vm13547_vm6, %v13341_v18  ;;  %vm13551_vm2 = vcmp.eq.s32.totalorder %v7473_v32, %v13483_v46  ;;  %vm13553_vm6 = vcmp.eq.s32.totalorder %v7488_v33, %v13479_v5 }
 0x5e4   : > { %6714 = vmatprep.subr.msk.mxu0 %vm13548_vm8, %v13341_v18  ;;  %6770 = vmatprep.subr.msk.mxu1 %vm13549_vm14, %v13341_v18  ;;  %vm13554_vm8 = vcmp.eq.s32.totalorder %v7578_v39, %v13467_v6  ;;  %vm13555_vm14 = vcmp.eq.s32.totalorder %v7488_v33, %v13483_v46 }
 0x5e5   : > { %6715 = vmatpush2.msk.msra.mxu0 %vm13550_vm4, %v13341_v18  ;;  %6771 = vmatpush2.msk.msra.mxu1 %vm13551_vm2, %v13341_v18  ;;  %vm13556_vm4 = vcmp.eq.s32.totalorder %v7593_v40, %v8186_v55  ;;  %vm13557_vm2 = vcmp.eq.s32.totalorder %v7503_v34, %v13479_v5 }
 0x5e6   : > { %6716 = vmatprep.subr.msk.mxu0 %vm13552_vm5, %v13341_v18  ;;  %6772 = vmatprep.subr.msk.mxu1 %vm13553_vm6, %v13341_v18  ;;  %vm13558_vm5 = vcmp.eq.s32.totalorder %v7593_v40, %v13467_v6  ;;  %vm13559_vm6 = vcmp.eq.s32.totalorder %v7503_v34, %v13483_v46 }
 0x5e7   : > { %6717 = vmatpush2.msk.msra.mxu0 %vm13554_vm8, %v13341_v18  ;;  %6773 = vmatpush2.msk.msra.mxu1 %vm13555_vm14, %v13341_v18  ;;  %vm13560_vm8 = vcmp.eq.s32.totalorder %v7608_v41, %v8186_v55  ;;  %vm13561_vm14 = vcmp.eq.s32.totalorder %v7518_v35, %v13479_v5 }
 0x5e8   : > { %6718 = vmatprep.subr.msk.mxu0 %vm13556_vm4, %v13341_v18  ;;  %6774 = vmatprep.subr.msk.mxu1 %vm13557_vm2, %v13341_v18  ;;  %vm13562_vm4 = vcmp.eq.s32.totalorder %v7608_v41, %v13467_v6  ;;  %vm13563_vm2 = vcmp.eq.s32.totalorder %v7518_v35, %v13483_v46 }
 0x5e9   : > { %6719 = vmatpush2.msk.msra.mxu0 %vm13558_vm5, %v13341_v18  ;;  %6775 = vmatpush2.msk.msra.mxu1 %vm13559_vm6, %v13341_v18  ;;  %vm13564_vm5 = vcmp.eq.s32.totalorder %v7623_v42, %v8186_v55  ;;  %vm13565_vm6 = vcmp.eq.s32.totalorder %v7533_v36, %v13479_v5 }
 0x5ea   : > { %6720 = vmatprep.subr.msk.mxu0 %vm13560_vm8, %v13341_v18  ;;  %6776 = vmatprep.subr.msk.mxu1 %vm13561_vm14, %v13341_v18  ;;  %vm13566_vm8 = vcmp.eq.s32.totalorder %v7623_v42, %v13467_v6  ;;  %vm13567_vm14 = vcmp.eq.s32.totalorder %v7533_v36, %v13483_v46 }
 0x5eb   : > { %6721 = vmatpush2.msk.msra.mxu0 %vm13562_vm4, %v13341_v18  ;;  %6777 = vmatpush2.msk.msra.mxu1 %vm13563_vm2, %v13341_v18  ;;  %vm13568_vm4 = vcmp.eq.s32.totalorder %v7638_v43, %v8186_v55  ;;  %vm13569_vm2 = vcmp.eq.s32.totalorder %v7548_v37, %v13479_v5 }
 0x5ec   : > { %6722 = vmatprep.subr.msk.mxu0 %vm13564_vm5, %v13341_v18  ;;  %6778 = vmatprep.subr.msk.mxu1 %vm13565_vm6, %v13341_v18  ;;  %vm13570_vm5 = vcmp.eq.s32.totalorder %v7638_v43, %v13467_v6  ;;  %vm13571_vm6 = vcmp.eq.s32.totalorder %v7548_v37, %v13483_v46 }
 0x5ed   : > { %6723 = vmatpush2.msk.msra.mxu0 %vm13566_vm8, %v13341_v18  ;;  %6779 = vmatpush2.msk.msra.mxu1 %vm13567_vm14, %v13341_v18  ;;  %vm13572_vm8 = vcmp.eq.s32.totalorder %v7653_v44, %v8186_v55  ;;  %vm13573_vm14 = vcmp.eq.s32.totalorder %v7563_v38, %v13479_v5 }
 0x5ee   : > { %6724 = vmatprep.subr.msk.mxu0 %vm13568_vm4, %v13341_v18  ;;  %6780 = vmatprep.subr.msk.mxu1 %vm13569_vm2, %v13341_v18  ;;  %vm13574_vm4 = vcmp.eq.s32.totalorder %v7653_v44, %v13467_v6  ;;  %vm13575_vm2 = vcmp.eq.s32.totalorder %v7563_v38, %v13483_v46 }
 0x5ef   : > { %6725 = vmatpush2.msk.msra.mxu0 %vm13570_vm5, %v13341_v18  ;;  %6781 = vmatpush2.msk.msra.mxu1 %vm13571_vm6, %v13341_v18  ;;  %vm13576_vm5 = vcmp.eq.s32.totalorder %v8035_v53, %v8186_v55  ;;  %vm13577_vm6 = vcmp.eq.s32.totalorder %v7578_v39, %v13479_v5 }
 0x5f0   : > { %6726 = vmatprep.subr.msk.mxu0 %vm13572_vm8, %v13341_v18  ;;  %6782 = vmatprep.subr.msk.mxu1 %vm13573_vm14, %v13341_v18  ;;  %vm13578_vm8 = vcmp.eq.s32.totalorder %v8035_v53, %v13467_v6  ;;  %vm13579_vm14 = vcmp.eq.s32.totalorder %v7578_v39, %v13483_v46 }
 0x5f1   : > { %6727 = vmatpush2.msk.msra.mxu0 %vm13574_vm4, %v13341_v18  ;;  %6783 = vmatpush2.msk.msra.mxu1 %vm13575_vm2, %v13341_v18  ;;  %vm13580_vm4 = vcmp.eq.s32.totalorder %v8054_v54, %v8186_v55  ;;  %vm13581_vm2 = vcmp.eq.s32.totalorder %v7593_v40, %v13479_v5  ;;  %v13596_v55 = vld [vmem:[#allocation8_spill] sm:$0xff] }
 0x5f2   : > { %6728 = vmatprep.subr.msk.mxu0 %vm13576_vm5, %v13341_v18  ;;  %6784 = vmatprep.subr.msk.mxu1 %vm13577_vm6, %v13341_v18  ;;  %vm13582_vm5 = vcmp.eq.s32.totalorder %v8054_v54, %v13467_v6  ;;  %vm13583_vm6 = vcmp.eq.s32.totalorder %v7593_v40, %v13483_v46 }
 0x5f3   : > { %6729 = vmatpush2.msk.msra.mxu0 %vm13578_vm8, %v13341_v18  ;;  %6785 = vmatpush2.msk.msra.mxu1 %vm13579_vm14, %v13341_v18  ;;  %vm13584_vm8 = vcmp.eq.s32.totalorder %v7608_v41, %v13479_v5  ;;  %vm13585_vm14 = vcmp.eq.s32.totalorder %v7608_v41, %v13483_v46 }
 0x5f4   : > { %6730 = vmatprep.subr.msk.mxu0 %vm13580_vm4, %v13341_v18  ;;  %6786 = vmatprep.subr.msk.mxu1 %vm13581_vm2, %v13341_v18  ;;  %vm13586_vm4 = vcmp.eq.s32.totalorder %v7623_v42, %v13479_v5  ;;  %vm13587_vm2 = vcmp.eq.s32.totalorder %v7623_v42, %v13483_v46 }
 0x5f5   : > { %6731 = vmatpush2.msk.msra.mxu0 %vm13582_vm5, %v13341_v18  ;;  %6787 = vmatpush2.msk.msra.mxu1 %vm13583_vm6, %v13341_v18  ;;  %vm13588_vm5 = vcmp.eq.s32.totalorder %v7638_v43, %v13479_v5  ;;  %vm13589_vm6 = vcmp.eq.s32.totalorder %v7638_v43, %v13483_v46 }
 0x5f6   : > { %6801 = vmatprep.subr.msk.mxu0 %vm2074_vm7, %v10914_v22  ;;  %6788 = vmatprep.subr.msk.mxu1 %vm13584_vm8, %v13341_v18  ;;  %vm13590_vm8 = vcmp.eq.s32.totalorder %v7653_v44, %v13479_v5 }
 0x5f7   : > { %6789 = vmatpush2.msk.msra.mxu1 %vm13585_vm14, %v13341_v18  ;;  %vm13591_vm14 = vcmp.eq.s32.totalorder %v7653_v44, %v13483_v46 }
 0x5f8   : > { %6790 = vmatprep.subr.msk.mxu1 %vm13586_vm4, %v13341_v18  ;;  %vm13592_vm4 = vcmp.eq.s32.totalorder %v8035_v53, %v13479_v5 }
 0x5f9   : > { %6791 = vmatpush2.msk.msra.mxu1 %vm13587_vm2, %v13341_v18  ;;  %vm13593_vm2 = vcmp.eq.s32.totalorder %v8035_v53, %v13483_v46 }
 0x5fa   : > { %6792 = vmatprep.subr.msk.mxu1 %vm13588_vm5, %v13341_v18  ;;  %vm13594_vm5 = vcmp.eq.s32.totalorder %v8054_v54, %v13479_v5 }
 0x5fb   : > { %6793 = vmatpush2.msk.msra.mxu1 %vm13589_vm6, %v13341_v18  ;;  %vm13595_vm6 = vcmp.eq.s32.totalorder %v8054_v54, %v13483_v46 }
 0x5fc   : > { %6794 = vmatprep.subr.msk.mxu1 %vm13590_vm8, %v13341_v18  ;;  %vm13597_vm8 = vcmp.eq.s32.totalorder %v7272_v23, %v13596_v55 }
 0x5fd   : > { %6795 = vmatpush2.msk.msra.mxu1 %vm13591_vm14, %v13341_v18  ;;  %vm13599_vm14 = vcmp.eq.s32.totalorder %v7272_v23, %v13598_v19 }
 0x5fe   : > { %6796 = vmatprep.subr.msk.mxu1 %vm13592_vm4, %v13341_v18  ;;  %vm13600_vm4 = vcmp.eq.s32.totalorder %v7275_v24, %v13596_v55 }
 0x5ff   : > { %6797 = vmatpush2.msk.msra.mxu1 %vm13593_vm2, %v13341_v18  ;;  %vm13601_vm2 = vcmp.eq.s32.totalorder %v7275_v24, %v13598_v19 }
 0x600   : > { %6798 = vmatprep.subr.msk.mxu1 %vm13594_vm5, %v13341_v18  ;;  %vm13602_vm5 = vcmp.eq.s32.totalorder %v7278_v25, %v13596_v55 }
 0x601   : > { %6799 = vmatpush2.msk.msra.mxu1 %vm13595_vm6, %v13341_v18  ;;  %vm13603_vm6 = vcmp.eq.s32.totalorder %v7278_v25, %v13598_v19 }
 0x602   : > { %6808 = vmatprep.subr.msk.mxu1 %vm13597_vm8, %v13341_v18  ;;  %vm13604_vm8 = vcmp.eq.s32.totalorder %v7287_v26, %v13596_v55 }
 0x676   : > { %v4332_v47 = vpop.f32.mrf.mxu0 }
 0x678   : > { %v4334_v59 = vpop.f32.mrf.mxu0 }
 0x67a   : > { %v4261_v60 = vpop.f32.mrf.mxu1 }
 0x67b   : > { %v11723_v0 = vadd.f32 %v4332_v47, %v4261_v60 }
 0x67c   : > { %v11725_v48 = vpop.f32.mrf.mxu1 }
 0x67d   : > { %v4335_v7 = vadd.f32 %v4334_v59, %v11725_v48 }
 0x67e   : > { %v4408_v50 = vpop.f32.mrf.mxu1 }
 0x680   : > { %v4410_v3 = vpop.f32.mrf.mxu1 }
 0x681   : > { %4477 = vmatprep.mubr.f32.mxu0 %v4410_v3 }
 0x682   : > { %4478 = vmatmul.mubr.f32.vlgmr.msra.gmra.mxu0 %v4408_v50  ;;  %v4557_v21 = vpop.f32.mrf.mxu1 }
 0x683   : > { %6802 = vmatpush1.msk.msra.mxu0 %vm2074_vm7, %v10916_v2  ;;  %4704 = vmatprep.mubr.f32.mxu0 %v13340_v57 }
 0x684   : > { %6805 = vmatprep.subr.msk.mxu0 %vm2074_vm7, %v10914_v22  ;;  %v4559_v16 = vpop.f32.mrf.mxu1 }
 0x685   : > { %4626 = vmatprep.mubr.f32.mxu1 %v4559_v16  ;;  %v7008_v16 = vld [vmem:[%s12810_s4 + $0x20] sm:$0xf] }
 0x686   : > { %4627 = vmatmul.mubr.f32.vlgmr.msra.gmra.mxu1 %v4557_v21  ;;  %6803 = vmatmul.mubr.msk.f32.vlgmr.msra.gmra.mxu0 %vm2070_vm10, %v6800_v14 }
 0x687   : > { %6806 = vmatpush1.msk.msra.mxu0 %vm2074_vm7, %v10916_v2  ;;  %6809 = vmatpush1.msk.msra.mxu1 %vm13599_vm14, %v13341_v18  ;;  %vm13605_vm14 = vcmp.eq.s32.totalorder %v7287_v26, %v13598_v19 }
 0x688   : > { %6810 = vmatprep.subr.msk.mxu1 %vm13600_vm4, %v13341_v18  ;;  %6873 = vmatprep.subr.msk.mxu0 %vm2074_vm7, %v10914_v22  ;;  %vm13607_vm4 = vcmp.eq.s32.totalorder %v7272_v23, %v13606_v56 }
 0x689   : > { %6811 = vmatpush1.msk.msra.mxu1 %vm13601_vm2, %v13341_v18  ;;  %4782 = vmatprep.mubr.f32.mxu0 %v13340_v57  ;;  %vm13608_vm2 = vcmp.eq.s32.totalorder %v7302_v27, %v13596_v55 }
 0x68a   : > { %6812 = vmatprep.subr.msk.mxu1 %vm13602_vm5, %v13341_v18  ;;  %6807 = vmatmul.mubr.msk.f32.vlgmr.msra.gmra.mxu0 %vm2070_vm10, %v6804_v58  ;;  %vm13609_vm5 = vcmp.eq.s32.totalorder %v7302_v27, %v13598_v19 }
 0x68b   : > { %6813 = vmatpush1.msk.msra.mxu1 %vm13603_vm6, %v13341_v18  ;;  %6874 = vmatpush1.msk.msra.mxu0 %vm2074_vm7, %v10916_v2  ;;  %vm13611_vm6 = vcmp.eq.s32.totalorder %v7272_v23, %v13610_v52 }
 0x68c   : > { %6814 = vmatprep.subr.msk.mxu1 %vm13604_vm8, %v13341_v18  ;;  %4931 = vmatprep.mubr.f32.mxu0 %v13340_v57  ;;  %vm13612_vm8 = vcmp.eq.s32.totalorder %v7317_v28, %v13596_v55 }
 0x68d   : > { %6815 = vmatpush1.msk.msra.mxu1 %vm13605_vm14, %v13341_v18  ;;  %6876 = vmatprep.subr.msk.mxu0 %vm13607_vm4, %v13341_v18  ;;  %vm13613_vm14 = vcmp.eq.s32.totalorder %v7275_v24, %v13606_v56  ;;  %vm13614_vm4 = vcmp.eq.s32.totalorder %v7317_v28, %v13598_v19 }
 0x68e   : > { %6816 = vmatprep.subr.msk.mxu1 %vm13608_vm2, %v13341_v18  ;;  %6875 = vmatmul.mubr.msk.f32.vlgmr.msra.gmra.mxu0 %vm2070_vm10, %v6872_v8  ;;  %vm13615_vm2 = vcmp.eq.s32.totalorder %v7275_v24, %v13610_v52 }
 0x68f   : > { %6817 = vmatpush1.msk.msra.mxu1 %vm13609_vm5, %v13341_v18  ;;  %6877 = vmatpush1.msk.msra.mxu0 %vm13611_vm6, %v13341_v18  ;;  %vm13616_vm5 = vcmp.eq.s32.totalorder %v7332_v29, %v13596_v55  ;;  %vm13617_vm6 = vcmp.eq.s32.totalorder %v7278_v25, %v13606_v56 }
 0x690   : > { %6818 = vmatprep.subr.msk.mxu1 %vm13612_vm8, %v13341_v18  ;;  %6878 = vmatprep.subr.msk.mxu0 %vm13613_vm14, %v13341_v18  ;;  %vm13618_vm8 = vcmp.eq.s32.totalorder %v7332_v29, %v13598_v19  ;;  %vm13619_vm14 = vcmp.eq.s32.totalorder %v7278_v25, %v13610_v52 }
 0x691   : > { %6819 = vmatpush1.msk.msra.mxu1 %vm13614_vm4, %v13341_v18  ;;  %6879 = vmatpush1.msk.msra.mxu0 %vm13615_vm2, %v13341_v18  ;;  %vm13620_vm4 = vcmp.eq.s32.totalorder %v7347_v30, %v13596_v55  ;;  %vm13621_vm2 = vcmp.eq.s32.totalorder %v7287_v26, %v13606_v56 }
 0x692   : > { %6820 = vmatprep.subr.msk.mxu1 %vm13616_vm5, %v13341_v18  ;;  %6880 = vmatprep.subr.msk.mxu0 %vm13617_vm6, %v13341_v18  ;;  %vm13622_vm5 = vcmp.eq.s32.totalorder %v7347_v30, %v13598_v19  ;;  %vm13623_vm6 = vcmp.eq.s32.totalorder %v7287_v26, %v13610_v52 }
 0x693   : > { %6821 = vmatpush1.msk.msra.mxu1 %vm13618_vm8, %v13341_v18  ;;  %6881 = vmatpush1.msk.msra.mxu0 %vm13619_vm14, %v13341_v18  ;;  %vm13624_vm8 = vcmp.eq.s32.totalorder %v7166_v4, %v13596_v55  ;;  %vm13625_vm14 = vcmp.eq.s32.totalorder %v7302_v27, %v13606_v56 }
 0x694   : > { %6822 = vmatprep.subr.msk.mxu1 %vm13620_vm4, %v13341_v18  ;;  %6882 = vmatprep.subr.msk.mxu0 %vm13621_vm2, %v13341_v18  ;;  %vm13626_vm4 = vcmp.eq.s32.totalorder %v7166_v4, %v13598_v19  ;;  %vm13627_vm2 = vcmp.eq.s32.totalorder %v7302_v27, %v13610_v52 }
 0x695   : > { %6823 = vmatpush1.msk.msra.mxu1 %vm13622_vm5, %v13341_v18  ;;  %6883 = vmatpush1.msk.msra.mxu0 %vm13623_vm6, %v13341_v18  ;;  %vm13628_vm5 = vcmp.eq.s32.totalorder %v7194_v10, %v13596_v55  ;;  %vm13629_vm6 = vcmp.eq.s32.totalorder %v7317_v28, %v13606_v56 }
 0x696   : > { %6824 = vmatprep.subr.msk.mxu1 %vm13624_vm8, %v13341_v18  ;;  %6884 = vmatprep.subr.msk.mxu0 %vm13625_vm14, %v13341_v18  ;;  %vm13630_vm8 = vcmp.eq.s32.totalorder %v7194_v10, %v13598_v19  ;;  %vm13631_vm14 = vcmp.eq.s32.totalorder %v7317_v28, %v13610_v52 }
 0x697   : > { %6825 = vmatpush1.msk.msra.mxu1 %vm13626_vm4, %v13341_v18  ;;  %6885 = vmatpush1.msk.msra.mxu0 %vm13627_vm2, %v13341_v18  ;;  %vm13632_vm4 = vcmp.eq.s32.totalorder %v7197_v11, %v13596_v55  ;;  %vm13633_vm2 = vcmp.eq.s32.totalorder %v7332_v29, %v13606_v56 }
 0x698   : > { %6826 = vmatprep.subr.msk.mxu1 %vm13628_vm5, %v13341_v18  ;;  %6886 = vmatprep.subr.msk.mxu0 %vm13629_vm6, %v13341_v18  ;;  %vm13634_vm5 = vcmp.eq.s32.totalorder %v7197_v11, %v13598_v19  ;;  %vm13635_vm6 = vcmp.eq.s32.totalorder %v7332_v29, %v13610_v52 }
 0x699   : > { %6827 = vmatpush1.msk.msra.mxu1 %vm13630_vm8, %v13341_v18  ;;  %6887 = vmatpush1.msk.msra.mxu0 %vm13631_vm14, %v13341_v18  ;;  %vm13636_vm8 = vcmp.eq.s32.totalorder %v7201_v12, %v13596_v55  ;;  %vm13637_vm14 = vcmp.eq.s32.totalorder %v7347_v30, %v13606_v56 }
 0x69a   : > { %6828 = vmatprep.subr.msk.mxu1 %vm13632_vm4, %v13341_v18  ;;  %6888 = vmatprep.subr.msk.mxu0 %vm13633_vm2, %v13341_v18  ;;  %vm13638_vm4 = vcmp.eq.s32.totalorder %v7201_v12, %v13598_v19  ;;  %vm13639_vm2 = vcmp.eq.s32.totalorder %v7347_v30, %v13610_v52 }
 0x69b   : > { %6829 = vmatpush1.msk.msra.mxu1 %vm13634_vm5, %v13341_v18  ;;  %6889 = vmatpush1.msk.msra.mxu0 %vm13635_vm6, %v13341_v18  ;;  %vm13640_vm5 = vcmp.eq.s32.totalorder %v7207_v13, %v13596_v55  ;;  %vm13641_vm6 = vcmp.eq.s32.totalorder %v7166_v4, %v13606_v56 }
 0x69c   : > { %6830 = vmatprep.subr.msk.mxu1 %vm13636_vm8, %v13341_v18  ;;  %6890 = vmatprep.subr.msk.mxu0 %vm13637_vm14, %v13341_v18  ;;  %vm13642_vm8 = vcmp.eq.s32.totalorder %v7207_v13, %v13598_v19  ;;  %vm13643_vm14 = vcmp.eq.s32.totalorder %v7166_v4, %v13610_v52 }
 0x69d   : > { %6831 = vmatpush1.msk.msra.mxu1 %vm13638_vm4, %v13341_v18  ;;  %6891 = vmatpush1.msk.msra.mxu0 %vm13639_vm2, %v13341_v18  ;;  %vm13644_vm4 = vcmp.eq.s32.totalorder %v7217_v15, %v13596_v55  ;;  %vm13645_vm2 = vcmp.eq.s32.totalorder %v7194_v10, %v13606_v56 }
 0x69e   : > { %6832 = vmatprep.subr.msk.mxu1 %vm13640_vm5, %v13341_v18  ;;  %6892 = vmatprep.subr.msk.mxu0 %vm13641_vm6, %v13341_v18  ;;  %vm13646_vm5 = vcmp.eq.s32.totalorder %v7217_v15, %v13598_v19  ;;  %vm13647_vm6 = vcmp.eq.s32.totalorder %v7194_v10, %v13610_v52 }
 0x69f   : > { %6833 = vmatpush1.msk.msra.mxu1 %vm13642_vm8, %v13341_v18  ;;  %6893 = vmatpush1.msk.msra.mxu0 %vm13643_vm14, %v13341_v18  ;;  %vm13648_vm8 = vcmp.eq.s32.totalorder %v7228_v17, %v13596_v55  ;;  %vm13649_vm14 = vcmp.eq.s32.totalorder %v7197_v11, %v13606_v56 }
 0x6a0   : > { %6834 = vmatprep.subr.msk.mxu1 %vm13644_vm4, %v13341_v18  ;;  %6894 = vmatprep.subr.msk.mxu0 %vm13645_vm2, %v13341_v18  ;;  %vm13650_vm4 = vcmp.eq.s32.totalorder %v7228_v17, %v13598_v19  ;;  %vm13651_vm2 = vcmp.eq.s32.totalorder %v7197_v11, %v13610_v52 }
 0x6a1   : > { %6835 = vmatpush1.msk.msra.mxu1 %vm13646_vm5, %v13341_v18  ;;  %6895 = vmatpush1.msk.msra.mxu0 %vm13647_vm6, %v13341_v18  ;;  %vm13652_vm5 = vcmp.eq.s32.totalorder %v7156_v1, %v13596_v55  ;;  %vm13653_vm6 = vcmp.eq.s32.totalorder %v7201_v12, %v13606_v56 }
 0x6a2   : > { %6836 = vmatprep.subr.msk.mxu1 %vm13648_vm8, %v13341_v18  ;;  %6896 = vmatprep.subr.msk.mxu0 %vm13649_vm14, %v13341_v18  ;;  %vm13654_vm8 = vcmp.eq.s32.totalorder %v7156_v1, %v13598_v19  ;;  %vm13655_vm14 = vcmp.eq.s32.totalorder %v7201_v12, %v13610_v52 }
 0x6a3   : > { %6837 = vmatpush1.msk.msra.mxu1 %vm13650_vm4, %v13341_v18  ;;  %6897 = vmatpush1.msk.msra.mxu0 %vm13651_vm2, %v13341_v18  ;;  %vm13656_vm4 = vcmp.eq.s32.totalorder %v7458_v31, %v13596_v55  ;;  %vm13657_vm2 = vcmp.eq.s32.totalorder %v7207_v13, %v13606_v56 }
 0x6a4   : > { %6838 = vmatprep.subr.msk.mxu1 %vm13652_vm5, %v13341_v18  ;;  %6898 = vmatprep.subr.msk.mxu0 %vm13653_vm6, %v13341_v18  ;;  %vm13658_vm5 = vcmp.eq.s32.totalorder %v7458_v31, %v13598_v19  ;;  %vm13659_vm6 = vcmp.eq.s32.totalorder %v7207_v13, %v13610_v52 }
 0x6a5   : > { %6839 = vmatpush1.msk.msra.mxu1 %vm13654_vm8, %v13341_v18  ;;  %6899 = vmatpush1.msk.msra.mxu0 %vm13655_vm14, %v13341_v18  ;;  %vm13660_vm8 = vcmp.eq.s32.totalorder %v7473_v32, %v13596_v55  ;;  %vm13661_vm14 = vcmp.eq.s32.totalorder %v7217_v15, %v13606_v56 }
 0x6a6   : > { %6840 = vmatprep.subr.msk.mxu1 %vm13656_vm4, %v13341_v18  ;;  %6900 = vmatprep.subr.msk.mxu0 %vm13657_vm2, %v13341_v18  ;;  %vm13662_vm4 = vcmp.eq.s32.totalorder %v7473_v32, %v13598_v19  ;;  %vm13663_vm2 = vcmp.eq.s32.totalorder %v7217_v15, %v13610_v52 }
 0x6a7   : > { %6841 = vmatpush2.msk.msra.mxu1 %vm13658_vm5, %v13341_v18  ;;  %6901 = vmatpush1.msk.msra.mxu0 %vm13659_vm6, %v13341_v18  ;;  %vm13664_vm5 = vcmp.eq.s32.totalorder %v7488_v33, %v13596_v55  ;;  %vm13665_vm6 = vcmp.eq.s32.totalorder %v7228_v17, %v13606_v56 }
 0x6a8   : > { %6842 = vmatprep.subr.msk.mxu1 %vm13660_vm8, %v13341_v18  ;;  %6902 = vmatprep.subr.msk.mxu0 %vm13661_vm14, %v13341_v18  ;;  %vm13666_vm8 = vcmp.eq.s32.totalorder %v7488_v33, %v13598_v19  ;;  %vm13667_vm14 = vcmp.eq.s32.totalorder %v7228_v17, %v13610_v52 }
 0x6a9   : > { %6843 = vmatpush2.msk.msra.mxu1 %vm13662_vm4, %v13341_v18  ;;  %6903 = vmatpush1.msk.msra.mxu0 %vm13663_vm2, %v13341_v18  ;;  %vm13668_vm4 = vcmp.eq.s32.totalorder %v7503_v34, %v13596_v55  ;;  %vm13669_vm2 = vcmp.eq.s32.totalorder %v7156_v1, %v13606_v56 }
 0x6aa   : > { %6844 = vmatprep.subr.msk.mxu1 %vm13664_vm5, %v13341_v18  ;;  %6904 = vmatprep.subr.msk.mxu0 %vm13665_vm6, %v13341_v18  ;;  %vm13670_vm5 = vcmp.eq.s32.totalorder %v7503_v34, %v13598_v19  ;;  %vm13671_vm6 = vcmp.eq.s32.totalorder %v7156_v1, %v13610_v52 }
 0x6ab   : > { %6845 = vmatpush2.msk.msra.mxu1 %vm13666_vm8, %v13341_v18  ;;  %6905 = vmatpush1.msk.msra.mxu0 %vm13667_vm14, %v13341_v18  ;;  %vm13672_vm8 = vcmp.eq.s32.totalorder %v7518_v35, %v13596_v55  ;;  %vm13673_vm14 = vcmp.eq.s32.totalorder %v7458_v31, %v13606_v56 }
 0x6ac   : > { %6846 = vmatprep.subr.msk.mxu1 %vm13668_vm4, %v13341_v18  ;;  %6906 = vmatprep.subr.msk.mxu0 %vm13669_vm2, %v13341_v18  ;;  %vm13674_vm4 = vcmp.eq.s32.totalorder %v7518_v35, %v13598_v19  ;;  %vm13675_vm2 = vcmp.eq.s32.totalorder %v7458_v31, %v13610_v52 }
 0x6ad   : > { %6847 = vmatpush2.msk.msra.mxu1 %vm13670_vm5, %v13341_v18  ;;  %6907 = vmatpush1.msk.msra.mxu0 %vm13671_vm6, %v13341_v18  ;;  %vm13676_vm5 = vcmp.eq.s32.totalorder %v7533_v36, %v13596_v55  ;;  %vm13677_vm6 = vcmp.eq.s32.totalorder %v7473_v32, %v13606_v56 }
 0x6ae   : > { %6848 = vmatprep.subr.msk.mxu1 %vm13672_vm8, %v13341_v18  ;;  %6908 = vmatprep.subr.msk.mxu0 %vm13673_vm14, %v13341_v18  ;;  %vm13678_vm8 = vcmp.eq.s32.totalorder %v7533_v36, %v13598_v19  ;;  %vm13679_vm14 = vcmp.eq.s32.totalorder %v7473_v32, %v13610_v52 }
 0x6af   : > { %6849 = vmatpush2.msk.msra.mxu1 %vm13674_vm4, %v13341_v18  ;;  %6909 = vmatpush2.msk.msra.mxu0 %vm13675_vm2, %v13341_v18  ;;  %vm13680_vm4 = vcmp.eq.s32.totalorder %v7548_v37, %v13596_v55  ;;  %vm13681_vm2 = vcmp.eq.s32.totalorder %v7488_v33, %v13606_v56 }
 0x6b0   : > { %6850 = vmatprep.subr.msk.mxu1 %vm13676_vm5, %v13341_v18  ;;  %6910 = vmatprep.subr.msk.mxu0 %vm13677_vm6, %v13341_v18  ;;  %vm13682_vm5 = vcmp.eq.s32.totalorder %v7548_v37, %v13598_v19  ;;  %vm13683_vm6 = vcmp.eq.s32.totalorder %v7488_v33, %v13610_v52 }
 0x6b1   : > { %6851 = vmatpush2.msk.msra.mxu1 %vm13678_vm8, %v13341_v18  ;;  %6911 = vmatpush2.msk.msra.mxu0 %vm13679_vm14, %v13341_v18  ;;  %vm13684_vm8 = vcmp.eq.s32.totalorder %v7563_v38, %v13596_v55  ;;  %vm13685_vm14 = vcmp.eq.s32.totalorder %v7503_v34, %v13606_v56 }
 0x6b2   : > { %6852 = vmatprep.subr.msk.mxu1 %vm13680_vm4, %v13341_v18  ;;  %6912 = vmatprep.subr.msk.mxu0 %vm13681_vm2, %v13341_v18  ;;  %vm13686_vm4 = vcmp.eq.s32.totalorder %v7563_v38, %v13598_v19  ;;  %vm13687_vm2 = vcmp.eq.s32.totalorder %v7503_v34, %v13610_v52 }
 0x6b3   : > { %6853 = vmatpush2.msk.msra.mxu1 %vm13682_vm5, %v13341_v18  ;;  %6913 = vmatpush2.msk.msra.mxu0 %vm13683_vm6, %v13341_v18  ;;  %vm13688_vm5 = vcmp.eq.s32.totalorder %v7578_v39, %v13596_v55  ;;  %vm13689_vm6 = vcmp.eq.s32.totalorder %v7518_v35, %v13606_v56 }
 0x6b4   : > { %6854 = vmatprep.subr.msk.mxu1 %vm13684_vm8, %v13341_v18  ;;  %6914 = vmatprep.subr.msk.mxu0 %vm13685_vm14, %v13341_v18  ;;  %vm13690_vm8 = vcmp.eq.s32.totalorder %v7578_v39, %v13598_v19  ;;  %vm13691_vm14 = vcmp.eq.s32.totalorder %v7518_v35, %v13610_v52 }
 0x6b5   : > { %6855 = vmatpush2.msk.msra.mxu1 %vm13686_vm4, %v13341_v18  ;;  %6915 = vmatpush2.msk.msra.mxu0 %vm13687_vm2, %v13341_v18  ;;  %vm13692_vm4 = vcmp.eq.s32.totalorder %v7593_v40, %v13596_v55  ;;  %vm13693_vm2 = vcmp.eq.s32.totalorder %v7533_v36, %v13606_v56 }
 0x6b6   : > { %6856 = vmatprep.subr.msk.mxu1 %vm13688_vm5, %v13341_v18  ;;  %6916 = vmatprep.subr.msk.mxu0 %vm13689_vm6, %v13341_v18  ;;  %vm13694_vm5 = vcmp.eq.s32.totalorder %v7593_v40, %v13598_v19  ;;  %vm13695_vm6 = vcmp.eq.s32.totalorder %v7533_v36, %v13610_v52 }
 0x6b7   : > { %6857 = vmatpush2.msk.msra.mxu1 %vm13690_vm8, %v13341_v18  ;;  %6917 = vmatpush2.msk.msra.mxu0 %vm13691_vm14, %v13341_v18  ;;  %vm13696_vm8 = vcmp.eq.s32.totalorder %v7608_v41, %v13596_v55  ;;  %vm13697_vm14 = vcmp.eq.s32.totalorder %v7548_v37, %v13606_v56 }
 0x6b8   : > { %6858 = vmatprep.subr.msk.mxu1 %vm13692_vm4, %v13341_v18  ;;  %6918 = vmatprep.subr.msk.mxu0 %vm13693_vm2, %v13341_v18  ;;  %vm13698_vm4 = vcmp.eq.s32.totalorder %v7608_v41, %v13598_v19  ;;  %vm13699_vm2 = vcmp.eq.s32.totalorder %v7548_v37, %v13610_v52 }
 0x6b9   : > { %6859 = vmatpush2.msk.msra.mxu1 %vm13694_vm5, %v13341_v18  ;;  %6919 = vmatpush2.msk.msra.mxu0 %vm13695_vm6, %v13341_v18  ;;  %vm13700_vm5 = vcmp.eq.s32.totalorder %v7623_v42, %v13596_v55  ;;  %vm13701_vm6 = vcmp.eq.s32.totalorder %v7563_v38, %v13606_v56 }
 0x6ba   : > { %6860 = vmatprep.subr.msk.mxu1 %vm13696_vm8, %v13341_v18  ;;  %6920 = vmatprep.subr.msk.mxu0 %vm13697_vm14, %v13341_v18  ;;  %vm13702_vm8 = vcmp.eq.s32.totalorder %v7623_v42, %v13598_v19  ;;  %vm13703_vm14 = vcmp.eq.s32.totalorder %v7563_v38, %v13610_v52 }
 0x6bb   : > { %6861 = vmatpush2.msk.msra.mxu1 %vm13698_vm4, %v13341_v18  ;;  %6921 = vmatpush2.msk.msra.mxu0 %vm13699_vm2, %v13341_v18  ;;  %vm13704_vm4 = vcmp.eq.s32.totalorder %v7638_v43, %v13596_v55  ;;  %vm13705_vm2 = vcmp.eq.s32.totalorder %v7578_v39, %v13606_v56 }
 0x6bc   : > { %6862 = vmatprep.subr.msk.mxu1 %vm13700_vm5, %v13341_v18  ;;  %6922 = vmatprep.subr.msk.mxu0 %vm13701_vm6, %v13341_v18  ;;  %vm13706_vm5 = vcmp.eq.s32.totalorder %v7638_v43, %v13598_v19  ;;  %vm13707_vm6 = vcmp.eq.s32.totalorder %v7578_v39, %v13610_v52 }
 0x6bd   : > { %6863 = vmatpush2.msk.msra.mxu1 %vm13702_vm8, %v13341_v18  ;;  %6923 = vmatpush2.msk.msra.mxu0 %vm13703_vm14, %v13341_v18  ;;  %vm13708_vm8 = vcmp.eq.s32.totalorder %v7653_v44, %v13596_v55  ;;  %vm13709_vm14 = vcmp.eq.s32.totalorder %v7593_v40, %v13606_v56 }
 0x6be   : > { %6864 = vmatprep.subr.msk.mxu1 %vm13704_vm4, %v13341_v18  ;;  %6924 = vmatprep.subr.msk.mxu0 %vm13705_vm2, %v13341_v18  ;;  %vm13710_vm4 = vcmp.eq.s32.totalorder %v7653_v44, %v13598_v19  ;;  %vm13711_vm2 = vcmp.eq.s32.totalorder %v7593_v40, %v13610_v52 }
 0x6bf   : > { %6865 = vmatpush2.msk.msra.mxu1 %vm13706_vm5, %v13341_v18  ;;  %6925 = vmatpush2.msk.msra.mxu0 %vm13707_vm6, %v13341_v18  ;;  %vm13712_vm5 = vcmp.eq.s32.totalorder %v8035_v53, %v13596_v55  ;;  %vm13713_vm6 = vcmp.eq.s32.totalorder %v7608_v41, %v13606_v56 }
 0x6c0   : > { %6866 = vmatprep.subr.msk.mxu1 %vm13708_vm8, %v13341_v18  ;;  %6926 = vmatprep.subr.msk.mxu0 %vm13709_vm14, %v13341_v18  ;;  %vm13714_vm8 = vcmp.eq.s32.totalorder %v8035_v53, %v13598_v19  ;;  %vm13715_vm14 = vcmp.eq.s32.totalorder %v7608_v41, %v13610_v52 }
 0x6c1   : > { %6867 = vmatpush2.msk.msra.mxu1 %vm13710_vm4, %v13341_v18  ;;  %6927 = vmatpush2.msk.msra.mxu0 %vm13711_vm2, %v13341_v18  ;;  %vm13716_vm4 = vcmp.eq.s32.totalorder %v8054_v54, %v13596_v55  ;;  %vm13717_vm2 = vcmp.eq.s32.totalorder %v7623_v42, %v13606_v56 }
 0x6c2   : > { %6868 = vmatprep.subr.msk.mxu1 %vm13712_vm5, %v13341_v18  ;;  %6928 = vmatprep.subr.msk.mxu0 %vm13713_vm6, %v13341_v18  ;;  %vm13718_vm5 = vcmp.eq.s32.totalorder %v8054_v54, %v13598_v19  ;;  %vm13719_vm6 = vcmp.eq.s32.totalorder %v7623_v42, %v13610_v52 }
 0x6c3   : > { %6869 = vmatpush2.msk.msra.mxu1 %vm13714_vm8, %v13341_v18  ;;  %6929 = vmatpush2.msk.msra.mxu0 %vm13715_vm14, %v13341_v18  ;;  %vm13720_vm8 = vcmp.eq.s32.totalorder %v7638_v43, %v13606_v56  ;;  %vm13721_vm14 = vcmp.eq.s32.totalorder %v7638_v43, %v13610_v52 }
 0x6c4   : > { %6870 = vmatprep.subr.msk.mxu1 %vm13716_vm4, %v13341_v18  ;;  %6930 = vmatprep.subr.msk.mxu0 %vm13717_vm2, %v13341_v18  ;;  %vm13722_vm4 = vcmp.eq.s32.totalorder %v7653_v44, %v13606_v56  ;;  %vm13723_vm2 = vcmp.eq.s32.totalorder %v7653_v44, %v13610_v52 }
 0x6c5   : > { %6871 = vmatpush2.msk.msra.mxu1 %vm13718_vm5, %v13341_v18  ;;  %6931 = vmatpush2.msk.msra.mxu0 %vm13719_vm6, %v13341_v18  ;;  %vm13724_vm5 = vcmp.eq.s32.totalorder %v8035_v53, %v13606_v56  ;;  %vm13725_vm6 = vcmp.eq.s32.totalorder %v8035_v53, %v13610_v52 }
 0x6c6   : > { %6932 = vmatprep.subr.msk.mxu0 %vm13720_vm8, %v13341_v18  ;;  %6941 = vmatprep.subr.msk.mxu1 %vm2074_vm7, %v10914_v22  ;;  %vm13726_vm8 = vcmp.eq.s32.totalorder %v8054_v54, %v13606_v56 }
 0x6c7   : > { %6933 = vmatpush2.msk.msra.mxu0 %vm13721_vm14, %v13341_v18  ;;  %vm13727_vm14 = vcmp.eq.s32.totalorder %v8054_v54, %v13610_v52 }
 0x6c8   : > { %6934 = vmatprep.subr.msk.mxu0 %vm13722_vm4, %v13341_v18  ;;  %vm13728_vm4 = vcmp.eq.s32.totalorder %v7272_v23, %v9855_v20 }
 0x6c9   : > { %6935 = vmatpush2.msk.msra.mxu0 %vm13723_vm2, %v13341_v18  ;;  %vm13729_vm2 = vcmp.eq.s32.totalorder %v7272_v23, %v9871_v61 }
 0x6ca   : > { %6936 = vmatprep.subr.msk.mxu0 %vm13724_vm5, %v13341_v18  ;;  %vm13730_vm5 = vcmp.eq.s32.totalorder %v7272_v23, %v9821_v62 }
 0x6cb   : > { %6937 = vmatpush2.msk.msra.mxu0 %vm13725_vm6, %v13341_v18  ;;  %vm13732_vm6 = vcmp.eq.s32.totalorder %v7275_v24, %v9871_v61 }
 0x6cc   : > { %6938 = vmatprep.subr.msk.mxu0 %vm13726_vm8, %v13341_v18  ;;  %vm13733_vm8 = vcmp.eq.s32.totalorder %v7278_v25, %v9855_v20 }
 0x6cd   : > { %6939 = vmatpush2.msk.msra.mxu0 %vm13727_vm14, %v13341_v18  ;;  %vm13734_vm14 = vcmp.eq.s32.totalorder %v7272_v23, %v9839_v9 }
 0x6ce   : > { %7009 = vmatprep.subr.msk.mxu0 %vm2074_vm7, %v10914_v22 }
 0x742   : > { %v4479_v51 = vpop.f32.mrf.mxu0 }
 0x743   : > { %v4484_v6 = vadd.f32 %v4479_v51, %v11723_v0  ;;  %v6940_v0 = vld [vmem:[%s12810_s4 + $0x1c] sm:$0xf] }
 0x744   : > { %v4481_v49 = vpop.f32.mrf.mxu0 }
 0x745   : > { %v4485_v63 = vadd.f32 %v4481_v49, %v4335_v7 }
 0x746   : > { %v4628_v45 = vpop.f32.mrf.mxu1  ;;  %v4706_v5 = vpop.f32.mrf.mxu0 }
 0x747   : > { %v4633_v46 = vadd.f32 %v4628_v45, %v4484_v6 }
 0x748   : > { %v4630_v55 = vpop.f32.mrf.mxu1  ;;  %v4708_v47 = vpop.f32.mrf.mxu0 }
 0x749   : > { %v12266_v60 = vadd.f32 %v4706_v5, %v4633_v46  ;;  %v4634_v50 = vadd.f32 %v4630_v55, %v4485_v63 }
 0x74a   : > { %v4784_v3 = vpop.f32.mrf.mxu0 }
 0x74b   : > { %v12268_v21 = vadd.f32 %v4708_v47, %v4634_v50 }
 0x74c   : > { %v4786_v22 = vpop.f32.mrf.mxu0 }
 0x74d   : > { %4853 = vmatprep.mubr.f32.mxu1 %v4786_v22 }
 0x74e   : > { %4854 = vmatmul.mubr.f32.vlgmr.msra.gmra.mxu1 %v4784_v3  ;;  %v4933_v14 = vpop.f32.mrf.mxu0 }
 0x74f   : > { %6942 = vmatpush1.msk.msra.mxu1 %vm2074_vm7, %v10916_v2  ;;  %5080 = vmatprep.mubr.f32.mxu1 %v13340_v57 }
 0x750   : > { %v4935_v48 = vpop.f32.mrf.mxu0  ;;  %6944 = vmatprep.subr.msk.mxu1 %vm13728_vm4, %v13341_v18  ;;  %vm13735_vm4 = vcmp.eq.s32.totalorder %v7278_v25, %v9871_v61 }
 0x751   : > { %5002 = vmatprep.mubr.f32.mxu0 %v4935_v48 }
 0x752   : > { %5003 = vmatmul.mubr.f32.vlgmr.msra.gmra.mxu0 %v4933_v14  ;;  %6943 = vmatmul.mubr.msk.f32.vlgmr.msra.gmra.mxu1 %vm2070_vm10, %v6940_v0 }
 0x753   : > { %7010 = vmatpush1.msk.msra.mxu0 %vm2074_vm7, %v10916_v2  ;;  %5229 = vmatprep.mubr.f32.mxu0 %v13340_v57  ;;  %vm13731_vm7 = vcmp.eq.s32.totalorder %v7275_v24, %v9855_v20 }
 0x754   : > { %6945 = vmatpush1.msk.msra.mxu1 %vm13729_vm2, %v13341_v18  ;;  %7012 = vmatprep.subr.msk.mxu0 %vm13730_vm5, %v13341_v18  ;;  %vm13737_vm2 = vcmp.eq.s32.totalorder %v7287_v26, %v9855_v20  ;;  %vm13738_vm5 = vcmp.eq.s32.totalorder %v7275_v24, %v9839_v9 }
 0x755   : > { %6946 = vmatprep.subr.msk.mxu1 %vm13731_vm7, %v13341_v18  ;;  %vm13739_vm7 = vcmp.eq.s32.totalorder %v7287_v26, %v9871_v61 }
 0x756   : > { %7011 = vmatmul.mubr.msk.f32.vlgmr.msra.gmra.mxu0 %vm2070_vm10, %v7008_v16  ;;  %6947 = vmatpush1.msk.msra.mxu1 %vm13732_vm6, %v13341_v18  ;;  %vm13736_vm10 = vcmp.eq.s32.totalorder %v7275_v24, %v9821_v62  ;;  %vm13740_vm6 = vcmp.eq.s32.totalorder %v7278_v25, %v9821_v62 }
 0x757   : > { %6948 = vmatprep.subr.msk.mxu1 %vm13733_vm8, %v13341_v18  ;;  %7013 = vmatpush1.msk.msra.mxu0 %vm13734_vm14, %v13341_v18  ;;  %vm13741_vm8 = vcmp.eq.s32.totalorder %v7302_v27, %v9855_v20  ;;  %vm13742_vm14 = vcmp.eq.s32.totalorder %v7278_v25, %v9839_v9 }
 0x758   : > { %6949 = vmatpush1.msk.msra.mxu1 %vm13735_vm4, %v13341_v18  ;;  %7014 = vmatprep.subr.msk.mxu0 %vm13736_vm10, %v13341_v18  ;;  %vm13743_vm4 = vcmp.eq.s32.totalorder %v7302_v27, %v9871_v61  ;;  %vm13744_vm10 = vcmp.eq.s32.totalorder %v7287_v26, %v9821_v62 }
 0x759   : > { %6950 = vmatprep.subr.msk.mxu1 %vm13737_vm2, %v13341_v18  ;;  %7015 = vmatpush1.msk.msra.mxu0 %vm13738_vm5, %v13341_v18  ;;  %vm13745_vm2 = vcmp.eq.s32.totalorder %v7317_v28, %v9855_v20  ;;  %vm13746_vm5 = vcmp.eq.s32.totalorder %v7287_v26, %v9839_v9 }
 0x75a   : > { %6951 = vmatpush1.msk.msra.mxu1 %vm13739_vm7, %v13341_v18  ;;  %7016 = vmatprep.subr.msk.mxu0 %vm13740_vm6, %v13341_v18  ;;  %vm13747_vm7 = vcmp.eq.s32.totalorder %v7317_v28, %v9871_v61  ;;  %vm13748_vm6 = vcmp.eq.s32.totalorder %v7302_v27, %v9821_v62 }
 0x75b   : > { %6952 = vmatprep.subr.msk.mxu1 %vm13741_vm8, %v13341_v18  ;;  %7017 = vmatpush1.msk.msra.mxu0 %vm13742_vm14, %v13341_v18  ;;  %vm13749_vm8 = vcmp.eq.s32.totalorder %v7332_v29, %v9855_v20  ;;  %vm13750_vm14 = vcmp.eq.s32.totalorder %v7302_v27, %v9839_v9 }
 0x75c   : > { %6953 = vmatpush1.msk.msra.mxu1 %vm13743_vm4, %v13341_v18  ;;  %7018 = vmatprep.subr.msk.mxu0 %vm13744_vm10, %v13341_v18  ;;  %vm13751_vm4 = vcmp.eq.s32.totalorder %v7332_v29, %v9871_v61  ;;  %vm13752_vm10 = vcmp.eq.s32.totalorder %v7317_v28, %v9821_v62 }
 0x75d   : > { %6954 = vmatprep.subr.msk.mxu1 %vm13745_vm2, %v13341_v18  ;;  %7019 = vmatpush1.msk.msra.mxu0 %vm13746_vm5, %v13341_v18  ;;  %vm13753_vm2 = vcmp.eq.s32.totalorder %v7347_v30, %v9855_v20  ;;  %vm13754_vm5 = vcmp.eq.s32.totalorder %v7317_v28, %v9839_v9 }
 0x75e   : > { %6955 = vmatpush1.msk.msra.mxu1 %vm13747_vm7, %v13341_v18  ;;  %7020 = vmatprep.subr.msk.mxu0 %vm13748_vm6, %v13341_v18  ;;  %vm13755_vm7 = vcmp.eq.s32.totalorder %v7347_v30, %v9871_v61  ;;  %vm13756_vm6 = vcmp.eq.s32.totalorder %v7332_v29, %v9821_v62 }
 0x75f   : > { %6956 = vmatprep.subr.msk.mxu1 %vm13749_vm8, %v13341_v18  ;;  %7021 = vmatpush1.msk.msra.mxu0 %vm13750_vm14, %v13341_v18  ;;  %vm13757_vm8 = vcmp.eq.s32.totalorder %v7166_v4, %v9855_v20  ;;  %vm13758_vm14 = vcmp.eq.s32.totalorder %v7332_v29, %v9839_v9 }
 0x760   : > { %6957 = vmatpush1.msk.msra.mxu1 %vm13751_vm4, %v13341_v18  ;;  %7022 = vmatprep.subr.msk.mxu0 %vm13752_vm10, %v13341_v18  ;;  %vm13759_vm4 = vcmp.eq.s32.totalorder %v7166_v4, %v9871_v61  ;;  %vm13760_vm10 = vcmp.eq.s32.totalorder %v7347_v30, %v9821_v62 }
 0x761   : > { %6958 = vmatprep.subr.msk.mxu1 %vm13753_vm2, %v13341_v18  ;;  %7023 = vmatpush1.msk.msra.mxu0 %vm13754_vm5, %v13341_v18  ;;  %vm13761_vm2 = vcmp.eq.s32.totalorder %v7194_v10, %v9855_v20  ;;  %vm13762_vm5 = vcmp.eq.s32.totalorder %v7347_v30, %v9839_v9 }
 0x762   : > { %6959 = vmatpush1.msk.msra.mxu1 %vm13755_vm7, %v13341_v18  ;;  %7024 = vmatprep.subr.msk.mxu0 %vm13756_vm6, %v13341_v18  ;;  %vm13763_vm7 = vcmp.eq.s32.totalorder %v7194_v10, %v9871_v61  ;;  %vm13764_vm6 = vcmp.eq.s32.totalorder %v7166_v4, %v9821_v62 }
 0x763   : > { %6960 = vmatprep.subr.msk.mxu1 %vm13757_vm8, %v13341_v18  ;;  %7025 = vmatpush1.msk.msra.mxu0 %vm13758_vm14, %v13341_v18  ;;  %vm13765_vm8 = vcmp.eq.s32.totalorder %v7197_v11, %v9855_v20  ;;  %vm13766_vm14 = vcmp.eq.s32.totalorder %v7166_v4, %v9839_v9 }
 0x764   : > { %6961 = vmatpush1.msk.msra.mxu1 %vm13759_vm4, %v13341_v18  ;;  %7026 = vmatprep.subr.msk.mxu0 %vm13760_vm10, %v13341_v18  ;;  %vm13767_vm4 = vcmp.eq.s32.totalorder %v7197_v11, %v9871_v61  ;;  %vm13768_vm10 = vcmp.eq.s32.totalorder %v7194_v10, %v9821_v62 }
 0x765   : > { %6962 = vmatprep.subr.msk.mxu1 %vm13761_vm2, %v13341_v18  ;;  %7027 = vmatpush1.msk.msra.mxu0 %vm13762_vm5, %v13341_v18  ;;  %vm13769_vm2 = vcmp.eq.s32.totalorder %v7201_v12, %v9855_v20  ;;  %vm13770_vm5 = vcmp.eq.s32.totalorder %v7194_v10, %v9839_v9 }
 0x766   : > { %6963 = vmatpush1.msk.msra.mxu1 %vm13763_vm7, %v13341_v18  ;;  %7028 = vmatprep.subr.msk.mxu0 %vm13764_vm6, %v13341_v18  ;;  %vm13771_vm7 = vcmp.eq.s32.totalorder %v7201_v12, %v9871_v61  ;;  %vm13772_vm6 = vcmp.eq.s32.totalorder %v7197_v11, %v9821_v62 }
 0x767   : > { %6964 = vmatprep.subr.msk.mxu1 %vm13765_vm8, %v13341_v18  ;;  %7029 = vmatpush1.msk.msra.mxu0 %vm13766_vm14, %v13341_v18  ;;  %vm13773_vm8 = vcmp.eq.s32.totalorder %v7207_v13, %v9855_v20  ;;  %vm13774_vm14 = vcmp.eq.s32.totalorder %v7197_v11, %v9839_v9 }
 0x768   : > { %6965 = vmatpush1.msk.msra.mxu1 %vm13767_vm4, %v13341_v18  ;;  %7030 = vmatprep.subr.msk.mxu0 %vm13768_vm10, %v13341_v18  ;;  %vm13775_vm4 = vcmp.eq.s32.totalorder %v7207_v13, %v9871_v61  ;;  %vm13776_vm10 = vcmp.eq.s32.totalorder %v7201_v12, %v9821_v62 }
 0x769   : > { %6966 = vmatprep.subr.msk.mxu1 %vm13769_vm2, %v13341_v18  ;;  %7031 = vmatpush1.msk.msra.mxu0 %vm13770_vm5, %v13341_v18  ;;  %vm13777_vm2 = vcmp.eq.s32.totalorder %v7217_v15, %v9855_v20  ;;  %vm13778_vm5 = vcmp.eq.s32.totalorder %v7201_v12, %v9839_v9 }
 0x76a   : > { %6967 = vmatpush1.msk.msra.mxu1 %vm13771_vm7, %v13341_v18  ;;  %7032 = vmatprep.subr.msk.mxu0 %vm13772_vm6, %v13341_v18  ;;  %vm13779_vm7 = vcmp.eq.s32.totalorder %v7217_v15, %v9871_v61  ;;  %vm13780_vm6 = vcmp.eq.s32.totalorder %v7207_v13, %v9821_v62 }
 0x76b   : > { %6968 = vmatprep.subr.msk.mxu1 %vm13773_vm8, %v13341_v18  ;;  %7033 = vmatpush1.msk.msra.mxu0 %vm13774_vm14, %v13341_v18  ;;  %vm13781_vm8 = vcmp.eq.s32.totalorder %v7228_v17, %v9855_v20  ;;  %vm13782_vm14 = vcmp.eq.s32.totalorder %v7207_v13, %v9839_v9 }
 0x76c   : > { %6969 = vmatpush1.msk.msra.mxu1 %vm13775_vm4, %v13341_v18  ;;  %7034 = vmatprep.subr.msk.mxu0 %vm13776_vm10, %v13341_v18  ;;  %vm13783_vm4 = vcmp.eq.s32.totalorder %v7228_v17, %v9871_v61  ;;  %vm13784_vm10 = vcmp.eq.s32.totalorder %v7217_v15, %v9821_v62 }
 0x76d   : > { %6970 = vmatprep.subr.msk.mxu1 %vm13777_vm2, %v13341_v18  ;;  %7035 = vmatpush1.msk.msra.mxu0 %vm13778_vm5, %v13341_v18  ;;  %vm13785_vm2 = vcmp.eq.s32.totalorder %v7156_v1, %v9855_v20  ;;  %vm13786_vm5 = vcmp.eq.s32.totalorder %v7217_v15, %v9839_v9 }
 0x76e   : > { %6971 = vmatpush1.msk.msra.mxu1 %vm13779_vm7, %v13341_v18  ;;  %7036 = vmatprep.subr.msk.mxu0 %vm13780_vm6, %v13341_v18  ;;  %vm13787_vm7 = vcmp.eq.s32.totalorder %v7156_v1, %v9871_v61  ;;  %vm13788_vm6 = vcmp.eq.s32.totalorder %v7228_v17, %v9821_v62 }
 0x76f   : > { %6972 = vmatprep.subr.msk.mxu1 %vm13781_vm8, %v13341_v18  ;;  %7037 = vmatpush1.msk.msra.mxu0 %vm13782_vm14, %v13341_v18  ;;  %vm13789_vm8 = vcmp.eq.s32.totalorder %v7458_v31, %v9855_v20  ;;  %vm13790_vm14 = vcmp.eq.s32.totalorder %v7228_v17, %v9839_v9 }
 0x770   : > { %6973 = vmatpush1.msk.msra.mxu1 %vm13783_vm4, %v13341_v18  ;;  %7038 = vmatprep.subr.msk.mxu0 %vm13784_vm10, %v13341_v18  ;;  %vm13791_vm4 = vcmp.eq.s32.totalorder %v7458_v31, %v9871_v61  ;;  %vm13792_vm10 = vcmp.eq.s32.totalorder %v7156_v1, %v9821_v62 }
 0x771   : > { %6974 = vmatprep.subr.msk.mxu1 %vm13785_vm2, %v13341_v18  ;;  %7039 = vmatpush1.msk.msra.mxu0 %vm13786_vm5, %v13341_v18  ;;  %vm13793_vm2 = vcmp.eq.s32.totalorder %v7473_v32, %v9855_v20  ;;  %vm13794_vm5 = vcmp.eq.s32.totalorder %v7156_v1, %v9839_v9 }
 0x772   : > { %6975 = vmatpush1.msk.msra.mxu1 %vm13787_vm7, %v13341_v18  ;;  %7040 = vmatprep.subr.msk.mxu0 %vm13788_vm6, %v13341_v18  ;;  %vm13795_vm7 = vcmp.eq.s32.totalorder %v7473_v32, %v9871_v61  ;;  %vm13796_vm6 = vcmp.eq.s32.totalorder %v7458_v31, %v9821_v62 }
 0x773   : > { %6976 = vmatprep.subr.msk.mxu1 %vm13789_vm8, %v13341_v18  ;;  %7041 = vmatpush1.msk.msra.mxu0 %vm13790_vm14, %v13341_v18  ;;  %vm13797_vm8 = vcmp.eq.s32.totalorder %v7488_v33, %v9855_v20  ;;  %vm13798_vm14 = vcmp.eq.s32.totalorder %v7458_v31, %v9839_v9 }
 0x774   : > { %6977 = vmatpush2.msk.msra.mxu1 %vm13791_vm4, %v13341_v18  ;;  %7042 = vmatprep.subr.msk.mxu0 %vm13792_vm10, %v13341_v18  ;;  %vm13799_vm4 = vcmp.eq.s32.totalorder %v7488_v33, %v9871_v61  ;;  %vm13800_vm10 = vcmp.eq.s32.totalorder %v7473_v32, %v9821_v62 }
 0x775   : > { %6978 = vmatprep.subr.msk.mxu1 %vm13793_vm2, %v13341_v18  ;;  %7043 = vmatpush1.msk.msra.mxu0 %vm13794_vm5, %v13341_v18  ;;  %vm13801_vm2 = vcmp.eq.s32.totalorder %v7503_v34, %v9855_v20  ;;  %vm13802_vm5 = vcmp.eq.s32.totalorder %v7473_v32, %v9839_v9 }
 0x776   : > { %6979 = vmatpush2.msk.msra.mxu1 %vm13795_vm7, %v13341_v18  ;;  %7044 = vmatprep.subr.msk.mxu0 %vm13796_vm6, %v13341_v18  ;;  %vm13803_vm7 = vcmp.eq.s32.totalorder %v7488_v33, %v9821_v62  ;;  %vm13804_vm6 = vcmp.eq.s32.totalorder %v7488_v33, %v9839_v9  ;;  %v5314_v33 = vpop.permute.xlu0 %5313 }
 0x777   : > { %6980 = vmatprep.subr.msk.mxu1 %vm13797_vm8, %v13341_v18  ;;  %7045 = vmatpush2.msk.msra.mxu0 %vm13798_vm14, %v13341_v18  ;;  %vm13805_vm8 = vcmp.eq.s32.totalorder %v7518_v35, %v9871_v61  ;;  %vm13807_vm14 = vcmp.eq.s32.totalorder %v7533_v36, %v9855_v20 }
 0x778   : > { %6981 = vmatpush2.msk.msra.mxu1 %vm13799_vm4, %v13341_v18  ;;  %7046 = vmatprep.subr.msk.mxu0 %vm13800_vm10, %v13341_v18  ;;  %vm13809_vm4 = vcmp.eq.s32.totalorder %v7533_v36, %v9871_v61  ;;  %vm13810_vm10 = vcmp.eq.s32.totalorder %v7518_v35, %v9821_v62 }
 0x779   : > { %6982 = vmatprep.subr.msk.mxu1 %vm13801_vm2, %v13341_v18  ;;  %7047 = vmatpush2.msk.msra.mxu0 %vm13802_vm5, %v13341_v18  ;;  %vm13811_vm2 = vcmp.eq.s32.totalorder %v7548_v37, %v9855_v20  ;;  %vm13812_vm5 = vcmp.eq.s32.totalorder %v7518_v35, %v9839_v9 }
 0x77a   : > { %6983 = vmatpush2.msk.msra.mxu1 %vm1730_vm15, %v13341_v18  ;;  %7048 = vmatprep.subr.msk.mxu0 %vm13803_vm7, %v13341_v18  ;;  %vm13806_vm15 = vcmp.eq.s32.totalorder %v7503_v34, %v9821_v62  ;;  %vm13813_vm7 = vcmp.eq.s32.totalorder %v7548_v37, %v9871_v61 }
 0x77b   : > { %6984 = vmatprep.subr.msk.mxu1 %vm1729_vm0, %v13341_v18  ;;  %7049 = vmatpush2.msk.msra.mxu0 %vm13804_vm6, %v13341_v18  ;;  %vm13808_vm0 = vcmp.eq.s32.totalorder %v7503_v34, %v9839_v9  ;;  %vm13814_vm6 = vcmp.eq.s32.totalorder %v7533_v36, %v9821_v62 }
 0x77c   : > { %6985 = vmatpush2.msk.msra.mxu1 %vm13805_vm8, %v13341_v18  ;;  %7050 = vmatprep.subr.msk.mxu0 %vm13806_vm15, %v13341_v18  ;;  %vm13815_vm8 = vcmp.eq.s32.totalorder %v7533_v36, %v9839_v9  ;;  %vm13816_vm15 = vcmp.eq.s32.totalorder %v7563_v38, %v9871_v61 }
 0x77d   : > { %6986 = vmatprep.subr.msk.mxu1 %vm13807_vm14, %v13341_v18  ;;  %7051 = vmatpush2.msk.msra.mxu0 %vm13808_vm0, %v13341_v18  ;;  %vm13817_vm14 = vcmp.eq.s32.totalorder %v7548_v37, %v9821_v62  ;;  %vm13818_vm0 = vcmp.eq.s32.totalorder %v7578_v39, %v9855_v20 }
 0x77e   : > { %6987 = vmatpush2.msk.msra.mxu1 %vm13809_vm4, %v13341_v18  ;;  %7052 = vmatprep.subr.msk.mxu0 %vm13810_vm10, %v13341_v18  ;;  %vm13820_vm4 = vcmp.eq.s32.totalorder %v7578_v39, %v9871_v61  ;;  %vm13821_vm10 = vcmp.eq.s32.totalorder %v7563_v38, %v9821_v62 }
 0x77f   : > { %6988 = vmatprep.subr.msk.mxu1 %vm13811_vm2, %v13341_v18  ;;  %7053 = vmatpush2.msk.msra.mxu0 %vm13812_vm5, %v13341_v18  ;;  %vm13822_vm2 = vcmp.eq.s32.totalorder %v7593_v40, %v9855_v20  ;;  %vm13823_vm5 = vcmp.eq.s32.totalorder %v7563_v38, %v9839_v9 }
 0x780   : > { %6989 = vmatpush2.msk.msra.mxu1 %vm13813_vm7, %v13341_v18  ;;  %7054 = vmatprep.subr.msk.mxu0 %vm13814_vm6, %v13341_v18  ;;  %vm13824_vm7 = vcmp.eq.s32.totalorder %v7593_v40, %v9871_v61  ;;  %vm13825_vm6 = vcmp.eq.s32.totalorder %v7578_v39, %v9821_v62 }
 0x781   : > { %6990 = vmatprep.subr.msk.mxu1 %vm1723_vm11, %v13341_v18  ;;  %7055 = vmatpush2.msk.msra.mxu0 %vm13815_vm8, %v13341_v18  ;;  %vm13819_vm11 = vcmp.eq.s32.totalorder %v7548_v37, %v9839_v9  ;;  %vm13826_vm8 = vcmp.eq.s32.totalorder %v7608_v41, %v9855_v20 }
 0x782   : > { %6991 = vmatpush2.msk.msra.mxu1 %vm13816_vm15, %v13341_v18  ;;  %7056 = vmatprep.subr.msk.mxu0 %vm13817_vm14, %v13341_v18  ;;  %vm13827_vm15 = vcmp.eq.s32.totalorder %v7578_v39, %v9839_v9  ;;  %vm13828_vm14 = vcmp.eq.s32.totalorder %v7608_v41, %v9871_v61 }
 0x783   : > { %6992 = vmatprep.subr.msk.mxu1 %vm13818_vm0, %v13341_v18  ;;  %7057 = vmatpush2.msk.msra.mxu0 %vm13819_vm11, %v13341_v18  ;;  %vm13829_vm0 = vcmp.eq.s32.totalorder %v7593_v40, %v9821_v62  ;;  %vm13830_vm11 = vcmp.eq.s32.totalorder %v7623_v42, %v9855_v20 }
 0x784   : > { %6993 = vmatpush2.msk.msra.mxu1 %vm13820_vm4, %v13341_v18  ;;  %7058 = vmatprep.subr.msk.mxu0 %vm13821_vm10, %v13341_v18  ;;  %vm13831_vm4 = vcmp.eq.s32.totalorder %v7593_v40, %v9839_v9  ;;  %vm13832_vm10 = vcmp.eq.s32.totalorder %v7608_v41, %v9821_v62 }
 0x785   : > { %6994 = vmatprep.subr.msk.mxu1 %vm13822_vm2, %v13341_v18  ;;  %7059 = vmatpush2.msk.msra.mxu0 %vm13823_vm5, %v13341_v18  ;;  %vm13833_vm2 = vcmp.eq.s32.totalorder %v7638_v43, %v9855_v20  ;;  %vm13834_vm5 = vcmp.eq.s32.totalorder %v7608_v41, %v9839_v9 }
 0x786   : > { %6995 = vmatpush2.msk.msra.mxu1 %vm13824_vm7, %v13341_v18  ;;  %7060 = vmatprep.subr.msk.mxu0 %vm13825_vm6, %v13341_v18  ;;  %vm13835_vm7 = vcmp.eq.s32.totalorder %v7638_v43, %v9871_v61  ;;  %vm13837_vm6 = vcmp.eq.s32.totalorder %v7653_v44, %v9855_v20 }
 0x787   : > { %6996 = vmatprep.subr.msk.mxu1 %vm13826_vm8, %v13341_v18  ;;  %7061 = vmatpush2.msk.msra.mxu0 %vm13827_vm15, %v13341_v18  ;;  %vm13838_vm8 = vcmp.eq.s32.totalorder %v7623_v42, %v9839_v9  ;;  %vm13839_vm15 = vcmp.eq.s32.totalorder %v7638_v43, %v9821_v62 }
 0x788   : > { %6997 = vmatpush2.msk.msra.mxu1 %vm13828_vm14, %v13341_v18  ;;  %7062 = vmatprep.subr.msk.mxu0 %vm13829_vm0, %v13341_v18  ;;  %vm13840_vm14 = vcmp.eq.s32.totalorder %v7638_v43, %v9839_v9  ;;  %vm13843_vm0 = vcmp.eq.s32.totalorder %v8054_v54, %v9871_v61 }
 0x789   : > { %6998 = vmatprep.subr.msk.mxu1 %vm13830_vm11, %v13341_v18  ;;  %7063 = vmatpush2.msk.msra.mxu0 %vm13831_vm4, %v13341_v18  ;;  %vm13845_vm11 = vcmp.eq.s32.totalorder %v8035_v53, %v9839_v9  ;;  %vm13847_vm4 = vcmp.eq.s32.totalorder %v8054_v54, %v9839_v9 }
 0x78a   : > { %6999 = vmatpush2.msk.msra.mxu1 %vm1714_vm12, %v13341_v18  ;;  %7064 = vmatprep.subr.msk.mxu0 %vm13832_vm10, %v13341_v18  ;;  %vm13836_vm12 = vcmp.eq.s32.totalorder %v7623_v42, %v9821_v62 }
 0x78b   : > { %7000 = vmatprep.subr.msk.mxu1 %vm13833_vm2, %v13341_v18  ;;  %7065 = vmatpush2.msk.msra.mxu0 %vm13834_vm5, %v13341_v18 }
 0x78c   : > { %7001 = vmatpush2.msk.msra.mxu1 %vm13835_vm7, %v13341_v18  ;;  %7066 = vmatprep.subr.msk.mxu0 %vm13836_vm12, %v13341_v18 }
 0x78d   : > { %7002 = vmatprep.subr.msk.mxu1 %vm13837_vm6, %v13341_v18  ;;  %7067 = vmatpush2.msk.msra.mxu0 %vm13838_vm8, %v13341_v18 }
 0x78e   : > { %7003 = vmatpush2.msk.msra.mxu1 %vm1710_vm1, %v13341_v18  ;;  %7068 = vmatprep.subr.msk.mxu0 %vm13839_vm15, %v13341_v18  ;;  %vm13841_vm1 = vcmp.eq.s32.totalorder %v7653_v44, %v9821_v62 }
 0x78f   : > { %7004 = vmatprep.subr.msk.mxu1 %vm1709_vm13, %v13341_v18  ;;  %7069 = vmatpush2.msk.msra.mxu0 %vm13840_vm14, %v13341_v18  ;;  %vm13842_vm13 = vcmp.eq.s32.totalorder %v7653_v44, %v9839_v9 }
 0x790   : > { %7005 = vmatpush2.msk.msra.mxu1 %vm1708_vm3, %v13341_v18  ;;  %7070 = vmatprep.subr.msk.mxu0 %vm13841_vm1, %v13341_v18  ;;  %vm13844_vm3 = vcmp.eq.s32.totalorder %v8035_v53, %v9821_v62 }
 0x791   : > { %7006 = vmatprep.subr.msk.mxu1 %vm1707_vm9, %v13341_v18  ;;  %7071 = vmatpush2.msk.msra.mxu0 %vm13842_vm13, %v13341_v18  ;;  %vm13846_vm9 = vcmp.eq.s32.totalorder %v8054_v54, %v9821_v62 }
 0x792   : > { %7007 = vmatpush2.msk.msra.mxu1 %vm13843_vm0, %v13341_v18  ;;  %7072 = vmatprep.subr.msk.mxu0 %vm13844_vm3, %v13341_v18 }
 0x793   : > { %7073 = vmatpush2.msk.msra.mxu0 %vm13845_vm11, %v13341_v18 }
 0x794   : > { %7074 = vmatprep.subr.msk.mxu0 %vm13846_vm9, %v13341_v18 }
 0x795   : > { %7075 = vmatpush2.msk.msra.mxu0 %vm13847_vm4, %v13341_v18 }
 0x80e   : > { %v4855_v1 = vpop.f32.mrf.mxu1 }
 0x80f   : > { %v4860_v4 = vadd.f32 %v4855_v1, %v12266_v60 }
 0x810   : > { %v4857_v10 = vpop.f32.mrf.mxu1 }
 0x811   : > { %v4861_v11 = vadd.f32 %v4857_v10, %v12268_v21 }
 0x812   : > { %v5004_v12 = vpop.f32.mrf.mxu0  ;;  %v5082_v13 = vpop.f32.mrf.mxu1 }
 0x813   : > { %v5009_v15 = vadd.f32 %v5004_v12, %v4860_v4 }
 0x814   : > { %v5006_v17 = vpop.f32.mrf.mxu0  ;;  %v5084_v23 = vpop.f32.mrf.mxu1 }
 0x815   : > { %v5010_v24 = vadd.f32 %v5006_v17, %v4861_v11  ;;  %5151 = vmatprep.mubr.f32.mxu1 %v5084_v23 }
 0x816   : > { %5152 = vmatmul.mubr.f32.vlgmr.msra.gmra.mxu1 %v5082_v13  ;;  %v5231_v25 = vpop.f32.mrf.mxu0 }
 0x818   : > { %v5233_v26 = vpop.f32.mrf.mxu0 }
 0x819   : > { %5300 = vmatprep.mubr.f32.mxu0 %v5233_v26 }
 0x81a   : > { %5301 = vmatmul.mubr.f32.vlgmr.msra.gmra.mxu0 %v5231_v25 }
 0x8d6   : > { %v5153_v27 = vpop.f32.mrf.mxu1 }
 0x8d7   : > { %v5158_v29 = vadd.f32 %v5153_v27, %v5009_v15 }
 0x8d8   : > { %v5155_v28 = vpop.f32.mrf.mxu1 }
 0x8d9   : > { %v5159_v31 = vadd.f32 %v5155_v28, %v5010_v24 }
 0x8da   : > { %v5302_v30 = vpop.f32.mrf.mxu0 }
 0x8db   : > { %v5307_v32 = vadd.f32 %v5302_v30, %v5158_v29 }
 0x8dc   : > { %v5304_v34 = vpop.f32.mrf.mxu0 }
 0x8dd   : > { %v5316_v35 = vadd.f32 %v5314_v33, %v5307_v32  ;;  %v5308_v36 = vadd.f32 %v5304_v34, %v5159_v31 }
 0x8df   : > { %v5317_v37 = vadd.f32 %v5314_v33, %v5308_v36  ;;  %v5318_v38 = vmax.f32 %v5316_v35, 0.0 }
 0x8e1   : > { %v5319_v39 = vmax.f32 %v5317_v37, 0.0 }
 0x8e3   : > { %v5322_v40 = vcombine.low %v5318_v38, %v5319_v39 }
 0x8e5   : > { %5324 = vst [vmem:[%s295_s23] sm:$0xff] %v5322_v40 }
 0x8e6 PF: > { %s17_s24 = sadd.s32 1, %s7103_s24  }
 0x8e7   : > { %p14_p4 = scmp.ge.s32.totalorder %s17_s24, 4  }
 0x8e9   :  { %16 = sbr.rel (!%p14_p4) target bundleno = 1 (0x1), region = 106 }

</bundles_post_ra>
